<compile_context>
chip_gen: v5e
topology: v5e:2x2
jax: 0.10.0
libtpu: 0.0.40
codegen_flags: <defaults>
</compile_context>

<pallas_src>
import functools

import jax
import jax.numpy as jnp
from jax import lax
from jax.experimental import pallas as pl
from jax.experimental.pallas import tpu as pltpu

H = W = 21  # token grid hard-coded in the PyTorch module (len == 441)


def _global_up_kernel(x_ref, w_ref, shift_ref, o_ref, z_ref, *, w_out, s, tn):
    """One grid step = (batch image b, output-lane tile j).

    x_ref     : (1, Cin, L)   bf16  tokens of image b (block constant in j -> fetched per b)
    w_ref     : (Cout, Cin)   bf16  1x1-conv weight with BN scale folded in (resident)
    shift_ref : (Cout, 1)     f32   folded conv-bias + BN shift (resident)
    o_ref     : (1, Cout, TN)       lane-dense output tile
    z_ref     : (Cout, L)     bf16  VMEM scratch: post-ReLU activation of image b
    """
    j = pl.program_id(1)
    l = z_ref.shape[1]

    # --- 1x1 conv + folded BN affine + ReLU, once per image (first tile only) -------
    @pl.when(j == 0)
    def _():
        z = jnp.dot(w_ref[...], x_ref[0], preferred_element_type=jnp.float32)
        z = jnp.maximum(z + shift_ref[...], 0.0)
        z_ref[...] = z.astype(z_ref.dtype)

    # --- per-tile 0/1 nearest-gather matrix, generated on-chip (no HBM read) --------
    # Global flat output index of each lane in this tile; +0.5 makes every floor-of-
    # division land strictly inside an integer interval, so it is robust to rounding.
    col = (lax.broadcasted_iota(jnp.int32, (1, tn), 1) + j * tn).astype(jnp.float32)
    colh = col + 0.5
    p = jnp.floor(colh / (w_out * s))                # output row:     col // (W*s)
    q = colh - p * (w_out * s)                       # output col + 0.5
    src = (jnp.floor((p + 0.5) / s) * w_out          # (p // s) * W
           + jnp.floor(q / s))                       # + (col % (W*s)) // s
    src_i = src.astype(jnp.int32)                    # (1, TN) source token index < 441
    row = lax.broadcasted_iota(jnp.int32, (l, tn), 0)
    gt = jnp.where(row == src_i, 1.0, 0.0).astype(z_ref.dtype)   # (L, TN) one-hot, bf16
    # (columns past Lout in the last partial tile get src >= L -> all-zero columns; the
    #  out-of-bounds part of the final output block is discarded on writeback)

    # --- nearest upsample as a gather matmul on the MXU -----------------------------
    up = jnp.dot(z_ref[...], gt, preferred_element_type=jnp.float32)
    o_ref[0] = up.astype(o_ref.dtype)


@functools.partial(jax.jit,
                   static_argnames=("up_stride", "eps", "tile_n", "out_dtype"))
def global_up_forward(x, conv_w, conv_b, bn_gamma, bn_beta, bn_mean, bn_var,
                      *, up_stride, eps=1e-6, tile_n=512, out_dtype=jnp.float32):
    """x: (B, C_in, 441). Returns (B, C_out, 21*up_stride, 21*up_stride)."""
    B, Cin, L = x.shape
    assert L == H * W, "GlobalUp hard-codes a 21x21 token grid (len == 441)"
    s = int(up_stride)
    Cout = conv_w.shape[0]
    Lout = L * s * s

    # Fold conv bias + BatchNorm(eval) into a per-output-channel affine; the scale is
    # folded straight into the conv weight (before the bf16 cast), only shift remains.
    scale = bn_gamma.astype(jnp.float32) / jnp.sqrt(bn_var.astype(jnp.float32) + eps)
    shift = (bn_beta.astype(jnp.float32)
             + (conv_b.astype(jnp.float32) - bn_mean.astype(jnp.float32)) * scale)
    w_bf = (conv_w.reshape(Cout, Cin).astype(jnp.float32)
            * scale[:, None]).astype(jnp.bfloat16)
    shift = shift.reshape(Cout, 1)
    x_bf = x.astype(jnp.bfloat16)

    # Output lane tiling: TN is a multiple of 128 (or the full Lout when it fits).
    tn = int(tile_n)
    assert tn % 128 == 0, "tile_n must be a multiple of 128"
    if Lout <= tn:
        tn = Lout                      # single full-width tile (always a legal block)
    nj = pl.cdiv(Lout, tn)

    kernel = functools.partial(_global_up_kernel, w_out=W, s=s, tn=tn)

    flops = 2 * B * Cout * Cin * L + 2 * B * Cout * L * (nj * tn)
    bytes_accessed = (B * Cin * L * 2 + Cout * Cin * 2 + Cout * 4
                      + B * Cout * Lout * jnp.dtype(out_dtype).itemsize)

    out = pl.pallas_call(
        kernel,
        out_shape=jax.ShapeDtypeStruct((B, Cout, Lout), out_dtype),
        grid_spec=pltpu.PrefetchScalarGridSpec(
            num_scalar_prefetch=0,
            grid=(B, nj),
            in_specs=[
                pl.BlockSpec((1, Cin, L), lambda b, j: (b, 0, 0)),   # tokens of image b
                pl.BlockSpec((Cout, Cin), lambda b, j: (0, 0)),      # folded conv weight
                pl.BlockSpec((Cout, 1), lambda b, j: (0, 0)),        # folded BN shift
            ],
            out_specs=pl.BlockSpec((1, Cout, tn), lambda b, j: (b, 0, j)),
            scratch_shapes=[pltpu.VMEM((Cout, L), jnp.bfloat16)],    # post-ReLU activations
        ),
        compiler_params=pltpu.CompilerParams(
            dimension_semantics=("parallel", "arbitrary"),
            vmem_limit_bytes=32 * 1024 * 1024,
        ),
        cost_estimate=pl.CostEstimate(flops=flops, transcendentals=0,
                                      bytes_accessed=bytes_accessed),
    )(x_bf, w_bf, shift)

    # (B, Cout, Lout) -> (B, Cout, 21*s, 21*s) is a free, layout-preserving reshape.
    return out.reshape(B, Cout, H * s, W * s)


def reference_global_up(x, conv_w, conv_b, bn_gamma, bn_beta, bn_mean, bn_var,
                        up_stride, eps=1e-6):
    """Pure-JAX f32 reference matching the PyTorch module (BN in eval mode)."""
    B, Cin, L = x.shape
    Cout = conv_w.shape[0]
    w = conv_w.reshape(Cout, Cin)
    z = jnp.einsum("oc,bcl->bol", w, x) + conv_b[None, :, None]
    z = ((z - bn_mean[None, :, None]) / jnp.sqrt(bn_var[None, :, None] + eps)
         * bn_gamma[None, :, None] + bn_beta[None, :, None])
    z = jnp.maximum(z, 0.0)
    z = z.reshape(B, Cout, H, W)
    z = jnp.repeat(jnp.repeat(z, up_stride, axis=2), up_stride, axis=3)  # nearest
    return z


if __name__ == "__main__":
    def _run(B, Cin, Cout, up_stride, key):
        L = H * W
        kx, kw, kb, kg, kbe, km, kv = jax.random.split(key, 7)
        x = jax.random.normal(kx, (B, Cin, L), jnp.float32)
        conv_w = jax.random.normal(kw, (Cout, Cin, 1, 1), jnp.float32) * 0.05
        conv_b = jax.random.normal(kb, (Cout,), jnp.float32) * 0.05
        bn_gamma = 1.0 + 0.1 * jax.random.normal(kg, (Cout,), jnp.float32)
        bn_beta = 0.05 * jax.random.normal(kbe, (Cout,), jnp.float32)
        bn_mean = 0.02 * jax.random.normal(km, (Cout,), jnp.float32)
        bn_var = 1.0 + 0.1 * jax.random.uniform(kv, (Cout,), jnp.float32)

        out = global_up_forward(x, conv_w, conv_b, bn_gamma, bn_beta, bn_mean, bn_var,
                                up_stride=up_stride)
        out = jax.block_until_ready(out)

        ref = reference_global_up(x, conv_w, conv_b, bn_gamma, bn_beta, bn_mean, bn_var,
                                  up_stride)
        assert out.shape == (B, Cout, H * up_stride, W * up_stride)
        # bf16 matmul operands inside the kernel -> bf16-level tolerance vs f32 reference.
        err = float(jnp.max(jnp.abs(out - ref)))
        assert jnp.allclose(out, ref, atol=5e-3, rtol=5e-2), (
            "mismatch vs reference, max abs err = %e" % err)

    key = jax.random.PRNGKey(0)
    k1, k2 = jax.random.split(key)
    _run(B=2, Cin=32, Cout=128, up_stride=2, key=k1)   # Lout=1764, 4 lane tiles of 512
    _run(B=2, Cin=16, Cout=64, up_stride=3, key=k2)    # Lout=3969, 8 lane tiles of 512

    print("KERNEL_OK")
</pallas_src>

<mosaic_0001>
module attributes {stable_mosaic.version = 11 : i64} {
  func.func @_global_up_kernel(%arg0: i32, %arg1: i32, %arg2: memref<1x32x441xbf16, #tpu.memory_space<vmem>>, %arg3: memref<128x32xbf16, #tpu.memory_space<vmem>>, %arg4: memref<128x1xf32, #tpu.memory_space<vmem>>, %arg5: memref<1x128x512xf32, #tpu.memory_space<vmem>>, %arg6: memref<128x441xbf16, #tpu.memory_space<vmem>>) attributes {dimension_semantics = [#tpu.dimension_semantics<parallel>, #tpu.dimension_semantics<arbitrary>], iteration_bounds = array<i64: 2, 4>, scalar_prefetch = 0 : i64, scratch_operands = 1 : i64, tpu.core_type = #tpu.core_type<tc>, window_params = [{transform_indices = @transform_0, window_bounds = array<i64: 1, 32, 441>}, {pipeline_mode = #tpu.pipeline_mode<synchronous>, transform_indices = @transform_1, window_bounds = array<i64: 128, 32>}, {pipeline_mode = #tpu.pipeline_mode<synchronous>, transform_indices = @transform_2, window_bounds = array<i64: 128, 1>}, {transform_indices = @transform_3, window_bounds = array<i64: 1, 128, 512>}]} {
    %c0_i32 = arith.constant 0 : i32
    %0 = arith.cmpi eq, %arg1, %c0_i32 : i32
    %1 = arith.extui %0 : i1 to i32
    %c0_i32_0 = arith.constant 0 : i32
    %2 = arith.cmpi ne, %1, %c0_i32_0 : i32
    scf.if %2 {
      %c0_14 = arith.constant 0 : index
      %c0_15 = arith.constant 0 : index
      %40 = vector.load %arg3[%c0_14, %c0_15] : memref<128x32xbf16, #tpu.memory_space<vmem>>, vector<128x32xbf16>
      %c0_16 = arith.constant 0 : index
      %c0_17 = arith.constant 0 : index
      %c0_18 = arith.constant 0 : index
      %41 = vector.load %arg2[%c0_16, %c0_17, %c0_18] : memref<1x32x441xbf16, #tpu.memory_space<vmem>>, vector<1x32x441xbf16>
      %42 = vector.shape_cast %41 : vector<1x32x441xbf16> to vector<32x441xbf16>
      %cst_19 = arith.constant dense<0.000000e+00> : vector<128x441xf32>
      %43 = tpu.matmul %40, %42, %cst_19 {dimension_numbers = #tpu.dot_dimension_numbers<[1], [0], [0], [1], [0, 0, 1, 1], [], []>} : vector<128x32xbf16>, vector<32x441xbf16>, vector<128x441xf32> -> vector<128x441xf32>
      %c0_20 = arith.constant 0 : index
      %c0_21 = arith.constant 0 : index
      %44 = vector.load %arg4[%c0_20, %c0_21] : memref<128x1xf32, #tpu.memory_space<vmem>>, vector<128x1xf32>
      %45 = vector.broadcast %44 : vector<128x1xf32> to vector<128x441xf32>
      %46 = arith.addf %43, %45 : vector<128x441xf32>
      %cst_22 = arith.constant 0.000000e+00 : f32
      %47 = vector.broadcast %cst_22 : f32 to vector<128x441xf32>
      %48 = arith.maximumf %46, %47 : vector<128x441xf32>
      %49 = arith.truncf %48 : vector<128x441xf32> to vector<128x441xbf16>
      %c0_23 = arith.constant 0 : index
      %c0_24 = arith.constant 0 : index
      %50 = vector.load %arg6[%c0_23, %c0_24] : memref<128x441xbf16, #tpu.memory_space<vmem>>, vector<128x441xbf16>
      tpu.vector_store %arg6[%c0_23, %c0_24], %49 {strides = array<i32>} : memref<128x441xbf16, #tpu.memory_space<vmem>>, vector<128x441xbf16>,
    } else {
    }
    %3 = tpu.iota {dimensions = array<i32: 1>} : vector<1x512xi32>
    %c512_i32 = arith.constant 512 : i32
    %4 = arith.muli %arg1, %c512_i32 : i32
    %5 = vector.broadcast %4 : i32 to vector<1x512xi32>
    %6 = arith.addi %3, %5 : vector<1x512xi32>
    %7 = arith.sitofp %6 : vector<1x512xi32> to vector<1x512xf32>
    %cst = arith.constant 5.000000e-01 : f32
    %8 = vector.broadcast %cst : f32 to vector<1x512xf32>
    %9 = arith.addf %7, %8 : vector<1x512xf32>
    %cst_1 = arith.constant 4.200000e+01 : f32
    %10 = vector.broadcast %cst_1 : f32 to vector<1x512xf32>
    %11 = arith.divf %9, %10 : vector<1x512xf32>
    %12 = math.floor %11 : vector<1x512xf32>
    %cst_2 = arith.constant 4.200000e+01 : f32
    %13 = vector.broadcast %cst_2 : f32 to vector<1x512xf32>
    %14 = arith.mulf %12, %13 : vector<1x512xf32>
    %15 = arith.subf %9, %14 : vector<1x512xf32>
    %cst_3 = arith.constant 5.000000e-01 : f32
    %16 = vector.broadcast %cst_3 : f32 to vector<1x512xf32>
    %17 = arith.addf %12, %16 : vector<1x512xf32>
    %cst_4 = arith.constant 2.000000e+00 : f32
    %18 = vector.broadcast %cst_4 : f32 to vector<1x512xf32>
    %19 = arith.divf %17, %18 : vector<1x512xf32>
    %20 = math.floor %19 : vector<1x512xf32>
    %cst_5 = arith.constant 2.100000e+01 : f32
    %21 = vector.broadcast %cst_5 : f32 to vector<1x512xf32>
    %22 = arith.mulf %20, %21 : vector<1x512xf32>
    %cst_6 = arith.constant 2.000000e+00 : f32
    %23 = vector.broadcast %cst_6 : f32 to vector<1x512xf32>
    %24 = arith.divf %15, %23 : vector<1x512xf32>
    %25 = math.floor %24 : vector<1x512xf32>
    %26 = arith.addf %22, %25 : vector<1x512xf32>
    %27 = arith.fptosi %26 : vector<1x512xf32> to vector<1x512xi32>
    %28 = tpu.iota {dimensions = array<i32: 0>} : vector<441x512xi32>
    %29 = vector.broadcast %27 : vector<1x512xi32> to vector<441x512xi32>
    %30 = arith.cmpi eq, %28, %29 : vector<441x512xi32>
    %cst_7 = arith.constant 1.000000e+00 : f32
    %cst_8 = arith.constant 0.000000e+00 : f32
    %31 = vector.broadcast %cst_7 : f32 to vector<441x512xf32>
    %32 = vector.broadcast %cst_8 : f32 to vector<441x512xf32>
    %33 = arith.select %30, %31, %32 : vector<441x512xi1>, vector<441x512xf32>
    %34 = arith.truncf %33 : vector<441x512xf32> to vector<441x512xbf16>
    %c0 = arith.constant 0 : index
    %c0_9 = arith.constant 0 : index
    %35 = vector.load %arg6[%c0, %c0_9] : memref<128x441xbf16, #tpu.memory_space<vmem>>, vector<128x441xbf16>
    %cst_10 = arith.constant dense<0.000000e+00> : vector<128x512xf32>
    %36 = tpu.matmul %35, %34, %cst_10 {dimension_numbers = #tpu.dot_dimension_numbers<[1], [0], [0], [1], [0, 0, 1, 1], [], []>} : vector<128x441xbf16>, vector<441x512xbf16>, vector<128x512xf32> -> vector<128x512xf32>
    %c0_11 = arith.constant 0 : index
    %c0_12 = arith.constant 0 : index
    %c0_13 = arith.constant 0 : index
    %37 = vector.load %arg5[%c0_11, %c0_12, %c0_13] : memref<1x128x512xf32, #tpu.memory_space<vmem>>, vector<1x128x512xf32>
    %38 = vector.shape_cast %37 : vector<1x128x512xf32> to vector<128x512xf32>
    %39 = vector.shape_cast %36 : vector<128x512xf32> to vector<1x128x512xf32>
    tpu.vector_store %arg5[%c0_11, %c0_12, %c0_13], %39 {strides = array<i32>} : memref<1x128x512xf32, #tpu.memory_space<vmem>>, vector<1x128x512xf32>,
    return
  }
  func.func @transform_0(%arg0: i32, %arg1: i32) -> (i32, i32, i32) {
    %c0_i32 = arith.constant 0 : i32
    %c0_i32_0 = arith.constant 0 : i32
    %c0_i32_1 = arith.constant 0 : i32
    return %arg0, %c0_i32, %c0_i32_0 : i32, i32, i32
  }
  func.func @transform_1(%arg0: i32, %arg1: i32) -> (i32, i32) {
    %c0_i32 = arith.constant 0 : i32
    %c0_i32_0 = arith.constant 0 : i32
    %c0_i32_1 = arith.constant 0 : i32
    return %c0_i32, %c0_i32_0 : i32, i32
  }
  func.func @transform_2(%arg0: i32, %arg1: i32) -> (i32, i32) {
    %c0_i32 = arith.constant 0 : i32
    %c0_i32_0 = arith.constant 0 : i32
    %c0_i32_1 = arith.constant 0 : i32
    return %c0_i32, %c0_i32_0 : i32, i32
  }
  func.func @transform_3(%arg0: i32, %arg1: i32) -> (i32, i32, i32) {
    %c0_i32 = arith.constant 0 : i32
    %c0_i32_0 = arith.constant 0 : i32
    return %arg0, %c0_i32, %arg1 : i32, i32, i32
  }
}

</mosaic_0001>

<bundles_post_ra>
// kernel: global_up_forward.1
= control target key start
LH: loop header
LB: loop body
LE: loop exit
PB: predicated region body
PF: predicated region fallthrough
CT: control target
= control target key end

     0   :  { %s4061_s12 = smov 0   ;;  %s4063_s13 = smov 0   ;;  %s6121_s0 = inlined_call_operand.vmem [shape: bf16[2,32,441], index: 0, kind: input, shape index: {}]   ;;  %s6122_s1 = inlined_call_operand.vmem [shape: bf16[128,32], index: 1, kind: input, shape index: {}]   ;;  %s6123_s2 = inlined_call_operand.vmem [shape: f32[128,1], index: 2, kind: input, shape index: {}]   ;;  %s6124_s3 = inlined_call_operand.vmem [shape: f32[2,128,1764], index: 3, kind: output, shape index: {}]  }
   0x1   :  { %s4065_s14 = smov 0   ;;  %s4067_s15 = smov 0  }
   0x2   :  { %s4069_s16 = smov 0   ;;  %s4071_s17 = smov 0  }
   0x3   :  { %s4073_s18 = smov 0  }
   0x4 LB: > { %s22_s19 = sadd.s32 1, %s3959_s16  ;;  %s25_s20 = sadd.s32 1, %s3963_s17  ;;  %s3967_s18 = sphi %s4073_s18, %s13_s18   ;;  %s3963_s17 = sphi %s4071_s17, %s6459_s17   ;;  %s3959_s16 = sphi %s4069_s16, %s6458_s16   ;;  %s3955_s15 = sphi %s4067_s15, %s6457_s15   ;;  %s3951_s14 = sphi %s4065_s14, %s6456_s14   ;;  %s3947_s13 = sphi %s4063_s13, %s6455_s13   ;;  %s3943_s12 = sphi %s4061_s12, %s6454_s12  }
   0x5   : > { %p23_p0 = scmp.ge.s32.totalorder %s22_s19, 4  ;;  %s3063_s21 = sadd.s32 4294967295, %s3967_s18  }
   0x6   : > { %p112_p1 = scmp.ne.s32.totalorder %s3947_s13, %s3943_s12  ;;  %p113_p2 = scmp.eq.s32.totalorder %s3063_s21, 7 }
   0x7   : > { %s6461_s19 = smov (%p23_p0, %s22_s19), 0  ;;  %s6463_s20 = smov (!%p23_p0, %s25_s20), %s3963_s17 }
   0x8   : > { %s98_s22 = ssub.s32 %s3959_s16, %s6461_s19  ;;  %p27_p3 = scmp.ge.s32.totalorder %s6463_s20, 2 }
   0x9   : > { %p3067_p4 = scmp.ge.s32.totalorder %s3967_s18, 1  ;;  %p4107_p5 = por %p113_p2, %p112_p1 }
   0xa   : > { %p151_p6 = scmp.lt.s32.totalorder %s3967_s18, 9  ;;  %s6465_s20 = smov (%p27_p3, %s6463_s20), 0 }
   0xb   : > { %s97_s24 = ssub.s32 %s3963_s17, %s6465_s20  ;;  %s102_s26 = sadd.s32 1, %s3947_s13 }
   0xc   : > { %p152_p7 = pnand %p3067_p4, %p151_p6  ;;  %s99_s25 = sor.u32 %s98_s22, %s97_s24 }
   0xd   : > { %p100_p8 = scmp.eq.s32.totalorder %s99_s25, 0 }
   0xe   : > { %155 = sbr.rel (%p152_p7) target bundleno = 1204 (0x4b4), region = 32 }
   0xf   : > { %s4118_s27 = scalar_select %p100_p8, %s3947_s13, %s102_s26  }
  0x13   : > { %s171_s28 = sand.u32 1, %s3943_s12   ;;  %p174_p9 = scmp.lt.s32.totalorder %s3955_s15, 1 }
  0x14   : > { %s3068_s29 = sshll.u32 %s171_s28, 9  ;;  %p3071_p10 = scmp.ne.s32.totalorder %s3951_s14, 0 }
  0x15   : > { %s175_s30 = scalar_select %p174_p9, %s3955_s15, 1 }
  0x16   : > { %s4126_s8 = scalar_lea.vmem [#allocation3], %s3068_s29   ;;  %188 = sbr.rel (%p3071_p10) target bundleno = 298 (0x12a), region = 36 }
  0x17   : > { %s3576_s4 = sshll.u32 %s175_s30, 6 }
  0x18   : > { %s178_s7 = scalar_lea.vmem %s6121_s0, %s3576_s4 }
  0x1b   : > { %v3122_v0 = vld [vmem:[%s178_s7 + $0x20] sm:$0xf]  ;;  %v3591_v1 = vld [vmem:[%s178_s7 + $0x2c] sm:$0xf0]  ;;  %v3589_v2 = vld [vmem:[%s178_s7 + $0x24] sm:$0xf] }
  0x1c   : > { %v3123_v3 = vor.u32 %v3591_v1, %v3122_v0  ;;  %v3124_v4 = vld [vmem:[%s178_s7 + $0x30] sm:$0xf0]  ;;  %v3130_v5 = vld [vmem:[%s178_s7 + $0x28] sm:$0xf]  ;;  %v3592_v6 = vld [vmem:[%s178_s7 + $0x34] sm:$0xf0] }
  0x1d   : > { %v3127_v7 = vor.u32 %v3589_v2, %v3124_v4  ;;  %v3131_v8 = vor.u32 %v3592_v6, %v3130_v5  ;;  %v3590_v9 = vld [vmem:[%s178_s7 + $0x2c] sm:$0xf]  ;;  %v3132_v10 = vld [vmem:[%s178_s7 + $0x38] sm:$0xf0]  ;;  %v3106_v11 = vld [vmem:[%s178_s7] sm:$0xf] }
  0x1e   : > { %420 = vmatpush.bf16.msra.mxu0 %v3123_v3  ;;  %v3135_v12 = vor.u32 %v3590_v9, %v3132_v10  ;;  %v3587_v13 = vld [vmem:[%s178_s7 + $0xc] sm:$0xf0]  ;;  %v3585_v14 = vld [vmem:[%s178_s7 + $0x4] sm:$0xf]  ;;  %v3108_v15 = vld [vmem:[%s178_s7 + $0x10] sm:$0xf0] }
  0x1f   : > { %469 = vmatpush.bf16.msra.mxu1 %v3127_v7  ;;  %518 = vmatpush.bf16.msra.mxu2 %v3131_v8  ;;  %v3107_v16 = vor.u32 %v3587_v13, %v3106_v11  ;;  %v3111_v17 = vor.u32 %v3585_v14, %v3108_v15  ;;  %v3114_v18 = vld [vmem:[%s178_s7 + $0x8] sm:$0xf]  ;;  %v3588_v19 = vld [vmem:[%s178_s7 + $0x14] sm:$0xf0]  ;;  %v3586_v20 = vld [vmem:[%s178_s7 + $0xc] sm:$0xf] }
  0x20   : > { %567 = vmatpush.bf16.msra.mxu3 %v3135_v12  ;;  %v3115_v21 = vor.u32 %v3588_v19, %v3114_v18  ;;  %v3116_v22 = vld [vmem:[%s178_s7 + $0x18] sm:$0xf0]  ;;  %v213_v23 = vld [vmem:[%s6123_s2] sm:$0xff]  ;;  %v4033_v26 = vmov 0   ;;  %v215_v27 = vld [vmem:[%s6123_s2 + $0x10] sm:$0xff]  ;;  %vm389_vm0 = vcmask 261120  }
  0x21   : > { %v3119_v24 = vor.u32 %v3586_v20, %v3116_v22  ;;  %v3577_v25 = vld [vmem:[%s6122_s1] sm:$0xff]  ;;  %3842 = vset.pattern.permute.xlu0 %v4033_v26  ;;  %3843 = vset.pattern.permute.xlu1 %v4033_v26  ;;  %v214_v28 = vld [vmem:[%s6123_s2 + $0x8] sm:$0xff]  ;;  %v216_v29 = vld [vmem:[%s6123_s2 + $0x18] sm:$0xff]  ;;  %vm707_vm1 = vcmask 1043456   ;;  %vm708_vm2 = vcmask 465924  }
  0x22   : > { %421 = vmatpush.bf16.msra.mxu0 %v3107_v16  ;;  %231 = vperm.xlu0 %3842, %v213_v23   ;;  %v3578_v30 = vld [vmem:[%s6122_s1 + $0x8] sm:$0xff]  ;;  %v3579_v31 = vld [vmem:[%s6122_s1 + $0x10] sm:$0xff]  ;;  %v217_v33 = vld [vmem:[%s6123_s2 + $0x20] sm:$0xff] }
  0x23   : > { %470 = vmatpush.bf16.msra.mxu1 %v3111_v17  ;;  %519 = vmatpush.bf16.msra.mxu2 %v3115_v21  ;;  %v219_v32 = vld [vmem:[%s6123_s2 + $0x30] sm:$0xff]  ;;  %v220_v34 = vld [vmem:[%s6123_s2 + $0x38] sm:$0xff]  ;;  %v218_v35 = vld [vmem:[%s6123_s2 + $0x28] sm:$0xff] }
  0x24   : > { %568 = vmatpush.bf16.msra.mxu3 %v3119_v24  ;;  %241 = vperm.xlu1 %3843, %v215_v27   ;;  %v3580_v36 = vld [vmem:[%s6122_s1 + $0x18] sm:$0xff]  ;;  %v222_v37 = vld [vmem:[%s6123_s2 + $0x48] sm:$0xff]  ;;  %v225_v38 = vld [vmem:[%s6123_s2 + $0x60] sm:$0xff] }
  0x25   : > { %3136 = vmatmul.msk.bf16.vlgmr.msra.gmra.mxu0 %vm389_vm0, %v3577_v25  ;;  %3844 = vset.pattern.permute.xlu2 %v4033_v26  ;;  %v3581_v39 = vld [vmem:[%s6122_s1 + $0x20] sm:$0xff]  ;;  %v223_v40 = vld [vmem:[%s6123_s2 + $0x50] sm:$0xff]  ;;  %v228_v41 = vld [vmem:[%s6123_s2 + $0x78] sm:$0xff] }
  0x26   : > { %3144 = vmatmul.msk.bf16.vlgmr.msra.gmra.mxu1 %vm389_vm0, %v3577_v25  ;;  %3152 = vmatmul.msk.bf16.vlgmr.msra.gmra.mxu2 %vm389_vm0, %v3577_v25  ;;  %v221_v42 = vld [vmem:[%s6123_s2 + $0x40] sm:$0xff]  ;;  %v226_v43 = vld [vmem:[%s6123_s2 + $0x68] sm:$0xff]  ;;  %v224_v45 = vld [vmem:[%s6123_s2 + $0x58] sm:$0xff] }
  0x27   : > { %3160 = vmatmul.msk.bf16.vlgmr.msra.gmra.mxu3 %vm389_vm0, %v3577_v25  ;;  %251 = vperm.xlu2 %3844, %v217_v33   ;;  %v3582_v44 = vld [vmem:[%s6122_s1 + $0x28] sm:$0xff]  ;;  %v3583_v46 = vld [vmem:[%s6122_s1 + $0x30] sm:$0xff]  ;;  %v3584_v48 = vld [vmem:[%s6122_s1 + $0x38] sm:$0xff] }
  0x28   : > { %v227_v47 = vld [vmem:[%s6123_s2 + $0x70] sm:$0xff]  ;;  %vm4233_vm3 = vmor %vm708_vm2, %vm707_vm1 }
  0x2a   : > { %236 = vperm.xlu0 %3842, %v214_v28  }
  0x2c   : > { %246 = vperm.xlu1 %3843, %v216_v29  }
  0x2f   : > { %256 = vperm.xlu2 %3844, %v218_v35  }
  0x32   : > { %261 = vperm.xlu0 %3842, %v219_v32  }
  0x34   : > { %266 = vperm.xlu1 %3843, %v220_v34  }
  0x35   : > { %3137 = vmatmul.msk.bf16.gmra.mxu0 %vm389_vm0, %v3578_v30 }
  0x36   : > { %3145 = vmatmul.msk.bf16.gmra.mxu1 %vm389_vm0, %v3578_v30  ;;  %3153 = vmatmul.msk.bf16.gmra.mxu2 %vm389_vm0, %v3578_v30 }
  0x37   : > { %3161 = vmatmul.msk.bf16.gmra.mxu3 %vm389_vm0, %v3578_v30  ;;  %271 = vperm.xlu2 %3844, %v221_v42  }
  0x3a   : > { %276 = vperm.xlu0 %3842, %v222_v37  }
  0x3c   : > { %281 = vperm.xlu1 %3843, %v223_v40  }
  0x3f   : > { %286 = vperm.xlu2 %3844, %v224_v45  }
  0x42   : > { %291 = vperm.xlu0 %3842, %v225_v38  }
  0x44   : > { %296 = vperm.xlu1 %3843, %v226_v43  }
  0x45   : > { %3138 = vmatmul.msk.bf16.gmra.mxu0 %vm389_vm0, %v3579_v31 }
  0x46   : > { %3146 = vmatmul.msk.bf16.gmra.mxu1 %vm389_vm0, %v3579_v31  ;;  %3154 = vmatmul.msk.bf16.gmra.mxu2 %vm389_vm0, %v3579_v31 }
  0x47   : > { %3162 = vmatmul.msk.bf16.gmra.mxu3 %vm389_vm0, %v3579_v31  ;;  %301 = vperm.xlu2 %3844, %v227_v47  }
  0x4a   : > { %306 = vperm.xlu0 %3842, %v228_v41  }
  0x55   : > { %3139 = vmatmul.msk.bf16.gmra.mxu0 %vm389_vm0, %v3580_v36 }
  0x56   : > { %3147 = vmatmul.msk.bf16.gmra.mxu1 %vm389_vm0, %v3580_v36  ;;  %3155 = vmatmul.msk.bf16.gmra.mxu2 %vm389_vm0, %v3580_v36 }
  0x57   : > { %3163 = vmatmul.msk.bf16.gmra.mxu3 %vm389_vm0, %v3580_v36 }
  0x65   : > { %3140 = vmatmul.msk.bf16.gmra.mxu0 %vm389_vm0, %v3581_v39 }
  0x66   : > { %3148 = vmatmul.msk.bf16.gmra.mxu1 %vm389_vm0, %v3581_v39  ;;  %3156 = vmatmul.msk.bf16.gmra.mxu2 %vm389_vm0, %v3581_v39 }
  0x67   : > { %3164 = vmatmul.msk.bf16.gmra.mxu3 %vm389_vm0, %v3581_v39 }
  0x75   : > { %3141 = vmatmul.msk.bf16.gmra.mxu0 %vm389_vm0, %v3582_v44 }
  0x76   : > { %3149 = vmatmul.msk.bf16.gmra.mxu1 %vm389_vm0, %v3582_v44  ;;  %3157 = vmatmul.msk.bf16.gmra.mxu2 %vm389_vm0, %v3582_v44 }
  0x77   : > { %3165 = vmatmul.msk.bf16.gmra.mxu3 %vm389_vm0, %v3582_v44 }
  0x81   : > { %v252_v37 = vpop.permute.xlu2 %251 }
  0x85   : > { %3142 = vmatmul.msk.bf16.gmra.mxu0 %vm389_vm0, %v3583_v46 }
  0x86   : > { %3150 = vmatmul.msk.bf16.gmra.mxu1 %vm389_vm0, %v3583_v46  ;;  %3158 = vmatmul.msk.bf16.gmra.mxu2 %vm389_vm0, %v3583_v46 }
  0x87   : > { %3166 = vmatmul.msk.bf16.gmra.mxu3 %vm389_vm0, %v3583_v46 }
  0x94   : > { %v232_v49 = vpop.permute.xlu0 %231 }
  0x95   : > { %3143 = vmatmul.msk.bf16.gmra.mxu0 %vm389_vm0, %v3584_v48 }
  0x96   : > { %3151 = vmatmul.msk.bf16.gmra.mxu1 %vm389_vm0, %v3584_v48  ;;  %3159 = vmatmul.msk.bf16.gmra.mxu2 %vm389_vm0, %v3584_v48  ;;  %v242_v7 = vpop.permute.xlu1 %241 }
  0x97   : > { %3167 = vmatmul.msk.bf16.gmra.mxu3 %vm389_vm0, %v3584_v48 }
  0x9c   : > { %v237_v57 = vpop.permute.xlu0 %236 }
  0x9e   : > { %v247_v24 = vpop.permute.xlu1 %246 }
  0xa2   : > { %v423_v50 = vpop.f32.mrf.mxu0 }
  0xa3   : > { %v424_v51 = vadd.f32 %v423_v50, %v232_v49  ;;  %v472_v52 = vpop.f32.mrf.mxu1 }
  0xa4   : > { %v473_v53 = vadd.f32 %v472_v52, %v232_v49 }
  0xa5   : > { %v610_v54 = vmax.f32 %v424_v51, 0.0 }
  0xa6   : > { %v611_v55 = vmax.f32 %v473_v53, 0.0 }
  0xa8   : > { %v674_v56 = vpack.c.bf16 %v611_v55, %v610_v54  ;;  %v257_v54 = vpop.permute.xlu2 %256 }
  0xa9   : > { %v521_v58 = vpop.f32.mrf.mxu2 }
  0xaa   : > { %706 = vst [vmem:[#allocation2] sm:$0xff] %v674_v56  ;;  %v522_v59 = vadd.f32 %v521_v58, %v232_v49  ;;  %v570_v60 = vpop.f32.mrf.mxu3  ;;  %v425_v61 = vpop.f32.mrf.mxu0 }
  0xab   : > { %v571_v62 = vadd.f32 %v570_v60, %v232_v49  ;;  %v426_v63 = vadd.f32 %v425_v61, %v237_v57  ;;  %v474_v0 = vpop.f32.mrf.mxu1 }
  0xac   : > { %v612_v1 = vmax.f32 %v522_v59, 0.0  ;;  %v475_v2 = vadd.f32 %v474_v0, %v237_v57 }
  0xad   : > { %v613_v3 = vmax.f32 %v571_v62, 0.0  ;;  %v614_v4 = vmax.f32 %v426_v63, 0.0 }
  0xae   : > { %v615_v6 = vmax.f32 %v475_v2, 0.0 }
  0xaf   : > { %v675_v8 = vpack.c.bf16 %v613_v3, %v612_v1 }
  0xb0   : > { %v676_v9 = vpack.c.bf16 %v615_v6, %v614_v4  ;;  %v262_v6 = vpop.permute.xlu0 %261 }
  0xb1   : > { %710 = vst.msk [vmem:[#allocation2 + $0x8] sm:$0xff] %vm4233_vm3, %v675_v8  ;;  %v523_v10 = vpop.f32.mrf.mxu2 }
  0xb2   : > { %711 = vst [vmem:[#allocation2 + $0x10] sm:$0xff] %v676_v9  ;;  %v524_v11 = vadd.f32 %v523_v10, %v237_v57  ;;  %v572_v12 = vpop.f32.mrf.mxu3  ;;  %v428_v13 = vpop.f32.mrf.mxu0 }
  0xb3   : > { %v573_v14 = vadd.f32 %v572_v12, %v237_v57  ;;  %v429_v15 = vadd.f32 %v428_v13, %v242_v7  ;;  %v477_v16 = vpop.f32.mrf.mxu1 }
  0xb4   : > { %v616_v17 = vmax.f32 %v524_v11, 0.0  ;;  %v478_v18 = vadd.f32 %v477_v16, %v242_v7 }
  0xb5   : > { %v617_v19 = vmax.f32 %v573_v14, 0.0  ;;  %v618_v20 = vmax.f32 %v429_v15, 0.0 }
  0xb6   : > { %v619_v21 = vmax.f32 %v478_v18, 0.0 }
  0xb7   : > { %v677_v22 = vpack.c.bf16 %v617_v19, %v616_v17 }
  0xb8   : > { %v678_v23 = vpack.c.bf16 %v619_v21, %v618_v20  ;;  %v267_v21 = vpop.permute.xlu1 %266 }
  0xb9   : > { %712 = vst.msk [vmem:[#allocation2 + $0x18] sm:$0xff] %vm4233_vm3, %v677_v22  ;;  %v526_v25 = vpop.f32.mrf.mxu2 }
  0xba   : > { %713 = vst [vmem:[#allocation2 + $0x20] sm:$0xff] %v678_v23  ;;  %v527_v26 = vadd.f32 %v526_v25, %v242_v7  ;;  %v575_v27 = vpop.f32.mrf.mxu3  ;;  %v430_v28 = vpop.f32.mrf.mxu0 }
  0xbb   : > { %v576_v29 = vadd.f32 %v575_v27, %v242_v7  ;;  %v431_v30 = vadd.f32 %v430_v28, %v247_v24  ;;  %v479_v31 = vpop.f32.mrf.mxu1 }
  0xbc   : > { %v620_v32 = vmax.f32 %v527_v26, 0.0  ;;  %v480_v33 = vadd.f32 %v479_v31, %v247_v24 }
  0xbd   : > { %v621_v34 = vmax.f32 %v576_v29, 0.0  ;;  %v622_v35 = vmax.f32 %v431_v30, 0.0 }
  0xbe   : > { %v623_v36 = vmax.f32 %v480_v33, 0.0 }
  0xbf   : > { %v679_v38 = vpack.c.bf16 %v621_v34, %v620_v32 }
  0xc0   : > { %v680_v39 = vpack.c.bf16 %v623_v36, %v622_v35  ;;  %v272_v36 = vpop.permute.xlu2 %271 }
  0xc1   : > { %714 = vst.msk [vmem:[#allocation2 + $0x28] sm:$0xff] %vm4233_vm3, %v679_v38  ;;  %v528_v40 = vpop.f32.mrf.mxu2 }
  0xc2   : > { %715 = vst [vmem:[#allocation2 + $0x30] sm:$0xff] %v680_v39  ;;  %v529_v41 = vadd.f32 %v528_v40, %v247_v24  ;;  %v577_v42 = vpop.f32.mrf.mxu3  ;;  %v433_v43 = vpop.f32.mrf.mxu0 }
  0xc3   : > { %v578_v44 = vadd.f32 %v577_v42, %v247_v24  ;;  %v434_v45 = vadd.f32 %v433_v43, %v252_v37  ;;  %v482_v46 = vpop.f32.mrf.mxu1 }
  0xc4   : > { %v624_v47 = vmax.f32 %v529_v41, 0.0  ;;  %v483_v48 = vadd.f32 %v482_v46, %v252_v37 }
  0xc5   : > { %v625_v49 = vmax.f32 %v578_v44, 0.0  ;;  %v626_v50 = vmax.f32 %v434_v45, 0.0 }
  0xc6   : > { %v627_v51 = vmax.f32 %v483_v48, 0.0 }
  0xc7   : > { %v681_v52 = vpack.c.bf16 %v625_v49, %v624_v47 }
  0xc8   : > { %v682_v53 = vpack.c.bf16 %v627_v51, %v626_v50  ;;  %v277_v51 = vpop.permute.xlu0 %276 }
  0xc9   : > { %716 = vst.msk [vmem:[#allocation2 + $0x38] sm:$0xff] %vm4233_vm3, %v681_v52  ;;  %v531_v55 = vpop.f32.mrf.mxu2 }
  0xca   : > { %717 = vst [vmem:[#allocation2 + $0x40] sm:$0xff] %v682_v53  ;;  %v532_v56 = vadd.f32 %v531_v55, %v252_v37  ;;  %v580_v57 = vpop.f32.mrf.mxu3  ;;  %v435_v58 = vpop.f32.mrf.mxu0 }
  0xcb   : > { %v581_v59 = vadd.f32 %v580_v57, %v252_v37  ;;  %v436_v60 = vadd.f32 %v435_v58, %v257_v54  ;;  %v484_v61 = vpop.f32.mrf.mxu1 }
  0xcc   : > { %v628_v62 = vmax.f32 %v532_v56, 0.0  ;;  %v485_v63 = vadd.f32 %v484_v61, %v257_v54 }
  0xcd   : > { %v629_v0 = vmax.f32 %v581_v59, 0.0  ;;  %v630_v1 = vmax.f32 %v436_v60, 0.0 }
  0xce   : > { %v631_v2 = vmax.f32 %v485_v63, 0.0 }
  0xcf   : > { %v683_v3 = vpack.c.bf16 %v629_v0, %v628_v62 }
  0xd0   : > { %v684_v4 = vpack.c.bf16 %v631_v2, %v630_v1  ;;  %v282_v2 = vpop.permute.xlu1 %281 }
  0xd1   : > { %718 = vst.msk [vmem:[#allocation2 + $0x48] sm:$0xff] %vm4233_vm3, %v683_v3  ;;  %v533_v7 = vpop.f32.mrf.mxu2 }
  0xd2   : > { %719 = vst [vmem:[#allocation2 + $0x50] sm:$0xff] %v684_v4  ;;  %v534_v8 = vadd.f32 %v533_v7, %v257_v54  ;;  %v582_v9 = vpop.f32.mrf.mxu3  ;;  %v438_v10 = vpop.f32.mrf.mxu0 }
  0xd3   : > { %v583_v11 = vadd.f32 %v582_v9, %v257_v54  ;;  %v487_v12 = vpop.f32.mrf.mxu1  ;;  %v439_v13 = vadd.f32 %v438_v10, %v262_v6 }
  0xd4   : > { %v632_v14 = vmax.f32 %v534_v8, 0.0  ;;  %v488_v15 = vadd.f32 %v487_v12, %v262_v6 }
  0xd5   : > { %v633_v16 = vmax.f32 %v583_v11, 0.0  ;;  %v634_v17 = vmax.f32 %v439_v13, 0.0 }
  0xd6   : > { %v635_v18 = vmax.f32 %v488_v15, 0.0 }
  0xd7   : > { %v685_v19 = vpack.c.bf16 %v633_v16, %v632_v14 }
  0xd8   : > { %v686_v20 = vpack.c.bf16 %v635_v18, %v634_v17  ;;  %v287_v18 = vpop.permute.xlu2 %286 }
  0xd9   : > { %720 = vst.msk [vmem:[#allocation2 + $0x58] sm:$0xff] %vm4233_vm3, %v685_v19  ;;  %v536_v22 = vpop.f32.mrf.mxu2 }
  0xda   : > { %721 = vst [vmem:[#allocation2 + $0x60] sm:$0xff] %v686_v20  ;;  %v537_v23 = vadd.f32 %v536_v22, %v262_v6  ;;  %v585_v24 = vpop.f32.mrf.mxu3  ;;  %v440_v25 = vpop.f32.mrf.mxu0 }
  0xdb   : > { %v586_v26 = vadd.f32 %v585_v24, %v262_v6  ;;  %v441_v27 = vadd.f32 %v440_v25, %v267_v21  ;;  %v489_v28 = vpop.f32.mrf.mxu1 }
  0xdc   : > { %v636_v29 = vmax.f32 %v537_v23, 0.0  ;;  %v490_v30 = vadd.f32 %v489_v28, %v267_v21 }
  0xdd   : > { %v637_v31 = vmax.f32 %v586_v26, 0.0  ;;  %v638_v32 = vmax.f32 %v441_v27, 0.0 }
  0xde   : > { %v639_v33 = vmax.f32 %v490_v30, 0.0 }
  0xdf   : > { %v687_v34 = vpack.c.bf16 %v637_v31, %v636_v29 }
  0xe0   : > { %v688_v35 = vpack.c.bf16 %v639_v33, %v638_v32  ;;  %v292_v33 = vpop.permute.xlu0 %291 }
  0xe1   : > { %722 = vst.msk [vmem:[#allocation2 + $0x68] sm:$0xff] %vm4233_vm3, %v687_v34  ;;  %v538_v37 = vpop.f32.mrf.mxu2 }
  0xe2   : > { %723 = vst [vmem:[#allocation2 + $0x70] sm:$0xff] %v688_v35  ;;  %v539_v38 = vadd.f32 %v538_v37, %v267_v21  ;;  %v587_v39 = vpop.f32.mrf.mxu3  ;;  %v443_v40 = vpop.f32.mrf.mxu0 }
  0xe3   : > { %v588_v41 = vadd.f32 %v587_v39, %v267_v21  ;;  %v492_v42 = vpop.f32.mrf.mxu1  ;;  %v444_v43 = vadd.f32 %v443_v40, %v272_v36 }
  0xe4   : > { %v640_v44 = vmax.f32 %v539_v38, 0.0  ;;  %v493_v45 = vadd.f32 %v492_v42, %v272_v36 }
  0xe5   : > { %v641_v46 = vmax.f32 %v588_v41, 0.0  ;;  %v642_v47 = vmax.f32 %v444_v43, 0.0 }
  0xe6   : > { %v643_v48 = vmax.f32 %v493_v45, 0.0 }
  0xe7   : > { %v689_v49 = vpack.c.bf16 %v641_v46, %v640_v44 }
  0xe8   : > { %v690_v50 = vpack.c.bf16 %v643_v48, %v642_v47  ;;  %v297_v48 = vpop.permute.xlu1 %296 }
  0xe9   : > { %724 = vst.msk [vmem:[#allocation2 + $0x78] sm:$0xff] %vm4233_vm3, %v689_v49  ;;  %v541_v52 = vpop.f32.mrf.mxu2 }
  0xea   : > { %725 = vst [vmem:[#allocation2 + $0x80] sm:$0xff] %v690_v50  ;;  %v542_v53 = vadd.f32 %v541_v52, %v272_v36  ;;  %v590_v54 = vpop.f32.mrf.mxu3  ;;  %v445_v55 = vpop.f32.mrf.mxu0 }
  0xeb   : > { %v591_v56 = vadd.f32 %v590_v54, %v272_v36  ;;  %v446_v57 = vadd.f32 %v445_v55, %v277_v51  ;;  %v494_v58 = vpop.f32.mrf.mxu1 }
  0xec   : > { %v644_v59 = vmax.f32 %v542_v53, 0.0  ;;  %v495_v60 = vadd.f32 %v494_v58, %v277_v51 }
  0xed   : > { %v645_v61 = vmax.f32 %v591_v56, 0.0  ;;  %v646_v62 = vmax.f32 %v446_v57, 0.0 }
  0xee   : > { %v647_v63 = vmax.f32 %v495_v60, 0.0 }
  0xef   : > { %v691_v0 = vpack.c.bf16 %v645_v61, %v644_v59 }
  0xf0   : > { %v692_v1 = vpack.c.bf16 %v647_v63, %v646_v62  ;;  %v302_v63 = vpop.permute.xlu2 %301 }
  0xf1   : > { %726 = vst.msk [vmem:[#allocation2 + $0x88] sm:$0xff] %vm4233_vm3, %v691_v0  ;;  %v543_v3 = vpop.f32.mrf.mxu2 }
  0xf2   : > { %727 = vst [vmem:[#allocation2 + $0x90] sm:$0xff] %v692_v1  ;;  %v544_v4 = vadd.f32 %v543_v3, %v277_v51  ;;  %v592_v6 = vpop.f32.mrf.mxu3  ;;  %v448_v7 = vpop.f32.mrf.mxu0 }
  0xf3   : > { %v593_v8 = vadd.f32 %v592_v6, %v277_v51  ;;  %v497_v9 = vpop.f32.mrf.mxu1  ;;  %v449_v10 = vadd.f32 %v448_v7, %v282_v2 }
  0xf4   : > { %v648_v11 = vmax.f32 %v544_v4, 0.0  ;;  %v498_v12 = vadd.f32 %v497_v9, %v282_v2 }
  0xf5   : > { %v649_v13 = vmax.f32 %v593_v8, 0.0  ;;  %v650_v14 = vmax.f32 %v449_v10, 0.0 }
  0xf6   : > { %v651_v15 = vmax.f32 %v498_v12, 0.0 }
  0xf7   : > { %v693_v16 = vpack.c.bf16 %v649_v13, %v648_v11 }
  0xf8   : > { %v694_v17 = vpack.c.bf16 %v651_v15, %v650_v14  ;;  %v307_v15 = vpop.permute.xlu0 %306 }
  0xf9   : > { %728 = vst.msk [vmem:[#allocation2 + $0x98] sm:$0xff] %vm4233_vm3, %v693_v16  ;;  %v546_v19 = vpop.f32.mrf.mxu2 }
  0xfa   : > { %729 = vst [vmem:[#allocation2 + $0xa0] sm:$0xff] %v694_v17  ;;  %v547_v20 = vadd.f32 %v546_v19, %v282_v2  ;;  %v595_v21 = vpop.f32.mrf.mxu3  ;;  %v450_v22 = vpop.f32.mrf.mxu0 }
  0xfb   : > { %v596_v23 = vadd.f32 %v595_v21, %v282_v2  ;;  %v451_v24 = vadd.f32 %v450_v22, %v287_v18  ;;  %v499_v25 = vpop.f32.mrf.mxu1 }
  0xfc   : > { %v652_v26 = vmax.f32 %v547_v20, 0.0  ;;  %v500_v27 = vadd.f32 %v499_v25, %v287_v18 }
  0xfd   : > { %v653_v28 = vmax.f32 %v596_v23, 0.0  ;;  %v654_v29 = vmax.f32 %v451_v24, 0.0 }
  0xfe   : > { %v655_v30 = vmax.f32 %v500_v27, 0.0 }
  0xff   : > { %v695_v31 = vpack.c.bf16 %v653_v28, %v652_v26 }
 0x100   : > { %v696_v32 = vpack.c.bf16 %v655_v30, %v654_v29 }
 0x101   : > { %730 = vst.msk [vmem:[#allocation2 + $0xa8] sm:$0xff] %vm4233_vm3, %v695_v31  ;;  %v548_v34 = vpop.f32.mrf.mxu2 }
 0x102   : > { %731 = vst [vmem:[#allocation2 + $0xb0] sm:$0xff] %v696_v32  ;;  %v549_v35 = vadd.f32 %v548_v34, %v287_v18  ;;  %v597_v36 = vpop.f32.mrf.mxu3  ;;  %v453_v37 = vpop.f32.mrf.mxu0 }
 0x103   : > { %v598_v38 = vadd.f32 %v597_v36, %v287_v18  ;;  %v454_v39 = vadd.f32 %v453_v37, %v292_v33  ;;  %v502_v40 = vpop.f32.mrf.mxu1 }
 0x104   : > { %v656_v41 = vmax.f32 %v549_v35, 0.0  ;;  %v503_v42 = vadd.f32 %v502_v40, %v292_v33 }
 0x105   : > { %v657_v43 = vmax.f32 %v598_v38, 0.0  ;;  %v658_v44 = vmax.f32 %v454_v39, 0.0 }
 0x106   : > { %v659_v45 = vmax.f32 %v503_v42, 0.0 }
 0x107   : > { %v697_v46 = vpack.c.bf16 %v657_v43, %v656_v41 }
 0x108   : > { %v698_v47 = vpack.c.bf16 %v659_v45, %v658_v44 }
 0x109   : > { %732 = vst.msk [vmem:[#allocation2 + $0xb8] sm:$0xff] %vm4233_vm3, %v697_v46  ;;  %v551_v49 = vpop.f32.mrf.mxu2 }
 0x10a   : > { %733 = vst [vmem:[#allocation2 + $0xc0] sm:$0xff] %v698_v47  ;;  %v552_v50 = vadd.f32 %v551_v49, %v292_v33  ;;  %v600_v51 = vpop.f32.mrf.mxu3  ;;  %v455_v52 = vpop.f32.mrf.mxu0 }
 0x10b   : > { %v601_v53 = vadd.f32 %v600_v51, %v292_v33  ;;  %v456_v54 = vadd.f32 %v455_v52, %v297_v48  ;;  %v504_v55 = vpop.f32.mrf.mxu1 }
 0x10c   : > { %v660_v56 = vmax.f32 %v552_v50, 0.0  ;;  %v505_v57 = vadd.f32 %v504_v55, %v297_v48 }
 0x10d   : > { %v661_v58 = vmax.f32 %v601_v53, 0.0  ;;  %v662_v59 = vmax.f32 %v456_v54, 0.0 }
 0x10e   : > { %v663_v60 = vmax.f32 %v505_v57, 0.0 }
 0x10f   : > { %v699_v61 = vpack.c.bf16 %v661_v58, %v660_v56 }
 0x110   : > { %v700_v62 = vpack.c.bf16 %v663_v60, %v662_v59 }
 0x111   : > { %734 = vst.msk [vmem:[#allocation2 + $0xc8] sm:$0xff] %vm4233_vm3, %v699_v61  ;;  %v553_v0 = vpop.f32.mrf.mxu2 }
 0x112   : > { %735 = vst [vmem:[#allocation2 + $0xd0] sm:$0xff] %v700_v62  ;;  %v554_v1 = vadd.f32 %v553_v0, %v297_v48  ;;  %v602_v2 = vpop.f32.mrf.mxu3  ;;  %v458_v3 = vpop.f32.mrf.mxu0 }
 0x113   : > { %v603_v4 = vadd.f32 %v602_v2, %v297_v48  ;;  %v459_v6 = vadd.f32 %v458_v3, %v302_v63  ;;  %v507_v7 = vpop.f32.mrf.mxu1 }
 0x114   : > { %v664_v8 = vmax.f32 %v554_v1, 0.0  ;;  %v508_v9 = vadd.f32 %v507_v7, %v302_v63 }
 0x115   : > { %v665_v10 = vmax.f32 %v603_v4, 0.0  ;;  %v666_v11 = vmax.f32 %v459_v6, 0.0 }
 0x116   : > { %v667_v12 = vmax.f32 %v508_v9, 0.0 }
 0x117   : > { %v701_v13 = vpack.c.bf16 %v665_v10, %v664_v8 }
 0x118   : > { %v702_v14 = vpack.c.bf16 %v667_v12, %v666_v11 }
 0x119   : > { %736 = vst.msk [vmem:[#allocation2 + $0xd8] sm:$0xff] %vm4233_vm3, %v701_v13  ;;  %v556_v16 = vpop.f32.mrf.mxu2 }
 0x11a   : > { %737 = vst [vmem:[#allocation2 + $0xe0] sm:$0xff] %v702_v14  ;;  %v557_v17 = vadd.f32 %v556_v16, %v302_v63  ;;  %v605_v18 = vpop.f32.mrf.mxu3  ;;  %v460_v19 = vpop.f32.mrf.mxu0 }
 0x11b   : > { %v606_v20 = vadd.f32 %v605_v18, %v302_v63  ;;  %v461_v21 = vadd.f32 %v460_v19, %v307_v15  ;;  %v509_v22 = vpop.f32.mrf.mxu1 }
 0x11c   : > { %v668_v23 = vmax.f32 %v557_v17, 0.0  ;;  %v510_v24 = vadd.f32 %v509_v22, %v307_v15 }
 0x11d   : > { %v669_v25 = vmax.f32 %v606_v20, 0.0  ;;  %v670_v26 = vmax.f32 %v461_v21, 0.0 }
 0x11e   : > { %v671_v27 = vmax.f32 %v510_v24, 0.0 }
 0x11f   : > { %v703_v28 = vpack.c.bf16 %v669_v25, %v668_v23 }
 0x120   : > { %v704_v29 = vpack.c.bf16 %v671_v27, %v670_v26 }
 0x121   : > { %738 = vst.msk [vmem:[#allocation2 + $0xe8] sm:$0xff] %vm4233_vm3, %v703_v28  ;;  %v558_v30 = vpop.f32.mrf.mxu2 }
 0x122   : > { %739 = vst [vmem:[#allocation2 + $0xf0] sm:$0xff] %v704_v29  ;;  %v559_v31 = vadd.f32 %v558_v30, %v307_v15  ;;  %v607_v32 = vpop.f32.mrf.mxu3 }
 0x123   : > { %v608_v33 = vadd.f32 %v607_v32, %v307_v15 }
 0x124   : > { %v672_v34 = vmax.f32 %v559_v31, 0.0 }
 0x125   : > { %v673_v35 = vmax.f32 %v608_v33, 0.0 }
 0x127   : > { %v705_v36 = vpack.c.bf16 %v673_v35, %v672_v34 }
 0x129   : > { %740 = vst.msk [vmem:[#allocation2 + $0xf8] sm:$0xff] %vm4233_vm3, %v705_v36 }
 0x12a PF: > { %v741_v37 = vlaneseq  ;;  %s3168_s9 = sshll.u32 %s3951_s14, 9  ;;  %v4034_v38 = vmov 42.0   ;;  %v4035_v41 = vmov 2.0   ;;  %vm1648_vm6 = vcmask 1043456   ;;  %s3546_s10 = sshll.u32 (%p4107_p5), %s3951_s14, 2 }
 0x12b   : > { %3845 = vrcp.f32 %v4034_v38  ;;  %v4272_v40 = vstv %s3168_s9  ;;  %vm1649_vm7 = vcmask 1044480   ;;  %v4036_v14 = vmov 65535   ;;  %s3649_s11 = smul.u32 (%p4107_p5), 224, %s3955_s15  ;;  %s2520_s12 = ssub.s32 (%p4107_p5), 14, %s3546_s10 }
 0x12c   : > { %v4270_v39 = vand.u32 127, %v741_v37  ;;  %6239 = vst [vmem:[#allocation5_spill] sm:$0xff] %v4272_v40  ;;  %3847 = vrcp.f32 %v4035_v41  ;;  %v4281_v60 = vshrl.u32 %v741_v37, 7  ;;  %v1650_v15 = vsel %vm1648_vm6, 4294967295, %v4036_v14  ;;  %p2521_p11 = scmp.lt.s32.totalorder (%p4107_p5), %s2520_s12, 4 }
 0x12d   : > { %v4327_v23 = vsel %vm1649_vm7, %v1650_v15, 0  ;;  %v6185_v41 = vmov 1.0|1.0   ;;  %s2526_s21 = sadd.s32 (%p4107_p5), %s3649_s11, %s3546_s10 }
 0x12e   : > { %6238 = vst [vmem:[#allocation4_spill] sm:$0xff] %v4270_v39  ;;  %v748_v42 = vadd.s32 %v4272_v40, %v4270_v39  ;;  %v4286_v1 = vadd.s32 112, %v4281_v60  ;;  %v4289_v2 = vadd.s32 120, %v4281_v60  ;;  %v4292_v3 = vadd.s32 240, %v4281_v60  ;;  %s3549_s22 = sshll.u32 (%p4107_p5), %s2526_s21, 3 }
 0x12f   : > { %6242 = vst [vmem:[#allocation8_spill] sm:$0xff] %v4281_v60  ;;  %v4295_v7 = vadd.s32 248, %v4281_v60  ;;  %v4298_v8 = vadd.s32 368, %v4281_v60  ;;  %v4301_v9 = vadd.s32 376, %v4281_v60  ;;  %v4304_v10 = vadd.s32 432, %v4281_v60  ;;  %s5557_s26 = scalar_lea.vmem (%p4107_p5), %s6124_s3, %s3549_s22  }
 0x130   : > { %v752_v5 = vcvt.s32.f32 %v748_v42  ;;  %v4307_v11 = vadd.s32 440, %v4281_v60  ;;  %v4310_v13 = vadd.s32 96, %v4281_v60  ;;  %v4313_v16 = vadd.s32 104, %v4281_v60 }
 0x131   : > { %v3846_v43 = vpop.eup %3845  ;;  %v4316_v17 = vadd.s32 224, %v4281_v60  ;;  %v4319_v18 = vadd.s32 232, %v4281_v60  ;;  %v4322_v19 = vadd.s32 352, %v4281_v60  ;;  %v4325_v22 = vadd.s32 360, %v4281_v60 }
 0x132   : > { %v3848_v44 = vpop.eup %3847  ;;  %v761_v45 = vmul.f32 42.0, %v3846_v43  ;;  %v756_v50 = vadd.f32 0.5, %v752_v5  ;;  %vm765_vm4 = vweird.f32 %v3846_v43  ;;  %v4330_v24 = vadd.s32 80, %v4281_v60 }
 0x133   : > { %v788_v46 = vmul.f32 2.0, %v3848_v44  ;;  %vm792_vm5 = vweird.f32 %v3848_v44  ;;  %v4333_v25 = vadd.s32 88, %v4281_v60  ;;  %v4336_v26 = vadd.s32 208, %v4281_v60 }
 0x134   : > { %v762_v47 = vsub.f32 1.0, %v761_v45  ;;  %v4339_v28 = vadd.s32 216, %v4281_v60  ;;  %v4342_v29 = vadd.s32 336, %v4281_v60  ;;  %v4345_v30 = vadd.s32 344, %v4281_v60 }
 0x135   : > { %v789_v48 = vsub.f32 1.0, %v788_v46  ;;  %v4350_v32 = vadd.s32 416, %v4281_v60  ;;  %v4353_v33 = vadd.s32 424, %v4281_v60  ;;  %v4356_v34 = vadd.s32 64, %v4281_v60 }
 0x136   : > { %v763_v49 = vmul.f32 %v3846_v43, %v762_v47  ;;  %v4359_v35 = vadd.s32 72, %v4281_v60  ;;  %v4362_v36 = vadd.s32 192, %v4281_v60  ;;  %v4365_v37 = vadd.s32 200, %v4281_v60 }
 0x137   : > { %v790_v51 = vmul.f32 %v3848_v44, %v789_v48  ;;  %v4368_v38 = vadd.s32 320, %v4281_v60  ;;  %v4392_v42 = vadd.s32 328, %v4281_v60  ;;  %v743_v47 = vadd.s32 128, %v4270_v39 }
 0x138   : > { %v764_v52 = vadd.f32 %v3846_v43, %v763_v49  ;;  %6243 = vst [vmem:[#allocation9_spill] sm:$0xff] %v4362_v36  ;;  %v4442_v48 = vadd.s32 408, %v4281_v60  ;;  %v4445_v49 = vadd.s32 48, %v4281_v60  ;;  %v4566_v15 = vadd.s32 40, %v4281_v60 }
 0x139   : > { %v791_v54 = vadd.f32 %v3848_v44, %v790_v51  ;;  %6244 = vst [vmem:[#allocation10_spill] sm:$0xff] %v4365_v37  ;;  %v4632_v51 = vadd.s32 16, %v4281_v60  ;;  %v4655_v14 = vadd.s32 144, %v4281_v60 }
 0x13a   : > { %v4276_v53 = vsel %vm765_vm4, %v3846_v43, %v764_v52  ;;  %6245 = vst [vmem:[#allocation11_spill] sm:$0xff] %v4368_v38  ;;  %v4395_v43 = vadd.s32 400, %v4281_v60  ;;  %v4461_v52 = vadd.s32 56, %v4281_v60 }
 0x13b   : > { %6240 = vst [vmem:[#allocation6_spill] sm:$0xff] %v4276_v53  ;;  %v767_v55 = vmul.f32 %v4276_v53, %v756_v50  ;;  %v4279_v57 = vsel %vm792_vm5, %v3848_v44, %v791_v54  ;;  %v6125_v44 = vmov 0.0  }
 0x13c   : > { %6241 = vst [vmem:[#allocation7_spill] sm:$0xff] %v4279_v57 }
 0x13d   : > { %v771_v56 = vfloor.f32 %v767_v55  ;;  %6246 = vst [vmem:[#allocation12_spill] sm:$0xff] %v4392_v42  ;;  %v4479_v55 = vadd.s32 176, %v4281_v60 }
 0x13e   : > { %6247 = vst [vmem:[#allocation13_spill] sm:$0xff] %v4395_v43 }
 0x13f   : > { %v775_v58 = vmul.f32 42.0, %v771_v56  ;;  %v783_v59 = vadd.f32 0.5, %v771_v56  ;;  %6248 = vst [vmem:[#allocation14_spill] sm:$0xff] %v4442_v48  ;;  %v4482_v56 = vadd.s32 184, %v4281_v60 }
 0x140   : > { %6249 = vst [vmem:[#allocation15_spill] sm:$0xff] %v4445_v49 }
 0x141   : > { %v779_v61 = vsub.f32 %v756_v50, %v775_v58  ;;  %v794_v62 = vmul.f32 %v4279_v57, %v783_v59  ;;  %6252 = vst [vmem:[#allocation16_spill] sm:$0xff] %v4461_v52  ;;  %v4499_v59 = vadd.s32 304, %v4281_v60 }
 0x142   : > { %6255 = vst [vmem:[#allocation17_spill] sm:$0xff] %v4479_v55 }
 0x143   : > { %v798_v63 = vfloor.f32 %v794_v62  ;;  %v806_v0 = vmul.f32 %v4279_v57, %v779_v61  ;;  %6256 = vst [vmem:[#allocation18_spill] sm:$0xff] %v4482_v56  ;;  %v749_v61 = vadd.s32 %v4272_v40, %v743_v47  ;;  %v4612_v47 = vadd.s32 296, %v4281_v60  ;;  %v3181_v62 = vld [vmem:[#allocation2 + $0x18] sm:$0xf0] }
 0x144   : > { %6259 = vst [vmem:[#allocation19_spill] sm:$0xff] %v4499_v59 }
 0x145   : > { %v802_v4 = vmul.f32 21.0, %v798_v63  ;;  %v810_v6 = vfloor.f32 %v806_v0  ;;  %v4520_v63 = vadd.s32 312, %v4281_v60  ;;  %v4523_v0 = vadd.s32 384, %v4281_v60  ;;  %6270 = vst [vmem:[#allocation24_spill] sm:$0xff] %v4566_v15 }
 0x146   : > { %6278 = vst [vmem:[#allocation28_spill] sm:$0xff] %v4612_v47 }
 0x147   : > { %v814_v12 = vadd.f32 %v810_v6, %v802_v4  ;;  %6262 = vst [vmem:[#allocation20_spill] sm:$0xff] %v4520_v63  ;;  %v4543_v6 = vadd.s32 392, %v4281_v60  ;;  %v4652_v4 = vadd.s32 24, %v4281_v60 }
 0x148   : > { %6263 = vst [vmem:[#allocation21_spill] sm:$0xff] %v4523_v0 }
 0x149   : > { %vm3629_vm8 = vcmp.lt.s32.totalorder %v814_v12, 0  ;;  %v3630_v20 = vceil.f32 %v814_v12  ;;  %v3631_v21 = vfloor.f32 %v814_v12  ;;  %6266 = vst [vmem:[#allocation22_spill] sm:$0xff] %v4543_v6  ;;  %v4546_v12 = vadd.s32 32, %v4281_v60 }
 0x14a   : > { %6281 = vst [vmem:[#allocation29_spill] sm:$0xff] %v4632_v51 }
 0x14b   : > { %v3632_v27 = vsel %vm3629_vm8, %v3630_v20, %v3631_v21  ;;  %6267 = vst [vmem:[#allocation23_spill] sm:$0xff] %v4546_v12  ;;  %v4569_v20 = vadd.s32 160, %v4281_v60 }
 0x14c   : > { %v4347_v31 = vcvt.f32.s32 %v3632_v27  ;;  %v4589_v27 = vadd.s32 168, %v4281_v60  ;;  %6284 = vst [vmem:[#allocation30_spill] sm:$0xff] %v4652_v4 }
 0x14d   : > { %6271 = vst [vmem:[#allocation25_spill] sm:$0xff] %v4569_v20 }
 0x14e   : > { %vm935_vm9 = vcmp.eq.s32.totalorder %v4286_v1, %v4347_v31  ;;  %vm939_vm10 = vcmp.eq.s32.totalorder %v4289_v2, %v4347_v31  ;;  %vm999_vm11 = vcmp.eq.s32.totalorder %v4292_v3, %v4347_v31  ;;  %vm1003_vm12 = vcmp.eq.s32.totalorder %v4295_v7, %v4347_v31  ;;  %6274 = vst [vmem:[#allocation26_spill] sm:$0xff] %v4589_v27 }
 0x14f   : > { %vm3297_vm13 = vmpackc.low %vm939_vm10, %vm935_vm9  ;;  %vm1063_vm14 = vcmp.eq.s32.totalorder %v4298_v8, %v4347_v31  ;;  %vm1067_vm15 = vcmp.eq.s32.totalorder %v4301_v9, %v4347_v31  ;;  %vm927_vm0 = vcmp.eq.s32.totalorder %v4310_v13, %v4347_v31  ;;  %vm931_vm1 = vcmp.eq.s32.totalorder %v4313_v16, %v4347_v31  ;;  %6285 = vst [vmem:[#allocation31_spill] sm:$0xff] %v4655_v14 }
 0x150   : > { %3298 = vmatpush.bf16.msk.msra.mxu0 %vm3297_vm13, %v6185_v41  ;;  %vm3313_vm2 = vmpackc.low %vm1003_vm12, %vm999_vm11  ;;  %vm991_vm3 = vcmp.eq.s32.totalorder %v4316_v17, %v4347_v31  ;;  %vm995_vm4 = vcmp.eq.s32.totalorder %v4319_v18, %v4347_v31  ;;  %vm1055_vm6 = vcmp.eq.s32.totalorder %v4322_v19, %v4347_v31  ;;  %vm1059_vm7 = vcmp.eq.s32.totalorder %v4325_v22, %v4347_v31 }
 0x151   : > { %3314 = vmatpush.bf16.msk.msra.mxu1 %vm3313_vm2, %v6185_v41  ;;  %vm3329_vm5 = vmpackc.low %vm1067_vm15, %vm1063_vm14  ;;  %vm1095_vm8 = vcmp.eq.s32.totalorder %v4304_v10, %v4347_v31  ;;  %vm1099_vm9 = vcmp.eq.s32.totalorder %v4307_v11, %v4347_v31  ;;  %vm919_vm11 = vcmp.eq.s32.totalorder %v4330_v24, %v4347_v31  ;;  %vm923_vm12 = vcmp.eq.s32.totalorder %v4333_v25, %v4347_v31 }
 0x152   : > { %3330 = vmatpush.bf16.msk.msra.mxu2 %vm3329_vm5, %v6185_v41  ;;  %vm3299_vm10 = vmpackc.low %vm931_vm1, %vm927_vm0  ;;  %v1319_v45 = vsel %vm1095_vm8, 1.0, %v6125_v44  ;;  %v1323_v5 = vsel %vm1099_vm9, 1.0, %v6125_v44  ;;  %vm983_vm14 = vcmp.eq.s32.totalorder %v4336_v26, %v4347_v31  ;;  %vm987_vm15 = vcmp.eq.s32.totalorder %v4339_v28, %v4347_v31 }
 0x153   : > { %vm3315_vm13 = vmpackc.low %vm995_vm4, %vm991_vm3  ;;  %v1435_v46 = vpack.c.bf16 %v1323_v5, %v1319_v45  ;;  %vm1047_vm1 = vcmp.eq.s32.totalorder %v4342_v29, %v4347_v31  ;;  %vm1051_vm2 = vcmp.eq.s32.totalorder %v4345_v30, %v4347_v31  ;;  %vm1087_vm4 = vcmp.eq.s32.totalorder %v4350_v32, %v4347_v31 }
 0x154   : > { %3300 = vmatpush.bf16.msk.msra.mxu0 %vm3299_vm10, %v6185_v41  ;;  %vm3331_vm0 = vmpackc.low %vm1059_vm7, %vm1055_vm6  ;;  %vm1091_vm5 = vcmp.eq.s32.totalorder %v4353_v33, %v4347_v31  ;;  %vm911_vm7 = vcmp.eq.s32.totalorder %v4356_v34, %v4347_v31  ;;  %vm915_vm8 = vcmp.eq.s32.totalorder %v4359_v35, %v4347_v31  ;;  %vm975_vm10 = vcmp.eq.s32.totalorder %v4362_v36, %v4347_v31 }
 0x155   : > { %3316 = vmatpush.bf16.msk.msra.mxu1 %vm3315_vm13, %v6185_v41  ;;  %v1653_v50 = vand.u32 %v4327_v23, %v1435_v46  ;;  %vm4452_vm3 = vmpackc.low %vm923_vm12, %vm919_vm11  ;;  %vm979_vm11 = vcmp.eq.s32.totalorder %v4365_v37, %v4347_v31  ;;  %vm1039_vm13 = vcmp.eq.s32.totalorder %v4368_v38, %v4347_v31  ;;  %v753_v45 = vcvt.s32.f32 %v749_v61  ;;  %v3594_v61 = vld [vmem:[#allocation2 + $0xc] sm:$0xf] }
 0x156   : > { %3332 = vmatpush.bf16.msk.msra.mxu2 %vm3331_vm0, %v6185_v41  ;;  %vm4470_vm6 = vmpackc.low %vm987_vm15, %vm983_vm14  ;;  %vm1043_vm14 = vcmp.eq.s32.totalorder %v4392_v42, %v4347_v31  ;;  %vm1079_vm0 = vcmp.eq.s32.totalorder %v4395_v43, %v4347_v31  ;;  %v4609_v46 = vadd.s32 288, %v4281_v60  ;;  %v4704_v40 = vor.u32 %v3594_v61, %v3181_v62 }
 0x157   : > { %1815 = vmatpush.bf16.msra.mxu3 %v1653_v50  ;;  %vm4490_vm9 = vmpackc.low %vm1051_vm2, %vm1047_vm1  ;;  %vm1083_vm1 = vcmp.eq.s32.totalorder %v4442_v48, %v4347_v31  ;;  %v757_v54 = vadd.f32 0.5, %v753_v45  ;;  %v4675_v45 = vadd.s32 152, %v4281_v60  ;;  %v4699_v50 = vadd.s32 280, %v4281_v60 }
 0x158   : > { %3302 = vmatpush.bf16.msk.msra.mxu0 %vm4452_vm3, %v6185_v41  ;;  %vm4511_vm12 = vmpackc.low %vm1091_vm5, %vm1087_vm4  ;;  %vm903_vm3 = vcmp.eq.s32.totalorder %v4445_v49, %v4347_v31  ;;  %vm907_vm4 = vcmp.eq.s32.totalorder %v4461_v52, %v4347_v31  ;;  %6277 = vst [vmem:[#allocation27_spill] sm:$0xff] %v4609_v46  ;;  %v4733_v61 = vadd.s32 128, %v4281_v60  ;;  %v4736_v62 = vadd.s32 136, %v4281_v60 }
 0x159   : > { %3318 = vmatpush.bf16.msk.msra.mxu1 %vm4470_vm6, %v6185_v41  ;;  %vm4534_vm15 = vmpackc.low %vm915_vm8, %vm911_vm7  ;;  %vm967_vm6 = vcmp.eq.s32.totalorder %v4479_v55, %v4347_v31  ;;  %vm971_vm7 = vcmp.eq.s32.totalorder %v4482_v56, %v4347_v31  ;;  %6288 = vst [vmem:[#allocation32_spill] sm:$0xff] %v4675_v45  ;;  %v768_v5 = vmul.f32 %v4276_v53, %v757_v54  ;;  %v4696_v53 = vadd.s32 272, %v4281_v60 }
 0x15a   : > { %3334 = vmatpush.bf16.msk.msra.mxu2 %vm4490_vm9, %v6185_v41  ;;  %vm4557_vm2 = vmpackc.low %vm979_vm11, %vm975_vm10  ;;  %vm1031_vm9 = vcmp.eq.s32.totalorder %v4499_v59, %v4347_v31  ;;  %vm1035_vm10 = vcmp.eq.s32.totalorder %v4520_v63, %v4347_v31  ;;  %6292 = vst [vmem:[#allocation34_spill] sm:$0xff] %v4699_v50  ;;  %v4757_v44 = vadd.s32 256, %v4281_v60 }
 0x15b   : > { %3346 = vmatpush.bf16.msk.msra.mxu3 %vm4511_vm12, %v6185_v41  ;;  %vm4580_vm5 = vmpackc.low %vm1043_vm14, %vm1039_vm13  ;;  %vm1071_vm12 = vcmp.eq.s32.totalorder %v4523_v0, %v4347_v31  ;;  %vm1075_vm13 = vcmp.eq.s32.totalorder %v4543_v6, %v4347_v31  ;;  %6291 = vst [vmem:[#allocation33_spill] sm:$0xff] %v4696_v53  ;;  %v772_v39 = vfloor.f32 %v768_v5  ;;  %v4713_v6 = vadd.s32 8, %v4281_v60 }
 0x15c   : > { %3304 = vmatpush.bf16.msk.msra.mxu0 %vm4534_vm15, %v6185_v41  ;;  %vm4600_vm8 = vmpackc.low %vm1083_vm1, %vm1079_vm0  ;;  %vm895_vm15 = vcmp.eq.s32.totalorder %v4546_v12, %v4347_v31  ;;  %vm899_vm0 = vcmp.eq.s32.totalorder %v4566_v15, %v4347_v31  ;;  %6293 = vst [vmem:[#allocation35_spill] sm:$0xff] %v4704_v40  ;;  %v4760_v0 = vadd.s32 264, %v4281_v60 }
 0x15d   : > { %3320 = vmatpush.bf16.msk.msra.mxu1 %vm4557_vm2, %v6185_v41  ;;  %vm4623_vm11 = vmpackc.low %vm907_vm4, %vm903_vm3  ;;  %vm959_vm2 = vcmp.eq.s32.totalorder %v4569_v20, %v4347_v31  ;;  %vm963_vm3 = vcmp.eq.s32.totalorder %v4589_v27, %v4347_v31  ;;  %6294 = vst [vmem:[#allocation36_spill] sm:$0xff] %v4713_v6  ;;  %v776_v21 = vmul.f32 42.0, %v772_v39  ;;  %v784_v5 = vadd.f32 0.5, %v772_v39 }
 0x15e   : > { %3336 = vmatpush.bf16.msk.msra.mxu2 %vm4580_vm5, %v6185_v41  ;;  %vm4643_vm14 = vmpackc.low %vm971_vm7, %vm967_vm6  ;;  %vm1023_vm5 = vcmp.eq.s32.totalorder %v4609_v46, %v4347_v31  ;;  %vm1027_vm6 = vcmp.eq.s32.totalorder %v4612_v47, %v4347_v31  ;;  %vm1623_vm7 = vcmask 465920   ;;  %6297 = vst [vmem:[#allocation37_spill] sm:$0xff] %v4733_v61 }
 0x15f   : > { %3348 = vmatpush.bf16.msk.msra.mxu3 %vm4600_vm8, %v6185_v41  ;;  %vm4666_vm1 = vmpackc.low %vm1035_vm10, %vm1031_vm9  ;;  %vm887_vm10 = vcmp.eq.s32.totalorder %v4632_v51, %v4347_v31  ;;  %6298 = vst [vmem:[#allocation38_spill] sm:$0xff] %v4736_v62  ;;  %v780_v39 = vsub.f32 %v757_v54, %v776_v21 }
 0x160   : > { %3306 = vmatpush.bf16.msk.msra.mxu0 %vm4623_vm11, %v6185_v41  ;;  %vm4687_vm4 = vmpackc.low %vm1075_vm13, %vm1071_vm12  ;;  %vm891_vm11 = vcmp.eq.s32.totalorder %v4652_v4, %v4347_v31  ;;  %vm951_vm13 = vcmp.eq.s32.totalorder %v4655_v14, %v4347_v31  ;;  %6299 = vst [vmem:[#allocation39_spill] sm:$0xff] %v4757_v44 }
 0x161   : > { %3322 = vmatpush.bf16.msk.msra.mxu1 %vm4643_vm14, %v6185_v41  ;;  %vm3307_vm8 = vmpackc.low %vm899_vm0, %vm895_vm15  ;;  %vm955_vm14 = vcmp.eq.s32.totalorder %v4675_v45, %v4347_v31  ;;  %vm1015_vm15 = vcmp.eq.s32.totalorder %v4696_v53, %v4347_v31  ;;  %vm1019_vm0 = vcmp.eq.s32.totalorder %v4699_v50, %v4347_v31  ;;  %6300 = vst [vmem:[#allocation40_spill] sm:$0xff] %v4760_v0 }
 0x162   : > { %3338 = vmatpush.bf16.msk.msra.mxu2 %vm4666_vm1, %v6185_v41  ;;  %vm4724_vm9 = vmpackc.low %vm963_vm3, %vm959_vm2  ;;  %v795_v50 = vmul.f32 %v4279_v57, %v784_v5  ;;  %vm879_vm3 = vcmp.eq.s32.totalorder %v4281_v60, %v4347_v31  ;;  %v807_v21 = vmul.f32 %v4279_v57, %v780_v39  ;;  %v3171_v5 = vld [vmem:[#allocation2] sm:$0xf]  ;;  %v3593_v57 = vld [vmem:[#allocation2 + $0x4] sm:$0xf] }
 0x163   : > { %3350 = vmatpush.bf16.msk.msra.mxu3 %vm4687_vm4, %v6185_v41  ;;  %vm3339_vm12 = vmpackc.low %vm1027_vm6, %vm1023_vm5  ;;  %vm883_vm4 = vcmp.eq.s32.totalorder %v4713_v6, %v4347_v31  ;;  %vm943_vm6 = vcmp.eq.s32.totalorder %v4733_v61, %v4347_v31  ;;  %v3179_v61 = vld [vmem:[#allocation2 + $0x8] sm:$0xf]  ;;  %v3596_v6 = vld [vmem:[#allocation2 + $0x14] sm:$0xf0] }
 0x164   : > { %3308 = vmatpush.bf16.msk.msra.mxu0 %vm3307_vm8, %v6185_v41  ;;  %vm3309_vm1 = vmpackc.low %vm891_vm11, %vm887_vm10  ;;  %v799_v54 = vfloor.f32 %v795_v50  ;;  %vm947_vm8 = vcmp.eq.s32.totalorder %v4736_v62, %v4347_v31  ;;  %vm1011_vm10 = vcmp.eq.s32.totalorder %v4760_v0, %v4347_v31  ;;  %v811_v39 = vfloor.f32 %v807_v21  ;;  %v3173_v62 = vld [vmem:[#allocation2 + $0x10] sm:$0xf0] }
 0x165   : > { %3324 = vmatpush.bf16.msk.msra.mxu1 %vm4724_vm9, %v6185_v41  ;;  %vm3325_vm2 = vmpackc.low %vm955_vm14, %vm951_vm13  ;;  %vm1007_vm9 = vcmp.eq.s32.totalorder %v4757_v44, %v4347_v31  ;;  %v4809_v21 = vor.u32 %v3593_v57, %v3173_v62  ;;  %v4812_v58 = vor.u32 %v3596_v6, %v3179_v61  ;;  %v3599_v61 = vld [vmem:[#allocation2 + $0x2c] sm:$0xf0]  ;;  %v3597_v62 = vld [vmem:[#allocation2 + $0x24] sm:$0xf] }
 0x166   : > { %3351 = vmatmul.msk.bf16.vlgmr.msra.gmra.mxu3 %vm1623_vm7, %v4704_v40  ;;  %3340 = vmatpush.bf16.msk.msra.mxu2 %vm3339_vm12, %v6185_v41  ;;  %vm4782_vm5 = vmpackc.low %vm1019_vm0, %vm1015_vm15  ;;  %v3595_v40 = vld [vmem:[#allocation2 + $0xc] sm:$0xf0]  ;;  %v803_v50 = vmul.f32 21.0, %v799_v54 }
 0x167   : > { %vm3311_vm11 = vmpackc.low %vm883_vm4, %vm879_vm3  ;;  %v4806_v54 = vor.u32 %v3595_v40, %v3171_v5  ;;  %v3189_v5 = vld [vmem:[#allocation2 + $0x30] sm:$0xf0] }
 0x168   : > { %3310 = vmatpush.bf16.msk.msra.mxu0 %vm3309_vm1, %v6185_v41  ;;  %vm3327_vm12 = vmpackc.low %vm947_vm8, %vm943_vm6  ;;  %v815_v0 = vadd.f32 %v811_v39, %v803_v50  ;;  %v3598_v50 = vld [vmem:[#allocation2 + $0x2c] sm:$0xf]  ;;  %v3197_v39 = vld [vmem:[#allocation2 + $0x38] sm:$0xf0] }
 0x169   : > { %3326 = vmatpush.bf16.msk.msra.mxu1 %vm3325_vm2, %v6185_v41  ;;  %vm3343_vm13 = vmpackc.low %vm1011_vm10, %vm1007_vm9  ;;  %v4820_v57 = vor.u32 %v3598_v50, %v3197_v39  ;;  %v3195_v50 = vld [vmem:[#allocation2 + $0x28] sm:$0xf]  ;;  %v3600_v39 = vld [vmem:[#allocation2 + $0x34] sm:$0xf0] }
 0x16a   : > { %3342 = vmatpush.bf16.msk.msra.mxu2 %vm4782_vm5, %v6185_v41  ;;  %vm3634_vm14 = vcmp.lt.s32.totalorder %v815_v0, 0  ;;  %v3635_v60 = vceil.f32 %v815_v0  ;;  %v3636_v53 = vfloor.f32 %v815_v0 }
 0x16c   : > { %3312 = vmatpush.bf16.msk.msra.mxu0 %vm3311_vm11, %v6185_v41  ;;  %v3637_v45 = vsel %vm3634_vm14, %v3635_v60, %v3636_v53  ;;  %v6303_v53 = vmov 0.0  }
 0x16d   : > { %3328 = vmatpush.bf16.msk.msra.mxu1 %vm3327_vm12, %v6185_v41  ;;  %v4816_v40 = vcvt.f32.s32 %v3637_v45  ;;  %v3187_v45 = vld [vmem:[#allocation2 + $0x20] sm:$0xf] }
 0x16e   : > { %3344 = vmatpush.bf16.msk.msra.mxu2 %vm3343_vm13, %v6185_v41 }
 0x16f   : > { %1672 = vmatmul.bf16.vlgmr.msra.gmra.mxu0 %v4806_v54  ;;  %vm936_vm15 = vcmp.eq.s32.totalorder %v4286_v1, %v4816_v40  ;;  %vm940_vm0 = vcmp.eq.s32.totalorder %v4289_v2, %v4816_v40  ;;  %vm1096_vm1 = vcmp.eq.s32.totalorder %v4304_v10, %v4816_v40  ;;  %vm1100_vm2 = vcmp.eq.s32.totalorder %v4307_v11, %v4816_v40 }
 0x170   : > { %1721 = vmatmul.bf16.vlgmr.msra.gmra.mxu1 %v4809_v21  ;;  %vm3359_vm3 = vmpackc.low %vm940_vm0, %vm936_vm15  ;;  %v1320_v60 = vsel %vm1096_vm1, 1.0, %v6303_v53  ;;  %v1324_v31 = vsel %vm1100_vm2, 1.0, %v6303_v53  ;;  %vm1000_vm4 = vcmp.eq.s32.totalorder %v4292_v3, %v4816_v40  ;;  %vm1004_vm5 = vcmp.eq.s32.totalorder %v4295_v7, %v4816_v40 }
 0x171   : > { %1770 = vmatmul.bf16.vlgmr.msra.gmra.mxu2 %v4812_v58  ;;  %3360 = vmatpush.bf16.msk.msrb.mxu3 %vm3359_vm3, %v6185_v41  ;;  %v1436_v0 = vpack.c.bf16 %v1324_v31, %v1320_v60  ;;  %vm3375_vm6 = vmpackc.low %vm1004_vm5, %vm1000_vm4  ;;  %vm1064_vm8 = vcmp.eq.s32.totalorder %v4298_v8, %v4816_v40  ;;  %vm1068_vm9 = vcmp.eq.s32.totalorder %v4301_v9, %v4816_v40 }
 0x172   : > { %vm928_vm10 = vcmp.eq.s32.totalorder %v4310_v13, %v4816_v40  ;;  %3376 = vmatpush.bf16.msk.msrb.mxu0 %vm3375_vm6, %v6185_v41  ;;  %vm3391_vm11 = vmpackc.low %vm1068_vm9, %vm1064_vm8  ;;  %vm932_vm12 = vcmp.eq.s32.totalorder %v4313_v16, %v4816_v40  ;;  %vm992_vm13 = vcmp.eq.s32.totalorder %v4316_v17, %v4816_v40  ;;  %vm996_vm14 = vcmp.eq.s32.totalorder %v4319_v18, %v4816_v40 }
 0x173   : > { %vm1056_vm15 = vcmp.eq.s32.totalorder %v4322_v19, %v4816_v40  ;;  %v1656_v6 = vand.u32 %v4327_v23, %v1436_v0  ;;  %3392 = vmatpush.bf16.msk.msrb.mxu1 %vm3391_vm11, %v6185_v41  ;;  %vm3361_vm0 = vmpackc.low %vm932_vm12, %vm928_vm10  ;;  %vm1060_vm1 = vcmp.eq.s32.totalorder %v4325_v22, %v4816_v40  ;;  %vm920_vm2 = vcmp.eq.s32.totalorder %v4330_v24, %v4816_v40 }
 0x174   : > { %vm3377_vm3 = vmpackc.low %vm996_vm14, %vm992_vm13  ;;  %vm924_vm4 = vcmp.eq.s32.totalorder %v4333_v25, %v4816_v40  ;;  %vm1088_vm5 = vcmp.eq.s32.totalorder %v4350_v32, %v4816_v40  ;;  %vm1092_vm6 = vcmp.eq.s32.totalorder %v4353_v33, %v4816_v40  ;;  %vm984_vm9 = vcmp.eq.s32.totalorder %v4336_v26, %v4816_v40 }
 0x175   : > { %2011 = vmatpush.bf16.msrb.mxu2 %v1656_v6  ;;  %3362 = vmatpush.bf16.msk.msrb.mxu3 %vm3361_vm0, %v6185_v41  ;;  %vm3393_vm8 = vmpackc.low %vm1060_vm1, %vm1056_vm15  ;;  %vm988_vm10 = vcmp.eq.s32.totalorder %v4339_v28, %v4816_v40  ;;  %vm1048_vm12 = vcmp.eq.s32.totalorder %v4342_v29, %v4816_v40  ;;  %vm1052_vm13 = vcmp.eq.s32.totalorder %v4345_v30, %v4816_v40  ;;  %v3602_v6 = vld [vmem:[#allocation2 + $0x4c] sm:$0xf] }
 0x176   : > { %3352 = vmatmul.msk.bf16.gmra.mxu3 %vm1623_vm7, %v4820_v57  ;;  %3378 = vmatpush.bf16.msk.msrb.mxu0 %vm3377_vm3, %v6185_v41  ;;  %vm3363_vm11 = vmpackc.low %vm924_vm4, %vm920_vm2  ;;  %vm912_vm15 = vcmp.eq.s32.totalorder %v4356_v34, %v4816_v40  ;;  %vm916_vm0 = vcmp.eq.s32.totalorder %v4359_v35, %v4816_v40  ;;  %v4893_v60 = vor.u32 %v3599_v61, %v3187_v45  ;;  %v3213_v45 = vld [vmem:[#allocation2 + $0x58] sm:$0xf0] }
 0x177   : > { %3394 = vmatpush.bf16.msk.msrb.mxu1 %vm3393_vm8, %v6185_v41  ;;  %vm3407_vm14 = vmpackc.low %vm1092_vm6, %vm1088_vm5  ;;  %v4898_v31 = vor.u32 %v3597_v62, %v3189_v5  ;;  %v4902_v0 = vor.u32 %v3600_v39, %v3195_v50  ;;  %vm976_vm4 = vcmp.eq.s32.totalorder %v4362_v36, %v4816_v40  ;;  %vm980_vm5 = vcmp.eq.s32.totalorder %v4365_v37, %v4816_v40  ;;  %v3203_v62 = vld [vmem:[#allocation2 + $0x40] sm:$0xf]  ;;  %v3603_v5 = vld [vmem:[#allocation2 + $0x4c] sm:$0xf0] }
 0x178   : > { %vm3379_vm1 = vmpackc.low %vm988_vm10, %vm984_vm9  ;;  %v4914_v61 = vor.u32 %v3602_v6, %v3213_v45  ;;  %vm1040_vm8 = vcmp.eq.s32.totalorder %v4368_v38, %v4816_v40  ;;  %vm1044_vm9 = vcmp.eq.s32.totalorder %v4392_v42, %v4816_v40  ;;  %vm904_vm10 = vcmp.eq.s32.totalorder %v4445_v49, %v4816_v40  ;;  %v3601_v50 = vld [vmem:[#allocation2 + $0x44] sm:$0xf]  ;;  %v3205_v39 = vld [vmem:[#allocation2 + $0x50] sm:$0xf0] }
 0x179   : > { %3364 = vmatpush.bf16.msk.msrb.mxu3 %vm3363_vm11, %v6185_v41  ;;  %3408 = vmatpush.bf16.msk.msrb.mxu2 %vm3407_vm14, %v6185_v41  ;;  %vm3395_vm2 = vmpackc.low %vm1052_vm13, %vm1048_vm12  ;;  %vm908_vm11 = vcmp.eq.s32.totalorder %v4461_v52, %v4816_v40  ;;  %v3211_v6 = vld [vmem:[#allocation2 + $0x48] sm:$0xf]  ;;  %v3604_v45 = vld [vmem:[#allocation2 + $0x54] sm:$0xf0]  ;;  %v4931_v42 = vor.u32 %v3601_v50, %v3205_v39  ;;  %vm1080_vm14 = vcmp.eq.s32.totalorder %v4395_v43, %v4816_v40 }
 0x17a   : > { %3380 = vmatpush.bf16.msk.msrb.mxu0 %vm3379_vm1, %v6185_v41  ;;  %vm3365_vm3 = vmpackc.low %vm916_vm0, %vm912_vm15  ;;  %6304 = vst [vmem:[#allocation41_spill] sm:$0xff] %v4914_v61  ;;  %v4933_v49 = vor.u32 %v3604_v45, %v3211_v6  ;;  %v3606_v52 = vld [vmem:[#allocation2 + $0x6c] sm:$0xf]  ;;  %v3229_v38 = vld [vmem:[#allocation2 + $0x78] sm:$0xf0]  ;;  %vm1084_vm15 = vcmp.eq.s32.totalorder %v4442_v48, %v4816_v40  ;;  %vm968_vm0 = vcmp.eq.s32.totalorder %v4479_v55, %v4816_v40 }
 0x17b   : > { %3396 = vmatpush.bf16.msk.msrb.mxu1 %vm3395_vm2, %v6185_v41  ;;  %vm3381_vm6 = vmpackc.low %vm980_vm5, %vm976_vm4  ;;  %6305 = vst [vmem:[#allocation42_spill] sm:$0xff] %v4931_v42  ;;  %vm972_vm2 = vcmp.eq.s32.totalorder %v4482_v56, %v4816_v40  ;;  %vm1032_vm4 = vcmp.eq.s32.totalorder %v4499_v59, %v4816_v40  ;;  %vm1036_vm5 = vcmp.eq.s32.totalorder %v4520_v63, %v4816_v40  ;;  %v3221_v50 = vld [vmem:[#allocation2 + $0x70] sm:$0xf0]  ;;  %v3227_v39 = vld [vmem:[#allocation2 + $0x68] sm:$0xf] }
 0x17c   : > { %vm3397_vm12 = vmpackc.low %vm1044_vm9, %vm1040_vm8  ;;  %6306 = vst [vmem:[#allocation43_spill] sm:$0xff] %v4933_v49  ;;  %vm900_vm8 = vcmp.eq.s32.totalorder %v4566_v15, %v4816_v40  ;;  %v3608_v6 = vld [vmem:[#allocation2 + $0x74] sm:$0xf0]  ;;  %v3610_v15 = vld [vmem:[#allocation2 + $0x8c] sm:$0xf] }
 0x17d   : > { %3366 = vmatpush.bf16.msk.msrb.mxu3 %vm3365_vm3, %v6185_v41  ;;  %vm3367_vm13 = vmpackc.low %vm908_vm11, %vm904_vm10  ;;  %v3245_v63 = vld [vmem:[#allocation2 + $0x98] sm:$0xf0]  ;;  %vm960_vm11 = vcmp.eq.s32.totalorder %v4569_v20, %v4816_v40 }
 0x17e   : > { %3382 = vmatpush.bf16.msk.msrb.mxu0 %vm3381_vm6, %v6185_v41  ;;  %vm3409_vm1 = vmpackc.low %vm1084_vm15, %vm1080_vm14  ;;  %vm896_vm6 = vcmp.eq.s32.totalorder %v4546_v12, %v4816_v40  ;;  %v4966_v12 = vor.u32 %v3608_v6, %v3227_v39  ;;  %vm1024_vm14 = vcmp.eq.s32.totalorder %v4609_v46, %v4816_v40  ;;  %vm1028_vm15 = vcmp.eq.s32.totalorder %v4612_v47, %v4816_v40  ;;  %v3612_v39 = vld [vmem:[#allocation2 + $0x94] sm:$0xf0]  ;;  %v3261_v47 = vld [vmem:[#allocation2 + $0xb8] sm:$0xf0] }
 0x17f   : > { %1677 = vmatmul.bf16.gmra.mxu0 %v4893_v60  ;;  %3398 = vmatpush.bf16.msk.msrb.mxu1 %vm3397_vm12, %v6185_v41  ;;  %vm3383_vm3 = vmpackc.low %vm972_vm2, %vm968_vm0  ;;  %vm964_vm12 = vcmp.eq.s32.totalorder %v4589_v27, %v4816_v40  ;;  %vm888_vm0 = vcmp.eq.s32.totalorder %v4632_v51, %v4816_v40  ;;  %v6315_v46 = vld [vmem:[#allocation21_spill] sm:$0xff]  ;;  %v3293_v27 = vld [vmem:[#allocation2 + $0xf8] sm:$0xf0] }
 0x180   : > { %1726 = vmatmul.bf16.gmra.mxu1 %v4898_v31  ;;  %3410 = vmatpush.bf16.msk.msrb.mxu2 %vm3409_vm1, %v6185_v41  ;;  %vm3399_vm9 = vmpackc.low %vm1036_vm5, %vm1032_vm4  ;;  %6310 = vst [vmem:[#allocation47_spill] sm:$0xff] %v4966_v12  ;;  %vm892_vm1 = vcmp.eq.s32.totalorder %v4652_v4, %v4816_v40  ;;  %v3614_v4 = vld [vmem:[#allocation2 + $0xac] sm:$0xf]  ;;  %vm1072_vm4 = vcmp.eq.s32.totalorder %v6315_v46, %v4816_v40 }
 0x181   : > { %1775 = vmatmul.bf16.gmra.mxu2 %v4902_v0  ;;  %3368 = vmatpush.bf16.msk.msrb.mxu3 %vm3367_vm13, %v6185_v41  ;;  %vm3369_vm10 = vmpackc.low %vm900_vm8, %vm896_vm6  ;;  %vm952_vm6 = vcmp.eq.s32.totalorder %v4655_v14, %v4816_v40  ;;  %v3613_v14 = vld [vmem:[#allocation2 + $0xa4] sm:$0xf] }
 0x182   : > { %3384 = vmatpush.bf16.msk.msrb.mxu0 %vm3383_vm3, %v6185_v41  ;;  %vm3385_vm13 = vmpackc.low %vm964_vm12, %vm960_vm11 }
 0x183   : > { %3400 = vmatpush.bf16.msk.msrb.mxu1 %vm3399_vm9, %v6185_v41  ;;  %vm3401_vm2 = vmpackc.low %vm1028_vm15, %vm1024_vm14 }
 0x184   : > { %vm3371_vm3 = vmpackc.low %vm892_vm1, %vm888_vm0 }
 0x185   : > { %3370 = vmatpush.bf16.msk.msrb.mxu3 %vm3369_vm10, %v6185_v41 }
 0x186   : > { %3353 = vmatmul.msk.bf16.gmra.mxu3 %vm1623_vm7, %v4914_v61  ;;  %v4929_v61 = vor.u32 %v3603_v5, %v3203_v62  ;;  %v4944_v62 = vor.u32 %v3606_v52, %v3229_v38  ;;  %v3219_v38 = vld [vmem:[#allocation2 + $0x60] sm:$0xf]  ;;  %v3607_v52 = vld [vmem:[#allocation2 + $0x6c] sm:$0xf0]  ;;  %v3605_v5 = vld [vmem:[#allocation2 + $0x64] sm:$0xf]  ;;  %3386 = vmatpush.bf16.msk.msrb.mxu0 %vm3385_vm13, %v6185_v41 }
 0x187   : > { %v4962_v45 = vor.u32 %v3607_v52, %v3219_v38  ;;  %v4975_v38 = vor.u32 %v3610_v15, %v3245_v63  ;;  %v3235_v63 = vld [vmem:[#allocation2 + $0x80] sm:$0xf]  ;;  %v3611_v15 = vld [vmem:[#allocation2 + $0x8c] sm:$0xf0]  ;;  %3402 = vmatpush.bf16.msk.msrb.mxu1 %vm3401_vm2, %v6185_v41  ;;  %v3609_v52 = vld [vmem:[#allocation2 + $0x84] sm:$0xf] }
 0x188   : > { %6307 = vst [vmem:[#allocation44_spill] sm:$0xff] %v4944_v62  ;;  %v4990_v6 = vor.u32 %v3611_v15, %v3235_v63  ;;  %v5005_v63 = vor.u32 %v3614_v4, %v3261_v47  ;;  %v6318_v15 = vld [vmem:[#allocation32_spill] sm:$0xff] }
 0x189   : > { %6308 = vst [vmem:[#allocation45_spill] sm:$0xff] %v4962_v45  ;;  %3372 = vmatpush.bf16.msk.msrb.mxu3 %vm3371_vm3, %v6185_v41  ;;  %v6316_v41 = vld [vmem:[#allocation22_spill] sm:$0xff]  ;;  %vm956_vm9 = vcmp.eq.s32.totalorder %v6318_v15, %v4816_v40  ;;  %v6322_v47 = vld [vmem:[#allocation8_spill] sm:$0xff] }
 0x18a   : > { %6311 = vst [vmem:[#allocation48_spill] sm:$0xff] %v4975_v38  ;;  %vm1076_vm5 = vcmp.eq.s32.totalorder %v6316_v41, %v4816_v40  ;;  %vm3387_vm10 = vmpackc.low %vm956_vm9, %vm952_vm6  ;;  %vm880_vm13 = vcmp.eq.s32.totalorder %v6322_v47, %v4816_v40  ;;  %v6323_v4 = vld [vmem:[#allocation36_spill] sm:$0xff]  ;;  %v3615_v15 = vld [vmem:[#allocation2 + $0xac] sm:$0xf0] }
 0x18b   : > { %6312 = vst [vmem:[#allocation49_spill] sm:$0xff] %v4990_v6  ;;  %vm3411_vm8 = vmpackc.low %vm1076_vm5, %vm1072_vm4  ;;  %vm884_vm14 = vcmp.eq.s32.totalorder %v6323_v4, %v4816_v40  ;;  %v3616_v41 = vld [vmem:[#allocation2 + $0xb4] sm:$0xf0]  ;;  %v3618_v4 = vld [vmem:[#allocation2 + $0xcc] sm:$0xf]  ;;  %vm1008_vm4 = vcmp.eq.s32.totalorder %v4757_v44, %v4816_v40 }
 0x18c   : > { %6317 = vst [vmem:[#allocation52_spill] sm:$0xff] %v5005_v63  ;;  %vm3373_vm0 = vmpackc.low %vm884_vm14, %vm880_vm13 }
 0x18f   : > { %1682 = vmatmul.bf16.gmra.mxu0 %v4929_v61 }
 0x190   : > { %1731 = vmatmul.bf16.gmra.mxu1 %v4931_v42 }
 0x191   : > { %1780 = vmatmul.bf16.gmra.mxu2 %v4933_v49 }
 0x196   : > { %3354 = vmatmul.msk.bf16.gmra.mxu3 %vm1623_vm7, %v4944_v62  ;;  %v4964_v62 = vor.u32 %v3605_v5, %v3221_v50  ;;  %v3237_v5 = vld [vmem:[#allocation2 + $0x90] sm:$0xf0]  ;;  %v3243_v50 = vld [vmem:[#allocation2 + $0x88] sm:$0xf] }
 0x197   : > { %v4994_v51 = vor.u32 %v3612_v39, %v3243_v50  ;;  %v6321_v50 = vld [vmem:[#allocation34_spill] sm:$0xff]  ;;  %v3251_v39 = vld [vmem:[#allocation2 + $0xa0] sm:$0xf] }
 0x198   : > { %6309 = vst [vmem:[#allocation46_spill] sm:$0xff] %v4964_v62  ;;  %vm1020_vm12 = vcmp.eq.s32.totalorder %v6321_v50, %v4816_v40  ;;  %v5023_v46 = vor.u32 %v3615_v15, %v3251_v39 }
 0x199   : > { %6314 = vst [vmem:[#allocation51_spill] sm:$0xff] %v4994_v51 }
 0x19a   : > { %6324 = vst [vmem:[#allocation53_spill] sm:$0xff] %v5023_v46 }
 0x19f   : > { %1687 = vmatmul.bf16.gmra.mxu0 %v4962_v45 }
 0x1a0   : > { %1736 = vmatmul.bf16.gmra.mxu1 %v4964_v62  ;;  %v3291_v62 = vld [vmem:[#allocation2 + $0xe8] sm:$0xf] }
 0x1a1   : > { %1785 = vmatmul.bf16.gmra.mxu2 %v4966_v12 }
 0x1a6   : > { %3355 = vmatmul.msk.bf16.gmra.mxu3 %vm1623_vm7, %v4975_v38  ;;  %v4992_v38 = vor.u32 %v3609_v52, %v3237_v5  ;;  %v6319_v52 = vmov 1.0|1.0   ;;  %v6320_v5 = vld [vmem:[#allocation33_spill] sm:$0xff] }
 0x1a7   : > { %3412 = vmatpush.bf16.msk.msrb.mxu2 %vm3411_vm8, %v6319_v52  ;;  %3388 = vmatpush.bf16.msk.msrb.mxu0 %vm3387_vm10, %v6319_v52  ;;  %vm1016_vm11 = vcmp.eq.s32.totalorder %v6320_v5, %v4816_v40  ;;  %v3259_v5 = vld [vmem:[#allocation2 + $0xa8] sm:$0xf] }
 0x1a8   : > { %6313 = vst [vmem:[#allocation50_spill] sm:$0xff] %v4992_v38  ;;  %vm3403_vm15 = vmpackc.low %vm1020_vm12, %vm1016_vm11  ;;  %3374 = vmatpush.bf16.msk.msrb.mxu3 %vm3373_vm0, %v6319_v52  ;;  %v5027_v47 = vor.u32 %v3616_v41, %v3259_v5  ;;  %v6330_v41 = vld [vmem:[#allocation40_spill] sm:$0xff] }
 0x1a9   : > { %3404 = vmatpush.bf16.msk.msrb.mxu1 %vm3403_vm15, %v6319_v52  ;;  %vm1012_vm5 = vcmp.eq.s32.totalorder %v6330_v41, %v4816_v40  ;;  %v3617_v5 = vld [vmem:[#allocation2 + $0xc4] sm:$0xf]  ;;  %v3622_v41 = vld [vmem:[#allocation2 + $0xec] sm:$0xf] }
 0x1aa   : > { %6326 = vst [vmem:[#allocation55_spill] sm:$0xff] %v5027_v47  ;;  %vm3405_vm6 = vmpackc.low %vm1012_vm5, %vm1008_vm4 }
 0x1ad   : > { %3406 = vmatpush.bf16.msk.msrb.mxu1 %vm3405_vm6, %v6319_v52 }
 0x1af   : > { %1692 = vmatmul.bf16.gmra.mxu0 %v4990_v6  ;;  %v6328_v6 = vld [vmem:[#allocation38_spill] sm:$0xff] }
 0x1b0   : > { %1741 = vmatmul.bf16.gmra.mxu1 %v4992_v38  ;;  %v6327_v38 = vld [vmem:[#allocation37_spill] sm:$0xff]  ;;  %vm948_vm2 = vcmp.eq.s32.totalorder %v6328_v6, %v4816_v40 }
 0x1b1   : > { %1790 = vmatmul.bf16.gmra.mxu2 %v4994_v51  ;;  %v3277_v51 = vld [vmem:[#allocation2 + $0xd8] sm:$0xf0]  ;;  %vm944_vm1 = vcmp.eq.s32.totalorder %v6327_v38, %v4816_v40  ;;  %v3275_v6 = vld [vmem:[#allocation2 + $0xc8] sm:$0xf]  ;;  %v3620_v38 = vld [vmem:[#allocation2 + $0xd4] sm:$0xf0] }
 0x1b2   : > { %v5036_v15 = vor.u32 %v3618_v4, %v3277_v51  ;;  %vm3389_vm3 = vmpackc.low %vm948_vm2, %vm944_vm1  ;;  %v3269_v51 = vld [vmem:[#allocation2 + $0xd0] sm:$0xf0]  ;;  %v6331_v4 = vld [vmem:[#allocation4_spill] sm:$0xff]  ;;  %v5052_v44 = vor.u32 %v3620_v38, %v3275_v6 }
 0x1b3   : > { %3390 = vmatpush.bf16.msk.msrb.mxu0 %vm3389_vm3, %v6319_v52  ;;  %v744_v39 = vadd.s32 256, %v6331_v4  ;;  %v6336_v4 = vld [vmem:[#allocation6_spill] sm:$0xff]  ;;  %v6337_v6 = vld [vmem:[#allocation7_spill] sm:$0xff] }
 0x1b4   : > { %6329 = vst [vmem:[#allocation56_spill] sm:$0xff] %v5036_v15 }
 0x1b5   : > { %6335 = vst [vmem:[#allocation59_spill] sm:$0xff] %v5052_v44 }
 0x1b6   : > { %3356 = vmatmul.msk.bf16.gmra.mxu3 %vm1623_vm7, %v5005_v63  ;;  %v3253_v63 = vld [vmem:[#allocation2 + $0xb0] sm:$0xf0] }
 0x1b7   : > { %v5025_v50 = vor.u32 %v3613_v14, %v3253_v63  ;;  %v3267_v14 = vld [vmem:[#allocation2 + $0xc0] sm:$0xf]  ;;  %v3619_v63 = vld [vmem:[#allocation2 + $0xcc] sm:$0xf0] }
 0x1b9   : > { %6325 = vst [vmem:[#allocation54_spill] sm:$0xff] %v5025_v50 }
 0x1bf   : > { %1697 = vmatmul.bf16.gmra.mxu0 %v5023_v46  ;;  %v5050_v46 = vor.u32 %v3617_v5, %v3269_v51  ;;  %v3283_v51 = vld [vmem:[#allocation2 + $0xe0] sm:$0xf] }
 0x1c0   : > { %1746 = vmatmul.bf16.gmra.mxu1 %v5025_v50 }
 0x1c1   : > { %1795 = vmatmul.bf16.gmra.mxu2 %v5027_v47  ;;  %v5047_v47 = vor.u32 %v3619_v63, %v3267_v14  ;;  %6334 = vst [vmem:[#allocation58_spill] sm:$0xff] %v5050_v46  ;;  %v5058_v14 = vor.u32 %v3622_v41, %v3293_v27 }
 0x1c3   : > { %6332 = vst [vmem:[#allocation57_spill] sm:$0xff] %v5047_v47 }
 0x1c6   : > { %3357 = vmatmul.msk.bf16.gmra.mxu3 %vm1623_vm7, %v5036_v15  ;;  %v6333_v15 = vld [vmem:[#allocation5_spill] sm:$0xff] }
 0x1c7   : > { %v750_v50 = vadd.s32 %v6333_v15, %v744_v39  ;;  %v3623_v15 = vld [vmem:[#allocation2 + $0xec] sm:$0xf0] }
 0x1c8   : > { %v5064_v27 = vor.u32 %v3623_v15, %v3283_v51 }
 0x1c9   : > { %v754_v40 = vcvt.s32.f32 %v750_v50 }
 0x1cb   : > { %v758_v20 = vadd.f32 0.5, %v754_v40  ;;  %v3621_v40 = vld [vmem:[#allocation2 + $0xe4] sm:$0xf] }
 0x1cd   : > { %v769_v12 = vmul.f32 %v6336_v4, %v758_v20  ;;  %v3624_v4 = vld [vmem:[#allocation2 + $0xf4] sm:$0xf0] }
 0x1ce   : > { %v5068_v59 = vor.u32 %v3624_v4, %v3291_v62 }
 0x1cf   : > { %1702 = vmatmul.bf16.gmra.mxu0 %v5047_v47  ;;  %v773_v63 = vfloor.f32 %v769_v12  ;;  %v3285_v47 = vld [vmem:[#allocation2 + $0xf0] sm:$0xf0] }
 0x1d0   : > { %1751 = vmatmul.bf16.gmra.mxu1 %v5050_v46 }
 0x1d1   : > { %1800 = vmatmul.bf16.gmra.mxu2 %v5052_v44  ;;  %v777_v39 = vmul.f32 42.0, %v773_v63  ;;  %v785_v5 = vadd.f32 0.5, %v773_v63  ;;  %v5066_v63 = vor.u32 %v3621_v40, %v3285_v47 }
 0x1d3   : > { %v781_v38 = vsub.f32 %v758_v20, %v777_v39  ;;  %v796_v50 = vmul.f32 %v6337_v6, %v785_v5 }
 0x1d5   : > { %v800_v46 = vfloor.f32 %v796_v50  ;;  %v808_v44 = vmul.f32 %v6337_v6, %v781_v38 }
 0x1d6   : > { %3358 = vmatmul.msk.bf16.gmra.mxu3 %vm1623_vm7, %v5058_v14 }
 0x1d7   : > { %v804_v12 = vmul.f32 21.0, %v800_v46  ;;  %v812_v41 = vfloor.f32 %v808_v44 }
 0x1d9   : > { %v816_v20 = vadd.f32 %v812_v41, %v804_v12  ;;  %v6338_v12 = vld [vmem:[#allocation35_spill] sm:$0xff] }
 0x1db   : > { %vm3639_vm8 = vcmp.lt.s32.totalorder %v816_v20, 0  ;;  %v3640_v39 = vceil.f32 %v816_v20  ;;  %v3641_v5 = vfloor.f32 %v816_v20 }
 0x1dd   : > { %v3642_v38 = vsel %vm3639_vm8, %v3640_v39, %v3641_v5 }
 0x1de   : > { %v5073_v50 = vcvt.f32.s32 %v3642_v38 }
 0x1df   : > { %1707 = vmatmul.bf16.gmra.mxu0 %v5064_v27 }
 0x1e0   : > { %1756 = vmatmul.bf16.gmra.mxu1 %v5066_v63  ;;  %vm937_vm9 = vcmp.eq.s32.totalorder %v4286_v1, %v5073_v50  ;;  %vm941_vm10 = vcmp.eq.s32.totalorder %v4289_v2, %v5073_v50  ;;  %vm1097_vm11 = vcmp.eq.s32.totalorder %v4304_v10, %v5073_v50  ;;  %vm1101_vm12 = vcmp.eq.s32.totalorder %v4307_v11, %v5073_v50 }
 0x1e1   : > { %1805 = vmatmul.bf16.gmra.mxu2 %v5068_v59  ;;  %vm3421_vm13 = vmpackc.low %vm941_vm10, %vm937_vm9  ;;  %v1321_v46 = vsel %vm1097_vm11, 1.0, %v6303_v53  ;;  %v1325_v44 = vsel %vm1101_vm12, 1.0, %v6303_v53  ;;  %vm1001_vm14 = vcmp.eq.s32.totalorder %v4292_v3, %v5073_v50  ;;  %vm1005_vm15 = vcmp.eq.s32.totalorder %v4295_v7, %v5073_v50 }
 0x1e2   : > { %v1437_v62 = vpack.c.bf16 %v1325_v44, %v1321_v46  ;;  %vm3437_vm0 = vmpackc.low %vm1005_vm15, %vm1001_vm14  ;;  %vm1065_vm1 = vcmp.eq.s32.totalorder %v4298_v8, %v5073_v50  ;;  %vm1069_vm2 = vcmp.eq.s32.totalorder %v4301_v9, %v5073_v50  ;;  %vm929_vm3 = vcmp.eq.s32.totalorder %v4310_v13, %v5073_v50  ;;  %3422 = vmatpush.bf16.msk.msra.mxu3 %vm3421_vm13, %v6319_v52 }
 0x1e3   : > { %3438 = vmatpush.bf16.msk.msra.mxu0 %vm3437_vm0, %v6319_v52  ;;  %vm3453_vm4 = vmpackc.low %vm1069_vm2, %vm1065_vm1  ;;  %vm933_vm5 = vcmp.eq.s32.totalorder %v4313_v16, %v5073_v50  ;;  %vm993_vm6 = vcmp.eq.s32.totalorder %v4316_v17, %v5073_v50  ;;  %vm997_vm8 = vcmp.eq.s32.totalorder %v4319_v18, %v5073_v50  ;;  %vm1057_vm11 = vcmp.eq.s32.totalorder %v4322_v19, %v5073_v50 }
 0x1e4   : > { %v1659_v47 = vand.u32 %v4327_v23, %v1437_v62  ;;  %3454 = vmatpush.bf16.msk.msra.mxu1 %vm3453_vm4, %v6319_v52  ;;  %vm3423_vm9 = vmpackc.low %vm933_vm5, %vm929_vm3  ;;  %vm1061_vm12 = vcmp.eq.s32.totalorder %v4325_v22, %v5073_v50  ;;  %vm921_vm14 = vcmp.eq.s32.totalorder %v4330_v24, %v5073_v50  ;;  %vm925_vm15 = vcmp.eq.s32.totalorder %v4333_v25, %v5073_v50 }
 0x1e5   : > { %vm3439_vm10 = vmpackc.low %vm997_vm8, %vm993_vm6  ;;  %vm1089_vm0 = vcmp.eq.s32.totalorder %v4350_v32, %v5073_v50  ;;  %vm1093_vm1 = vcmp.eq.s32.totalorder %v4353_v33, %v5073_v50  ;;  %vm985_vm3 = vcmp.eq.s32.totalorder %v4336_v26, %v5073_v50  ;;  %vm989_vm4 = vcmp.eq.s32.totalorder %v4339_v28, %v5073_v50 }
 0x1e6   : > { %1868 = vmatmul.bf16.vlgmr.msrb.gmra.mxu3 %v4806_v54  ;;  %2207 = vmatpush.bf16.msra.mxu2 %v1659_v47  ;;  %vm3455_vm13 = vmpackc.low %vm1061_vm12, %vm1057_vm11  ;;  %vm1049_vm8 = vcmp.eq.s32.totalorder %v4342_v29, %v5073_v50  ;;  %vm913_vm11 = vcmp.eq.s32.totalorder %v4356_v34, %v5073_v50  ;;  %vm917_vm12 = vcmp.eq.s32.totalorder %v4359_v35, %v5073_v50 }
 0x1e7   : > { %3424 = vmatpush.bf16.msk.msra.mxu3 %vm3423_vm9, %v6319_v52  ;;  %3440 = vmatpush.bf16.msk.msra.mxu0 %vm3439_vm10, %v6319_v52  ;;  %vm3425_vm2 = vmpackc.low %vm925_vm15, %vm921_vm14  ;;  %vm1053_vm9 = vcmp.eq.s32.totalorder %v4345_v30, %v5073_v50  ;;  %vm981_vm15 = vcmp.eq.s32.totalorder %v4365_v37, %v5073_v50 }
 0x1e8   : > { %3456 = vmatpush.bf16.msk.msra.mxu1 %vm3455_vm13, %v6319_v52  ;;  %vm3469_vm5 = vmpackc.low %vm1093_vm1, %vm1089_vm0  ;;  %vm977_vm13 = vcmp.eq.s32.totalorder %v4362_v36, %v5073_v50 }
 0x1e9   : > { %v1820_v15 = vpop.f32.mrf.mxu3  ;;  %vm3441_vm6 = vmpackc.low %vm989_vm4, %vm985_vm3 }
 0x1ea   : > { %3470 = vmatpush.bf16.msk.msra.mxu2 %vm3469_vm5, %v6319_v52  ;;  %vm3457_vm10 = vmpackc.low %vm1053_vm9, %vm1049_vm8  ;;  %vm1085_vm9 = vcmp.eq.s32.totalorder %v4442_v48, %v5073_v50 }
 0x1eb   : > { %3426 = vmatpush.bf16.msk.msra.mxu3 %vm3425_vm2, %v6319_v52  ;;  %3442 = vmatpush.bf16.msk.msra.mxu0 %vm3441_vm6, %v6319_v52  ;;  %vm3427_vm14 = vmpackc.low %vm917_vm12, %vm913_vm11  ;;  %vm1081_vm6 = vcmp.eq.s32.totalorder %v4395_v43, %v5073_v50  ;;  %vm973_vm11 = vcmp.eq.s32.totalorder %v4482_v56, %v5073_v50 }
 0x1ec   : > { %v1673_v4 = vpop.f32.mrf.mxu0  ;;  %3458 = vmatpush.bf16.msk.msra.mxu1 %vm3457_vm10, %v6319_v52  ;;  %vm3443_vm0 = vmpackc.low %vm981_vm15, %vm977_vm13  ;;  %vm969_vm10 = vcmp.eq.s32.totalorder %v4479_v55, %v5073_v50 }
 0x1ed   : > { %v1722_v51 = vpop.f32.mrf.mxu1  ;;  %vm3471_vm12 = vmpackc.low %vm1085_vm9, %vm1081_vm6 }
 0x1ee   : > { %v1723_v41 = vadd.f32 %v1722_v51, %v1673_v4  ;;  %3472 = vmatpush.bf16.msk.msra.mxu2 %vm3471_vm12, %v6319_v52  ;;  %vm3445_vm13 = vmpackc.low %vm973_vm11, %vm969_vm10 }
 0x1ef   : > { %1917 = vmatmul.bf16.vlgmr.msrb.gmra.mxu0 %v4809_v21  ;;  %3428 = vmatpush.bf16.msk.msra.mxu3 %vm3427_vm14, %v6319_v52 }
 0x1f0   : > { %1966 = vmatmul.bf16.vlgmr.msrb.gmra.mxu1 %v4812_v58  ;;  %3444 = vmatpush.bf16.msk.msra.mxu0 %vm3443_vm0, %v6319_v52 }
 0x1f1   : > { %v1822_v40 = vpop.f32.mrf.mxu3  ;;  %3413 = vmatmul.msk.bf16.vlgmr.msrb.gmra.mxu2 %vm1623_vm7, %v6338_v12 }
 0x1f4   : > { %v1771_v20 = vpop.f32.mrf.mxu2  ;;  %v1675_v39 = vpop.f32.mrf.mxu0  ;;  %3446 = vmatpush.bf16.msk.msra.mxu0 %vm3445_vm13, %v6319_v52 }
 0x1f5   : > { %v1772_v5 = vadd.f32 %v1771_v20, %v1723_v41  ;;  %v1724_v38 = vpop.f32.mrf.mxu1 }
 0x1f6   : > { %1873 = vmatmul.bf16.gmra.mxu3 %v4893_v60  ;;  %v1725_v62 = vadd.f32 %v1724_v38, %v1675_v39 }
 0x1f7   : > { %v1821_v46 = vadd.f32 %v1820_v15, %v1772_v5 }
 0x1f9   : > { %2448 = vst [vmem:[%s4126_s8] sm:$0xff] %v1821_v46  ;;  %v1825_v44 = vpop.f32.mrf.mxu3 }
 0x1fc   : > { %v1773_v47 = vpop.f32.mrf.mxu2  ;;  %v1678_v4 = vpop.f32.mrf.mxu0 }
 0x1fd   : > { %v1774_v51 = vadd.f32 %v1773_v47, %v1725_v62  ;;  %v1727_v41 = vpop.f32.mrf.mxu1 }
 0x1ff   : > { %v1823_v20 = vadd.f32 %v1822_v40, %v1774_v51  ;;  %1922 = vmatmul.bf16.gmra.mxu0 %v4898_v31  ;;  %v1728_v40 = vadd.f32 %v1727_v41, %v1678_v4  ;;  %v6339_v51 = vld [vmem:[#allocation11_spill] sm:$0xff]  ;;  %v6340_v4 = vld [vmem:[#allocation12_spill] sm:$0xff] }
 0x200   : > { %1971 = vmatmul.bf16.gmra.mxu1 %v4902_v0  ;;  %vm1041_vm1 = vcmp.eq.s32.totalorder %v6339_v51, %v5073_v50  ;;  %vm1045_vm2 = vcmp.eq.s32.totalorder %v6340_v4, %v5073_v50 }
 0x201   : > { %2452 = vst [vmem:[%s4126_s8 + $0x20] sm:$0xff] %v1823_v20  ;;  %v1827_v15 = vpop.f32.mrf.mxu3  ;;  %3414 = vmatmul.msk.bf16.gmra.mxu2 %vm1623_vm7, %v4820_v57  ;;  %vm3459_vm3 = vmpackc.low %vm1045_vm2, %vm1041_vm1 }
 0x202   : > { %3460 = vmatpush.bf16.msk.msra.mxu1 %vm3459_vm3, %v6319_v52 }
 0x204   : > { %v1776_v39 = vpop.f32.mrf.mxu2  ;;  %v1680_v5 = vpop.f32.mrf.mxu0 }
 0x205   : > { %v1777_v38 = vadd.f32 %v1776_v39, %v1728_v40  ;;  %v1729_v46 = vpop.f32.mrf.mxu1 }
 0x206   : > { %1878 = vmatmul.bf16.gmra.mxu3 %v4929_v61  ;;  %v1730_v41 = vadd.f32 %v1729_v46, %v1680_v5  ;;  %v6343_v5 = vld [vmem:[#allocation16_spill] sm:$0xff] }
 0x207   : > { %v1826_v62 = vadd.f32 %v1825_v44, %v1777_v38  ;;  %v6341_v38 = vld [vmem:[#allocation41_spill] sm:$0xff]  ;;  %vm909_vm5 = vcmp.eq.s32.totalorder %v6343_v5, %v5073_v50 }
 0x209   : > { %2456 = vst [vmem:[%s4126_s8 + $0x40] sm:$0xff] %v1826_v62  ;;  %v1830_v47 = vpop.f32.mrf.mxu3  ;;  %v6342_v62 = vld [vmem:[#allocation15_spill] sm:$0xff] }
 0x20a   : > { %vm905_vm4 = vcmp.eq.s32.totalorder %v6342_v62, %v5073_v50 }
 0x20b   : > { %vm3429_vm8 = vmpackc.low %vm909_vm5, %vm905_vm4 }
 0x20c   : > { %v1778_v20 = vpop.f32.mrf.mxu2  ;;  %v1683_v37 = vpop.f32.mrf.mxu0  ;;  %3430 = vmatpush.bf16.msk.msra.mxu3 %vm3429_vm8, %v6319_v52 }
 0x20d   : > { %v1779_v40 = vadd.f32 %v1778_v20, %v1730_v41  ;;  %v1732_v39 = vpop.f32.mrf.mxu1 }
 0x20f   : > { %v1828_v36 = vadd.f32 %v1827_v15, %v1779_v40  ;;  %1927 = vmatmul.bf16.gmra.mxu0 %v4931_v42 }
 0x210   : > { %1976 = vmatmul.bf16.gmra.mxu1 %v4933_v49 }
 0x211   : > { %2460 = vst [vmem:[%s4126_s8 + $0x60] sm:$0xff] %v1828_v36  ;;  %v1832_v44 = vpop.f32.mrf.mxu3  ;;  %3415 = vmatmul.msk.bf16.gmra.mxu2 %vm1623_vm7, %v6341_v38  ;;  %v1733_v36 = vadd.f32 %v1732_v39, %v1683_v37  ;;  %v6344_v37 = vld [vmem:[#allocation19_spill] sm:$0xff]  ;;  %v6345_v39 = vld [vmem:[#allocation20_spill] sm:$0xff] }
 0x212   : > { %vm1033_vm14 = vcmp.eq.s32.totalorder %v6344_v37, %v5073_v50  ;;  %vm1037_vm15 = vcmp.eq.s32.totalorder %v6345_v39, %v5073_v50  ;;  %v6349_v39 = vld [vmem:[#allocation23_spill] sm:$0xff] }
 0x213   : > { %vm3461_vm0 = vmpackc.low %vm1037_vm15, %vm1033_vm14  ;;  %vm897_vm1 = vcmp.eq.s32.totalorder %v6349_v39, %v5073_v50  ;;  %v6354_v39 = vld [vmem:[#allocation27_spill] sm:$0xff] }
 0x214   : > { %v1781_v15 = vpop.f32.mrf.mxu2  ;;  %v1685_v46 = vpop.f32.mrf.mxu0  ;;  %3462 = vmatpush.bf16.msk.msra.mxu1 %vm3461_vm0, %v6319_v52  ;;  %vm1025_vm8 = vcmp.eq.s32.totalorder %v6354_v39, %v5073_v50 }
 0x215   : > { %v1782_v41 = vadd.f32 %v1781_v15, %v1733_v36  ;;  %v1734_v20 = vpop.f32.mrf.mxu1 }
 0x216   : > { %1883 = vmatmul.bf16.gmra.mxu3 %v4962_v45  ;;  %v1735_v56 = vadd.f32 %v1734_v20, %v1685_v46  ;;  %v6346_v45 = vld [vmem:[#allocation46_spill] sm:$0xff]  ;;  %v6350_v46 = vld [vmem:[#allocation24_spill] sm:$0xff] }
 0x217   : > { %v1831_v40 = vadd.f32 %v1830_v47, %v1782_v41  ;;  %v6347_v47 = vld [vmem:[#allocation47_spill] sm:$0xff]  ;;  %vm901_vm2 = vcmp.eq.s32.totalorder %v6350_v46, %v5073_v50 }
 0x218   : > { %vm3431_vm4 = vmpackc.low %vm901_vm2, %vm897_vm1 }
 0x219   : > { %2464 = vst [vmem:[%s4126_s8 + $0x80] sm:$0xff] %v1831_v40  ;;  %v1835_v55 = vpop.f32.mrf.mxu3  ;;  %v6348_v40 = vld [vmem:[#allocation44_spill] sm:$0xff]  ;;  %3432 = vmatpush.bf16.msk.msra.mxu3 %vm3431_vm4, %v6319_v52 }
 0x21c   : > { %v1783_v36 = vpop.f32.mrf.mxu2  ;;  %v1688_v15 = vpop.f32.mrf.mxu0 }
 0x21d   : > { %v1784_v48 = vadd.f32 %v1783_v36, %v1735_v56  ;;  %v1737_v43 = vpop.f32.mrf.mxu1  ;;  %v6351_v56 = vld [vmem:[#allocation25_spill] sm:$0xff] }
 0x21e   : > { %vm961_vm3 = vcmp.eq.s32.totalorder %v6351_v56, %v5073_v50 }
 0x21f   : > { %v1833_v38 = vadd.f32 %v1832_v44, %v1784_v48  ;;  %1932 = vmatmul.bf16.gmra.mxu0 %v6346_v45  ;;  %v6352_v48 = vld [vmem:[#allocation26_spill] sm:$0xff]  ;;  %v1738_v44 = vadd.f32 %v1737_v43, %v1688_v15  ;;  %v6355_v43 = vld [vmem:[#allocation28_spill] sm:$0xff] }
 0x220   : > { %1981 = vmatmul.bf16.gmra.mxu1 %v6347_v47  ;;  %vm965_vm5 = vcmp.eq.s32.totalorder %v6352_v48, %v5073_v50  ;;  %v6353_v47 = vld [vmem:[#allocation49_spill] sm:$0xff]  ;;  %vm1029_vm9 = vcmp.eq.s32.totalorder %v6355_v43, %v5073_v50 }
 0x221   : > { %2468 = vst [vmem:[%s4126_s8 + $0xa0] sm:$0xff] %v1833_v38  ;;  %v1837_v41 = vpop.f32.mrf.mxu3  ;;  %3416 = vmatmul.msk.bf16.gmra.mxu2 %vm1623_vm7, %v6348_v40  ;;  %vm3447_vm6 = vmpackc.low %vm965_vm5, %vm961_vm3  ;;  %v6359_v43 = vld [vmem:[#allocation29_spill] sm:$0xff] }
 0x222   : > { %3448 = vmatpush.bf16.msk.msra.mxu0 %vm3447_vm6, %v6319_v52  ;;  %vm3463_vm10 = vmpackc.low %vm1029_vm9, %vm1025_vm8  ;;  %vm889_vm11 = vcmp.eq.s32.totalorder %v6359_v43, %v5073_v50 }
 0x223   : > { %3464 = vmatpush.bf16.msk.msra.mxu1 %vm3463_vm10, %v6319_v52 }
 0x224   : > { %v1786_v38 = vpop.f32.mrf.mxu2  ;;  %v1690_v20 = vpop.f32.mrf.mxu0 }
 0x225   : > { %v1787_v36 = vadd.f32 %v1786_v38, %v1738_v44  ;;  %v1739_v40 = vpop.f32.mrf.mxu1 }
 0x226   : > { %1888 = vmatmul.bf16.gmra.mxu3 %v6353_v47  ;;  %v1740_v15 = vadd.f32 %v1739_v40, %v1690_v20  ;;  %v6356_v47 = vld [vmem:[#allocation50_spill] sm:$0xff]  ;;  %v6361_v20 = vld [vmem:[#allocation21_spill] sm:$0xff] }
 0x227   : > { %v1836_v46 = vadd.f32 %v1835_v55, %v1787_v36  ;;  %v6357_v55 = vld [vmem:[#allocation51_spill] sm:$0xff]  ;;  %v6358_v36 = vld [vmem:[#allocation48_spill] sm:$0xff]  ;;  %v6360_v40 = vld [vmem:[#allocation30_spill] sm:$0xff]  ;;  %vm1073_vm13 = vcmp.eq.s32.totalorder %v6361_v20, %v5073_v50 }
 0x228   : > { %vm893_vm12 = vcmp.eq.s32.totalorder %v6360_v40, %v5073_v50 }
 0x229   : > { %2472 = vst [vmem:[%s4126_s8 + $0xc0] sm:$0xff] %v1836_v46  ;;  %v1840_v56 = vpop.f32.mrf.mxu3  ;;  %vm3433_vm14 = vmpackc.low %vm893_vm12, %vm889_vm11 }
 0x22a   : > { %3434 = vmatpush.bf16.msk.msra.mxu3 %vm3433_vm14, %v6319_v52 }
 0x22c   : > { %v1788_v48 = vpop.f32.mrf.mxu2  ;;  %v1693_v45 = vpop.f32.mrf.mxu0 }
 0x22d   : > { %v1789_v44 = vadd.f32 %v1788_v48, %v1740_v15  ;;  %v1742_v38 = vpop.f32.mrf.mxu1  ;;  %v6364_v48 = vld [vmem:[#allocation32_spill] sm:$0xff] }
 0x22e   : > { %vm957_vm1 = vcmp.eq.s32.totalorder %v6364_v48, %v5073_v50  ;;  %v1743_v15 = vadd.f32 %v1742_v38, %v1693_v45  ;;  %v6366_v45 = vld [vmem:[#allocation33_spill] sm:$0xff]  ;;  %v6367_v38 = vld [vmem:[#allocation34_spill] sm:$0xff] }
 0x22f   : > { %v1838_v37 = vadd.f32 %v1837_v41, %v1789_v44  ;;  %1937 = vmatmul.bf16.gmra.mxu0 %v6356_v47  ;;  %v6362_v41 = vld [vmem:[#allocation22_spill] sm:$0xff]  ;;  %vm1017_vm4 = vcmp.eq.s32.totalorder %v6366_v45, %v5073_v50  ;;  %vm1021_vm5 = vcmp.eq.s32.totalorder %v6367_v38, %v5073_v50  ;;  %v6371_v38 = vld [vmem:[#allocation8_spill] sm:$0xff] }
 0x230   : > { %1986 = vmatmul.bf16.gmra.mxu1 %v6357_v55  ;;  %vm1077_vm15 = vcmp.eq.s32.totalorder %v6362_v41, %v5073_v50  ;;  %v6365_v41 = vld [vmem:[#allocation53_spill] sm:$0xff]  ;;  %vm3465_vm6 = vmpackc.low %vm1021_vm5, %vm1017_vm4  ;;  %vm881_vm8 = vcmp.eq.s32.totalorder %v6371_v38, %v5073_v50  ;;  %v6376_v38 = vld [vmem:[#allocation39_spill] sm:$0xff] }
 0x231   : > { %2476 = vst [vmem:[%s4126_s8 + $0xe0] sm:$0xff] %v1838_v37  ;;  %v1842_v46 = vpop.f32.mrf.mxu3  ;;  %3417 = vmatmul.msk.bf16.gmra.mxu2 %vm1623_vm7, %v6358_v36  ;;  %v6363_v37 = vld [vmem:[#allocation31_spill] sm:$0xff]  ;;  %vm3473_vm2 = vmpackc.low %vm1077_vm15, %vm1073_vm13  ;;  %3466 = vmatpush.bf16.msk.msra.mxu1 %vm3465_vm6, %v6319_v52  ;;  %vm1009_vm14 = vcmp.eq.s32.totalorder %v6376_v38, %v5073_v50 }
 0x232   : > { %vm953_vm0 = vcmp.eq.s32.totalorder %v6363_v37, %v5073_v50  ;;  %3474 = vmatpush.bf16.msk.msra.mxu2 %vm3473_vm2, %v6319_v52 }
 0x233   : > { %vm3449_vm3 = vmpackc.low %vm957_vm1, %vm953_vm0 }
 0x234   : > { %v1791_v44 = vpop.f32.mrf.mxu2  ;;  %v1695_v36 = vpop.f32.mrf.mxu0  ;;  %3450 = vmatpush.bf16.msk.msra.mxu0 %vm3449_vm3, %v6319_v52 }
 0x235   : > { %v1792_v20 = vadd.f32 %v1791_v44, %v1743_v15  ;;  %v1744_v55 = vpop.f32.mrf.mxu1 }
 0x236   : > { %1893 = vmatmul.bf16.gmra.mxu3 %v6365_v41  ;;  %v1745_v48 = vadd.f32 %v1744_v55, %v1695_v36  ;;  %v6368_v41 = vld [vmem:[#allocation54_spill] sm:$0xff]  ;;  %v6372_v55 = vld [vmem:[#allocation36_spill] sm:$0xff]  ;;  %v6373_v36 = vld [vmem:[#allocation37_spill] sm:$0xff] }
 0x237   : > { %v1841_v37 = vadd.f32 %v1840_v56, %v1792_v20  ;;  %v6369_v56 = vld [vmem:[#allocation55_spill] sm:$0xff]  ;;  %vm885_vm9 = vcmp.eq.s32.totalorder %v6372_v55, %v5073_v50  ;;  %vm945_vm10 = vcmp.eq.s32.totalorder %v6373_v36, %v5073_v50 }
 0x238   : > { %vm3435_vm11 = vmpackc.low %vm885_vm9, %vm881_vm8 }
 0x239   : > { %2480 = vst [vmem:[%s4126_s8 + $0x100] sm:$0xff] %v1841_v37  ;;  %v1845_v40 = vpop.f32.mrf.mxu3  ;;  %v6370_v37 = vld [vmem:[#allocation52_spill] sm:$0xff]  ;;  %3436 = vmatpush.bf16.msk.msra.mxu3 %vm3435_vm11, %v6319_v52 }
 0x23c   : > { %v1793_v15 = vpop.f32.mrf.mxu2  ;;  %v1698_v44 = vpop.f32.mrf.mxu0 }
 0x23d   : > { %v1794_v43 = vadd.f32 %v1793_v15, %v1745_v48  ;;  %v1747_v47 = vpop.f32.mrf.mxu1 }
 0x23f   : > { %v1843_v39 = vadd.f32 %v1842_v46, %v1794_v43  ;;  %1942 = vmatmul.bf16.gmra.mxu0 %v6368_v41  ;;  %v6374_v43 = vld [vmem:[#allocation38_spill] sm:$0xff]  ;;  %v1748_v46 = vadd.f32 %v1747_v47, %v1698_v44  ;;  %v6377_v47 = vld [vmem:[#allocation40_spill] sm:$0xff] }
 0x240   : > { %1991 = vmatmul.bf16.gmra.mxu1 %v6369_v56  ;;  %vm949_vm12 = vcmp.eq.s32.totalorder %v6374_v43, %v5073_v50  ;;  %v6375_v56 = vld [vmem:[#allocation57_spill] sm:$0xff]  ;;  %vm1013_vm15 = vcmp.eq.s32.totalorder %v6377_v47, %v5073_v50  ;;  %v6381_v50 = vld [vmem:[#allocation4_spill] sm:$0xff] }
 0x241   : > { %2484 = vst [vmem:[%s4126_s8 + $0x120] sm:$0xff] %v1843_v39  ;;  %v1847_v20 = vpop.f32.mrf.mxu3  ;;  %3418 = vmatmul.msk.bf16.gmra.mxu2 %vm1623_vm7, %v6370_v37  ;;  %vm3451_vm13 = vmpackc.low %vm949_vm12, %vm945_vm10  ;;  %v745_v47 = vadd.s32 384, %v6381_v50 }
 0x242   : > { %3452 = vmatpush.bf16.msk.msra.mxu0 %vm3451_vm13, %v6319_v52  ;;  %vm3467_vm0 = vmpackc.low %vm1013_vm15, %vm1009_vm14 }
 0x243   : > { %3468 = vmatpush.bf16.msk.msra.mxu1 %vm3467_vm0, %v6319_v52 }
 0x244   : > { %v1796_v39 = vpop.f32.mrf.mxu2  ;;  %v1700_v48 = vpop.f32.mrf.mxu0 }
 0x245   : > { %v1797_v15 = vadd.f32 %v1796_v39, %v1748_v46  ;;  %v1749_v37 = vpop.f32.mrf.mxu1 }
 0x246   : > { %1898 = vmatmul.bf16.gmra.mxu3 %v6375_v56  ;;  %v1750_v44 = vadd.f32 %v1749_v37, %v1700_v48  ;;  %v6378_v56 = vld [vmem:[#allocation58_spill] sm:$0xff]  ;;  %v6382_v48 = vld [vmem:[#allocation5_spill] sm:$0xff] }
 0x247   : > { %v1846_v55 = vadd.f32 %v1845_v40, %v1797_v15  ;;  %v6379_v40 = vld [vmem:[#allocation59_spill] sm:$0xff]  ;;  %v6380_v15 = vld [vmem:[#allocation56_spill] sm:$0xff]  ;;  %v751_v38 = vadd.s32 %v6382_v48, %v745_v47 }
 0x249   : > { %2488 = vst [vmem:[%s4126_s8 + $0x140] sm:$0xff] %v1846_v55  ;;  %v1850_v36 = vpop.f32.mrf.mxu3 }
 0x24c   : > { %v1798_v43 = vpop.f32.mrf.mxu2  ;;  %v1703_v41 = vpop.f32.mrf.mxu0 }
 0x24d   : > { %v1799_v46 = vadd.f32 %v1798_v43, %v1750_v44  ;;  %v1752_v39 = vpop.f32.mrf.mxu1 }
 0x24e   : > { %v1753_v37 = vadd.f32 %v1752_v39, %v1703_v41 }
 0x24f   : > { %v1848_v45 = vadd.f32 %v1847_v20, %v1799_v46  ;;  %1947 = vmatmul.bf16.gmra.mxu0 %v6378_v56  ;;  %v755_v20 = vcvt.s32.f32 %v751_v38 }
 0x250   : > { %1996 = vmatmul.bf16.gmra.mxu1 %v6379_v40  ;;  %v6383_v40 = vld [vmem:[#allocation6_spill] sm:$0xff] }
 0x251   : > { %2492 = vst [vmem:[%s4126_s8 + $0x160] sm:$0xff] %v1848_v45  ;;  %v1852_v55 = vpop.f32.mrf.mxu3  ;;  %3419 = vmatmul.msk.bf16.gmra.mxu2 %vm1623_vm7, %v6380_v15  ;;  %v759_v56 = vadd.f32 0.5, %v755_v20 }
 0x253   : > { %v770_v62 = vmul.f32 %v6383_v40, %v759_v56 }
 0x254   : > { %v1801_v49 = vpop.f32.mrf.mxu2  ;;  %v1705_v5 = vpop.f32.mrf.mxu0 }
 0x255   : > { %v1802_v43 = vadd.f32 %v1801_v49, %v1753_v37  ;;  %v1754_v44 = vpop.f32.mrf.mxu1  ;;  %v774_v42 = vfloor.f32 %v770_v62 }
 0x256   : > { %1903 = vmatmul.bf16.gmra.mxu3 %v5064_v27  ;;  %v1755_v15 = vadd.f32 %v1754_v44, %v1705_v5 }
 0x257   : > { %v1851_v46 = vadd.f32 %v1850_v36, %v1802_v43  ;;  %v778_v48 = vmul.f32 42.0, %v774_v42  ;;  %v786_v4 = vadd.f32 0.5, %v774_v42 }
 0x259   : > { %2496 = vst [vmem:[%s4126_s8 + $0x180] sm:$0xff] %v1851_v46  ;;  %v1855_v45 = vpop.f32.mrf.mxu3  ;;  %v782_v38 = vsub.f32 %v759_v56, %v778_v48  ;;  %v797_v36 = vmul.f32 %v6337_v6, %v786_v4 }
 0x25b   : > { %v801_v62 = vfloor.f32 %v797_v36  ;;  %v809_v5 = vmul.f32 %v6337_v6, %v782_v38 }
 0x25c   : > { %v1803_v50 = vpop.f32.mrf.mxu2  ;;  %v1708_v41 = vpop.f32.mrf.mxu0 }
 0x25d   : > { %v1804_v39 = vadd.f32 %v1803_v50, %v1755_v15  ;;  %v1757_v47 = vpop.f32.mrf.mxu1  ;;  %v805_v15 = vmul.f32 21.0, %v801_v62  ;;  %v813_v42 = vfloor.f32 %v809_v5 }
 0x25e   : > { %v1758_v40 = vadd.f32 %v1757_v47, %v1708_v41 }
 0x25f   : > { %v1853_v49 = vadd.f32 %v1852_v55, %v1804_v39  ;;  %1952 = vmatmul.bf16.gmra.mxu0 %v5066_v63  ;;  %v817_v20 = vadd.f32 %v813_v42, %v805_v15 }
 0x260   : > { %2001 = vmatmul.bf16.gmra.mxu1 %v5068_v59 }
 0x261   : > { %2500 = vst [vmem:[%s4126_s8 + $0x1a0] sm:$0xff] %v1853_v49  ;;  %v1857_v37 = vpop.f32.mrf.mxu3  ;;  %3420 = vmatmul.msk.bf16.gmra.mxu2 %vm1623_vm7, %v5058_v14  ;;  %vm3644_vm1 = vcmp.lt.s32.totalorder %v817_v20, 0  ;;  %v3645_v46 = vceil.f32 %v817_v20  ;;  %v3646_v50 = vfloor.f32 %v817_v20  ;;  %v6387_v20 = vld [vmem:[#allocation42_spill] sm:$0xff] }
 0x263   : > { %v3647_v48 = vsel %vm3644_vm1, %v3645_v46, %v3646_v50  ;;  %v6390_v50 = vld [vmem:[#allocation43_spill] sm:$0xff] }
 0x264   : > { %v1806_v55 = vpop.f32.mrf.mxu2  ;;  %v1710_v43 = vpop.f32.mrf.mxu0  ;;  %v5278_v49 = vcvt.f32.s32 %v3647_v48  ;;  %v6391_v48 = vld [vmem:[#allocation41_spill] sm:$0xff] }
 0x265   : > { %v1807_v44 = vadd.f32 %v1806_v55, %v1758_v40  ;;  %v1759_v56 = vpop.f32.mrf.mxu1 }
 0x266   : > { %2064 = vmatmul.bf16.vlgmr.msra.gmra.mxu3 %v4806_v54  ;;  %v1760_v6 = vadd.f32 %v1759_v56, %v1710_v43  ;;  %vm938_vm2 = vcmp.eq.s32.totalorder %v4286_v1, %v5278_v49  ;;  %vm942_vm3 = vcmp.eq.s32.totalorder %v4289_v2, %v5278_v49  ;;  %vm1098_vm4 = vcmp.eq.s32.totalorder %v4304_v10, %v5278_v49 }
 0x267   : > { %v1856_v4 = vadd.f32 %v1855_v45, %v1807_v44  ;;  %vm1102_vm5 = vcmp.eq.s32.totalorder %v4307_v11, %v5278_v49  ;;  %vm3483_vm6 = vmpackc.low %vm942_vm3, %vm938_vm2  ;;  %v1322_v62 = vsel %vm1098_vm4, 1.0, %v6303_v53  ;;  %vm1002_vm8 = vcmp.eq.s32.totalorder %v4292_v3, %v5278_v49 }
 0x268   : > { %v1326_v5 = vsel %vm1102_vm5, 1.0, %v6303_v53  ;;  %3484 = vmatpush.bf16.msk.msrb.mxu3 %vm3483_vm6, %v6319_v52  ;;  %vm1006_vm9 = vcmp.eq.s32.totalorder %v4295_v7, %v5278_v49  ;;  %vm1066_vm10 = vcmp.eq.s32.totalorder %v4298_v8, %v5278_v49  ;;  %vm1070_vm12 = vcmp.eq.s32.totalorder %v4301_v9, %v5278_v49 }
 0x269   : > { %2504 = vst [vmem:[%s4126_s8 + $0x1c0] sm:$0xff] %v1856_v4  ;;  %v1869_v39 = vpop.f32.mrf.mxu3  ;;  %v1438_v1 = vpack.c.bf16 %v1326_v5, %v1322_v62  ;;  %vm3499_vm11 = vmpackc.low %vm1006_vm9, %vm1002_vm8  ;;  %vm930_vm13 = vcmp.eq.s32.totalorder %v4310_v13, %v5278_v49  ;;  %vm934_vm15 = vcmp.eq.s32.totalorder %v4313_v16, %v5278_v49  ;;  %vm994_vm0 = vcmp.eq.s32.totalorder %v4316_v17, %v5278_v49  ;;  %v6388_v4 = vld [vmem:[#allocation15_spill] sm:$0xff] }
 0x26a   : > { %3500 = vmatpush.bf16.msk.msrb.mxu0 %vm3499_vm11, %v6319_v52  ;;  %vm3515_vm14 = vmpackc.low %vm1070_vm12, %vm1066_vm10  ;;  %vm998_vm2 = vcmp.eq.s32.totalorder %v4319_v18, %v5278_v49  ;;  %vm1058_vm3 = vcmp.eq.s32.totalorder %v4322_v19, %v5278_v49  ;;  %vm1062_vm4 = vcmp.eq.s32.totalorder %v4325_v22, %v5278_v49  ;;  %vm922_vm6 = vcmp.eq.s32.totalorder %v4330_v24, %v5278_v49 }
 0x26b   : > { %v1662_v3 = vand.u32 %v4327_v23, %v1438_v1  ;;  %3516 = vmatpush.bf16.msk.msrb.mxu1 %vm3515_vm14, %v6319_v52  ;;  %vm3485_vm1 = vmpackc.low %vm934_vm15, %vm930_vm13  ;;  %vm926_vm8 = vcmp.eq.s32.totalorder %v4333_v25, %v5278_v49  ;;  %vm1090_vm9 = vcmp.eq.s32.totalorder %v4350_v32, %v5278_v49  ;;  %vm1094_vm11 = vcmp.eq.s32.totalorder %v4353_v33, %v5278_v49  ;;  %v6396_v1 = vld [vmem:[#allocation45_spill] sm:$0xff] }
 0x26c   : > { %v1808_v41 = vpop.f32.mrf.mxu2  ;;  %v1918_v47 = vpop.f32.mrf.mxu0  ;;  %3486 = vmatpush.bf16.msk.msrb.mxu3 %vm3485_vm1, %v6319_v52  ;;  %vm3501_vm5 = vmpackc.low %vm998_vm2, %vm994_vm0  ;;  %vm986_vm12 = vcmp.eq.s32.totalorder %v4336_v26, %v5278_v49  ;;  %vm990_vm13 = vcmp.eq.s32.totalorder %v4339_v28, %v5278_v49  ;;  %vm1050_vm1 = vcmp.eq.s32.totalorder %v4342_v29, %v5278_v49  ;;  %vm1054_vm2 = vcmp.eq.s32.totalorder %v4345_v30, %v5278_v49  ;;  %v6384_v29 = vld [vmem:[#allocation9_spill] sm:$0xff]  ;;  %v6385_v30 = vld [vmem:[#allocation10_spill] sm:$0xff] }
 0x26d   : > { %v1809_v45 = vadd.f32 %v1808_v41, %v1760_v6  ;;  %v1919_v38 = vadd.f32 %v1918_v47, %v1869_v39  ;;  %v1967_v36 = vpop.f32.mrf.mxu1  ;;  %2403 = vmatpush.bf16.msrb.mxu2 %v1662_v3  ;;  %vm3517_vm10 = vmpackc.low %vm1062_vm4, %vm1058_vm3  ;;  %vm914_vm4 = vcmp.eq.s32.totalorder %v4356_v34, %v5278_v49  ;;  %v6392_v6 = vld [vmem:[#allocation13_spill] sm:$0xff]  ;;  %v6393_v41 = vld [vmem:[#allocation14_spill] sm:$0xff] }
 0x26e   : > { %3502 = vmatpush.bf16.msk.msrb.mxu0 %vm3501_vm5, %v6319_v52  ;;  %vm3487_vm14 = vmpackc.low %vm926_vm8, %vm922_vm6  ;;  %vm918_vm5 = vcmp.eq.s32.totalorder %v4359_v35, %v5278_v49  ;;  %vm978_vm8 = vcmp.eq.s32.totalorder %v6384_v29, %v5278_v49  ;;  %v6394_v47 = vld [vmem:[#allocation17_spill] sm:$0xff]  ;;  %v6398_v3 = vld [vmem:[#allocation20_spill] sm:$0xff] }
 0x26f   : > { %v1858_v2 = vadd.f32 %v1857_v37, %v1809_v45  ;;  %v1968_v10 = vadd.f32 %v1967_v36, %v1919_v38  ;;  %2113 = vmatmul.bf16.vlgmr.msra.gmra.mxu0 %v4809_v21  ;;  %3518 = vmatpush.bf16.msk.msrb.mxu1 %vm3517_vm10, %v6319_v52  ;;  %vm3531_vm15 = vmpackc.low %vm1094_vm11, %vm1090_vm9  ;;  %vm982_vm9 = vcmp.eq.s32.totalorder %v6385_v30, %v5278_v49  ;;  %v6386_v37 = vld [vmem:[#allocation12_spill] sm:$0xff]  ;;  %v6395_v45 = vld [vmem:[#allocation18_spill] sm:$0xff] }
 0x270   : > { %2162 = vmatmul.bf16.vlgmr.msra.gmra.mxu1 %v4812_v58  ;;  %vm3503_vm0 = vmpackc.low %vm990_vm13, %vm986_vm12  ;;  %3488 = vmatpush.bf16.msk.msrb.mxu3 %vm3487_vm14, %v6319_v52  ;;  %vm1042_vm11 = vcmp.eq.s32.totalorder %v6339_v51, %v5278_v49  ;;  %vm1046_vm12 = vcmp.eq.s32.totalorder %v6386_v37, %v5278_v49  ;;  %vm906_vm14 = vcmp.eq.s32.totalorder %v6388_v4, %v5278_v49  ;;  %v6389_v51 = vld [vmem:[#allocation16_spill] sm:$0xff]  ;;  %v6405_v29 = vld [vmem:[#allocation26_spill] sm:$0xff] }
 0x271   : > { %2508 = vst [vmem:[%s4126_s8 + $0x1e0] sm:$0xff] %v1858_v2  ;;  %v1871_v7 = vpop.f32.mrf.mxu3  ;;  %3475 = vmatmul.msk.bf16.vlgmr.msra.gmra.mxu2 %vm1623_vm7, %v6338_v12  ;;  %vm3519_vm3 = vmpackc.low %vm1054_vm2, %vm1050_vm1  ;;  %vm1082_vm1 = vcmp.eq.s32.totalorder %v6392_v6, %v5278_v49  ;;  %vm1086_vm2 = vcmp.eq.s32.totalorder %v6393_v41, %v5278_v49  ;;  %v6407_v37 = vld [vmem:[#allocation27_spill] sm:$0xff] }
 0x272   : > { %3532 = vmatpush.bf16.msk.msrb.mxu2 %vm3531_vm15, %v6319_v52  ;;  %3504 = vmatpush.bf16.msk.msrb.mxu0 %vm3503_vm0, %v6319_v52  ;;  %vm3489_vm6 = vmpackc.low %vm918_vm5, %vm914_vm4  ;;  %vm910_vm15 = vcmp.eq.s32.totalorder %v6389_v51, %v5278_v49  ;;  %vm974_vm5 = vcmp.eq.s32.totalorder %v6395_v45, %v5278_v49  ;;  %v6409_v51 = vld [vmem:[#allocation50_spill] sm:$0xff]  ;;  %v6412_v41 = vld [vmem:[#allocation51_spill] sm:$0xff] }
 0x273   : > { %3520 = vmatpush.bf16.msk.msrb.mxu1 %vm3519_vm3, %v6319_v52  ;;  %vm3505_vm10 = vmpackc.low %vm982_vm9, %vm978_vm8  ;;  %vm970_vm3 = vcmp.eq.s32.totalorder %v6394_v47, %v5278_v49  ;;  %vm1038_vm9 = vcmp.eq.s32.totalorder %v6398_v3, %v5278_v49  ;;  %v6413_v45 = vld [vmem:[#allocation48_spill] sm:$0xff] }
 0x274   : > { %v2016_v8 = vpop.f32.mrf.mxu2  ;;  %v1920_v9 = vpop.f32.mrf.mxu0  ;;  %3490 = vmatpush.bf16.msk.msrb.mxu3 %vm3489_vm6, %v6319_v52  ;;  %vm3521_vm13 = vmpackc.low %vm1046_vm12, %vm1042_vm11 }
 0x275   : > { %v2017_v11 = vadd.f32 %v2016_v8, %v1968_v10  ;;  %v1969_v13 = vpop.f32.mrf.mxu1  ;;  %v1921_v16 = vadd.f32 %v1920_v9, %v1871_v7  ;;  %vm3491_vm0 = vmpackc.low %vm910_vm15, %vm906_vm14  ;;  %v6397_v10 = vld [vmem:[#allocation19_spill] sm:$0xff]  ;;  %vm966_vm15 = vcmp.eq.s32.totalorder %v6405_v29, %v5278_v49  ;;  %v6421_v29 = vld [vmem:[#allocation54_spill] sm:$0xff] }
 0x276   : > { %2069 = vmatmul.bf16.gmra.mxu3 %v4893_v60  ;;  %3506 = vmatpush.bf16.msk.msrb.mxu0 %vm3505_vm10, %v6319_v52  ;;  %vm3533_vm4 = vmpackc.low %vm1086_vm2, %vm1082_vm1  ;;  %vm1034_vm8 = vcmp.eq.s32.totalorder %v6397_v10, %v5278_v49  ;;  %vm1026_vm1 = vcmp.eq.s32.totalorder %v6407_v37, %v5278_v49  ;;  %v6425_v37 = vld [vmem:[#allocation52_spill] sm:$0xff] }
 0x277   : > { %2449 = vst [vmem:[%s4126_s8 + $0x8] sm:$0xff] %v2017_v11  ;;  %v1970_v18 = vadd.f32 %v1969_v13, %v1921_v16  ;;  %3522 = vmatpush.bf16.msk.msrb.mxu1 %vm3521_vm13, %v6319_v52  ;;  %3534 = vmatpush.bf16.msk.msrb.mxu2 %vm3533_vm4, %v6319_v52  ;;  %vm3507_vm6 = vmpackc.low %vm974_vm5, %vm970_vm3 }
 0x278   : > { %3492 = vmatpush.bf16.msk.msrb.mxu3 %vm3491_vm0, %v6319_v52  ;;  %vm3523_vm10 = vmpackc.low %vm1038_vm9, %vm1034_vm8 }
 0x279   : > { %v1874_v17 = vpop.f32.mrf.mxu3 }
 0x27a   : > { %3508 = vmatpush.bf16.msk.msrb.mxu0 %vm3507_vm6, %v6319_v52 }
 0x27b   : > { %3524 = vmatpush.bf16.msk.msrb.mxu1 %vm3523_vm10, %v6319_v52 }
 0x27c   : > { %v2018_v19 = vpop.f32.mrf.mxu2  ;;  %v1923_v22 = vpop.f32.mrf.mxu0 }
 0x27d   : > { %v2019_v23 = vadd.f32 %v2018_v19, %v1970_v18  ;;  %v1924_v24 = vadd.f32 %v1923_v22, %v1874_v17  ;;  %v1972_v25 = vpop.f32.mrf.mxu1  ;;  %v6399_v18 = vld [vmem:[#allocation46_spill] sm:$0xff]  ;;  %v6400_v19 = vld [vmem:[#allocation23_spill] sm:$0xff]  ;;  %v6401_v22 = vld [vmem:[#allocation24_spill] sm:$0xff] }
 0x27e   : > { %vm898_vm11 = vcmp.eq.s32.totalorder %v6400_v19, %v5278_v49  ;;  %vm902_vm12 = vcmp.eq.s32.totalorder %v6401_v22, %v5278_v49 }
 0x27f   : > { %2453 = vst [vmem:[%s4126_s8 + $0x28] sm:$0xff] %v2019_v23  ;;  %2118 = vmatmul.bf16.gmra.mxu0 %v4898_v31  ;;  %v1973_v26 = vadd.f32 %v1972_v25, %v1924_v24  ;;  %v6402_v23 = vld [vmem:[#allocation47_spill] sm:$0xff]  ;;  %vm3493_vm13 = vmpackc.low %vm902_vm12, %vm898_vm11 }
 0x280   : > { %2167 = vmatmul.bf16.gmra.mxu1 %v4902_v0  ;;  %3494 = vmatpush.bf16.msk.msrb.mxu3 %vm3493_vm13, %v6319_v52 }
 0x281   : > { %v1876_v28 = vpop.f32.mrf.mxu3  ;;  %3476 = vmatmul.msk.bf16.gmra.mxu2 %vm1623_vm7, %v4820_v57 }
 0x284   : > { %v2021_v32 = vpop.f32.mrf.mxu2  ;;  %v1925_v33 = vpop.f32.mrf.mxu0 }
 0x285   : > { %v2022_v34 = vadd.f32 %v2021_v32, %v1973_v26  ;;  %v1974_v35 = vpop.f32.mrf.mxu1  ;;  %v1926_v53 = vadd.f32 %v1925_v33, %v1876_v28  ;;  %v6403_v26 = vld [vmem:[#allocation44_spill] sm:$0xff]  ;;  %v6404_v28 = vld [vmem:[#allocation25_spill] sm:$0xff] }
 0x286   : > { %2074 = vmatmul.bf16.gmra.mxu3 %v4929_v61  ;;  %vm962_vm14 = vcmp.eq.s32.totalorder %v6404_v28, %v5278_v49 }
 0x287   : > { %2457 = vst [vmem:[%s4126_s8 + $0x48] sm:$0xff] %v2022_v34  ;;  %v1975_v15 = vadd.f32 %v1974_v35, %v1926_v53  ;;  %vm3509_vm0 = vmpackc.low %vm966_vm15, %vm962_vm14  ;;  %v6406_v35 = vld [vmem:[#allocation49_spill] sm:$0xff] }
 0x288   : > { %3510 = vmatpush.bf16.msk.msrb.mxu0 %vm3509_vm0, %v6319_v52 }
 0x289   : > { %v1879_v40 = vpop.f32.mrf.mxu3 }
 0x28c   : > { %v2023_v42 = vpop.f32.mrf.mxu2  ;;  %v1928_v55 = vpop.f32.mrf.mxu0 }
 0x28d   : > { %v2024_v43 = vadd.f32 %v2023_v42, %v1975_v15  ;;  %v1929_v44 = vadd.f32 %v1928_v55, %v1879_v40  ;;  %v1977_v56 = vpop.f32.mrf.mxu1  ;;  %v6408_v40 = vld [vmem:[#allocation28_spill] sm:$0xff] }
 0x28e   : > { %vm1030_vm2 = vcmp.eq.s32.totalorder %v6408_v40, %v5278_v49  ;;  %v6426_v40 = vld [vmem:[#allocation37_spill] sm:$0xff] }
 0x28f   : > { %2461 = vst [vmem:[%s4126_s8 + $0x68] sm:$0xff] %v2024_v43  ;;  %2123 = vmatmul.bf16.gmra.mxu0 %v6387_v20  ;;  %v1978_v46 = vadd.f32 %v1977_v56, %v1929_v44  ;;  %vm3525_vm3 = vmpackc.low %vm1030_vm2, %vm1026_vm1 }
 0x290   : > { %2172 = vmatmul.bf16.gmra.mxu1 %v6390_v50 }
 0x291   : > { %v1881_v39 = vpop.f32.mrf.mxu3  ;;  %3477 = vmatmul.msk.bf16.gmra.mxu2 %vm1623_vm7, %v6391_v48  ;;  %3526 = vmatpush.bf16.msk.msrb.mxu1 %vm3525_vm3, %v6319_v52 }
 0x294   : > { %v2026_v38 = vpop.f32.mrf.mxu2  ;;  %v1930_v36 = vpop.f32.mrf.mxu0 }
 0x295   : > { %v2027_v62 = vadd.f32 %v2026_v38, %v1978_v46  ;;  %v1979_v5 = vpop.f32.mrf.mxu1  ;;  %v1931_v2 = vadd.f32 %v1930_v36, %v1881_v39  ;;  %v6410_v46 = vld [vmem:[#allocation29_spill] sm:$0xff]  ;;  %v6411_v39 = vld [vmem:[#allocation30_spill] sm:$0xff] }
 0x296   : > { %2079 = vmatmul.bf16.gmra.mxu3 %v6396_v1  ;;  %vm890_vm4 = vcmp.eq.s32.totalorder %v6410_v46, %v5278_v49  ;;  %vm894_vm5 = vcmp.eq.s32.totalorder %v6411_v39, %v5278_v49  ;;  %v6414_v38 = vld [vmem:[#allocation21_spill] sm:$0xff]  ;;  %v6415_v36 = vld [vmem:[#allocation22_spill] sm:$0xff]  ;;  %v6429_v46 = vld [vmem:[#allocation39_spill] sm:$0xff] }
 0x297   : > { %2465 = vst [vmem:[%s4126_s8 + $0x88] sm:$0xff] %v2027_v62  ;;  %v1980_v8 = vadd.f32 %v1979_v5, %v1931_v2  ;;  %vm3495_vm6 = vmpackc.low %vm894_vm5, %vm890_vm4  ;;  %vm1074_vm8 = vcmp.eq.s32.totalorder %v6414_v38, %v5278_v49  ;;  %vm1078_vm9 = vcmp.eq.s32.totalorder %v6415_v36, %v5278_v49  ;;  %v6416_v62 = vld [vmem:[#allocation31_spill] sm:$0xff]  ;;  %v6417_v5 = vld [vmem:[#allocation32_spill] sm:$0xff]  ;;  %vm946_vm4 = vcmp.eq.s32.totalorder %v6426_v40, %v5278_v49 }
 0x298   : > { %3496 = vmatpush.bf16.msk.msrb.mxu3 %vm3495_vm6, %v6319_v52  ;;  %vm954_vm10 = vcmp.eq.s32.totalorder %v6416_v62, %v5278_v49  ;;  %vm3535_vm11 = vmpackc.low %vm1078_vm9, %vm1074_vm8  ;;  %vm958_vm12 = vcmp.eq.s32.totalorder %v6417_v5, %v5278_v49  ;;  %vm1010_vm8 = vcmp.eq.s32.totalorder %v6429_v46, %v5278_v49  ;;  %v6430_v39 = vld [vmem:[#allocation40_spill] sm:$0xff] }
 0x299   : > { %v1884_v7 = vpop.f32.mrf.mxu3  ;;  %3536 = vmatpush.bf16.msk.msrb.mxu2 %vm3535_vm11, %v6319_v52  ;;  %vm3511_vm13 = vmpackc.low %vm958_vm12, %vm954_vm10  ;;  %vm1014_vm9 = vcmp.eq.s32.totalorder %v6430_v39, %v5278_v49 }
 0x29a   : > { %3512 = vmatpush.bf16.msk.msrb.mxu0 %vm3511_vm13, %v6319_v52  ;;  %vm3529_vm10 = vmpackc.low %vm1014_vm9, %vm1010_vm8 }
 0x29c   : > { %v2028_v9 = vpop.f32.mrf.mxu2  ;;  %v1933_v11 = vpop.f32.mrf.mxu0 }
 0x29d   : > { %v2029_v13 = vadd.f32 %v2028_v9, %v1980_v8  ;;  %v1934_v16 = vadd.f32 %v1933_v11, %v1884_v7  ;;  %v1982_v17 = vpop.f32.mrf.mxu1  ;;  %v6418_v8 = vld [vmem:[#allocation53_spill] sm:$0xff] }
 0x29e   : > { %v6419_v11 = vld [vmem:[#allocation33_spill] sm:$0xff] }
 0x29f   : > { %2469 = vst [vmem:[%s4126_s8 + $0xa8] sm:$0xff] %v2029_v13  ;;  %2128 = vmatmul.bf16.gmra.mxu0 %v6399_v18  ;;  %v1983_v24 = vadd.f32 %v1982_v17, %v1934_v16  ;;  %vm1018_vm14 = vcmp.eq.s32.totalorder %v6419_v11, %v5278_v49  ;;  %v6420_v13 = vld [vmem:[#allocation34_spill] sm:$0xff]  ;;  %v6433_v11 = vld [vmem:[#allocation56_spill] sm:$0xff] }
 0x2a0   : > { %2177 = vmatmul.bf16.gmra.mxu1 %v6402_v23  ;;  %vm1022_vm15 = vcmp.eq.s32.totalorder %v6420_v13, %v5278_v49 }
 0x2a1   : > { %v1886_v25 = vpop.f32.mrf.mxu3  ;;  %3478 = vmatmul.msk.bf16.gmra.mxu2 %vm1623_vm7, %v6403_v26  ;;  %vm3527_vm0 = vmpackc.low %vm1022_vm15, %vm1018_vm14 }
 0x2a2   : > { %3528 = vmatpush.bf16.msk.msrb.mxu1 %vm3527_vm0, %v6319_v52 }
 0x2a4   : > { %v2031_v30 = vpop.f32.mrf.mxu2  ;;  %v1935_v32 = vpop.f32.mrf.mxu0 }
 0x2a5   : > { %v2032_v33 = vadd.f32 %v2031_v30, %v1983_v24  ;;  %v1984_v34 = vpop.f32.mrf.mxu1  ;;  %v1936_v53 = vadd.f32 %v1935_v32, %v1886_v25  ;;  %v6422_v30 = vld [vmem:[#allocation8_spill] sm:$0xff] }
 0x2a6   : > { %2084 = vmatmul.bf16.gmra.mxu3 %v6406_v35  ;;  %vm882_vm1 = vcmp.eq.s32.totalorder %v6422_v30, %v5278_v49  ;;  %v6423_v32 = vld [vmem:[#allocation36_spill] sm:$0xff]  ;;  %3530 = vmatpush.bf16.msk.msrb.mxu1 %vm3529_vm10, %v6319_v52 }
 0x2a7   : > { %2473 = vst [vmem:[%s4126_s8 + $0xc8] sm:$0xff] %v2032_v33  ;;  %v1985_v42 = vadd.f32 %v1984_v34, %v1936_v53  ;;  %vm886_vm2 = vcmp.eq.s32.totalorder %v6423_v32, %v5278_v49  ;;  %v6424_v33 = vld [vmem:[#allocation55_spill] sm:$0xff] }
 0x2a8   : > { %vm3497_vm3 = vmpackc.low %vm886_vm2, %vm882_vm1 }
 0x2a9   : > { %v1889_v15 = vpop.f32.mrf.mxu3  ;;  %3498 = vmatpush.bf16.msk.msrb.mxu3 %vm3497_vm3, %v6319_v52 }
 0x2ac   : > { %v2033_v55 = vpop.f32.mrf.mxu2  ;;  %v1938_v43 = vpop.f32.mrf.mxu0 }
 0x2ad   : > { %v2034_v44 = vadd.f32 %v2033_v55, %v1985_v42  ;;  %v1939_v56 = vadd.f32 %v1938_v43, %v1889_v15  ;;  %v1987_v4 = vpop.f32.mrf.mxu1  ;;  %v6427_v15 = vld [vmem:[#allocation38_spill] sm:$0xff] }
 0x2ae   : > { %vm950_vm5 = vcmp.eq.s32.totalorder %v6427_v15, %v5278_v49 }
 0x2af   : > { %2477 = vst [vmem:[%s4126_s8 + $0xe8] sm:$0xff] %v2034_v44  ;;  %2133 = vmatmul.bf16.gmra.mxu0 %v6409_v51  ;;  %v1988_v6 = vadd.f32 %v1987_v4, %v1939_v56  ;;  %vm3513_vm6 = vmpackc.low %vm950_vm5, %vm946_vm4  ;;  %v6428_v56 = vld [vmem:[#allocation57_spill] sm:$0xff] }
 0x2b0   : > { %2182 = vmatmul.bf16.gmra.mxu1 %v6412_v41  ;;  %3514 = vmatpush.bf16.msk.msrb.mxu0 %vm3513_vm6, %v6319_v52 }
 0x2b1   : > { %v1891_v47 = vpop.f32.mrf.mxu3  ;;  %3479 = vmatmul.msk.bf16.gmra.mxu2 %vm1623_vm7, %v6413_v45 }
 0x2b4   : > { %v2036_v2 = vpop.f32.mrf.mxu2  ;;  %v1940_v10 = vpop.f32.mrf.mxu0 }
 0x2b5   : > { %v2037_v3 = vadd.f32 %v2036_v2, %v1988_v6  ;;  %v1989_v7 = vpop.f32.mrf.mxu1  ;;  %v1941_v9 = vadd.f32 %v1940_v10, %v1891_v47  ;;  %v6431_v10 = vld [vmem:[#allocation58_spill] sm:$0xff] }
 0x2b6   : > { %2089 = vmatmul.bf16.gmra.mxu3 %v6418_v8 }
 0x2b7   : > { %2481 = vst [vmem:[%s4126_s8 + $0x108] sm:$0xff] %v2037_v3  ;;  %v1990_v17 = vadd.f32 %v1989_v7, %v1941_v9  ;;  %v6432_v3 = vld [vmem:[#allocation59_spill] sm:$0xff] }
 0x2b9   : > { %v1894_v16 = vpop.f32.mrf.mxu3 }
 0x2bc   : > { %v2038_v19 = vpop.f32.mrf.mxu2  ;;  %v1943_v22 = vpop.f32.mrf.mxu0 }
 0x2bd   : > { %v2039_v24 = vadd.f32 %v2038_v19, %v1990_v17  ;;  %v1944_v25 = vadd.f32 %v1943_v22, %v1894_v16  ;;  %v1992_v28 = vpop.f32.mrf.mxu1 }
 0x2bf   : > { %2485 = vst [vmem:[%s4126_s8 + $0x128] sm:$0xff] %v2039_v24  ;;  %2138 = vmatmul.bf16.gmra.mxu0 %v6421_v29  ;;  %v1993_v34 = vadd.f32 %v1992_v28, %v1944_v25 }
 0x2c0   : > { %2187 = vmatmul.bf16.gmra.mxu1 %v6424_v33 }
 0x2c1   : > { %v1896_v53 = vpop.f32.mrf.mxu3  ;;  %3480 = vmatmul.msk.bf16.gmra.mxu2 %vm1623_vm7, %v6425_v37 }
 0x2c4   : > { %v2041_v42 = vpop.f32.mrf.mxu2  ;;  %v1945_v55 = vpop.f32.mrf.mxu0 }
 0x2c5   : > { %v2042_v43 = vadd.f32 %v2041_v42, %v1993_v34  ;;  %v1994_v44 = vpop.f32.mrf.mxu1  ;;  %v1946_v4 = vadd.f32 %v1945_v55, %v1896_v53 }
 0x2c6   : > { %2094 = vmatmul.bf16.gmra.mxu3 %v6428_v56 }
 0x2c7   : > { %2489 = vst [vmem:[%s4126_s8 + $0x148] sm:$0xff] %v2042_v43  ;;  %v1995_v47 = vadd.f32 %v1994_v44, %v1946_v4 }
 0x2c9   : > { %v1899_v6 = vpop.f32.mrf.mxu3 }
 0x2cc   : > { %v2043_v38 = vpop.f32.mrf.mxu2  ;;  %v1948_v36 = vpop.f32.mrf.mxu0 }
 0x2cd   : > { %v2044_v62 = vadd.f32 %v2043_v38, %v1995_v47  ;;  %v1949_v5 = vadd.f32 %v1948_v36, %v1899_v6  ;;  %v1997_v2 = vpop.f32.mrf.mxu1 }
 0x2cf   : > { %2493 = vst [vmem:[%s4126_s8 + $0x168] sm:$0xff] %v2044_v62  ;;  %2143 = vmatmul.bf16.gmra.mxu0 %v6431_v10  ;;  %v1998_v7 = vadd.f32 %v1997_v2, %v1949_v5 }
 0x2d0   : > { %2192 = vmatmul.bf16.gmra.mxu1 %v6432_v3 }
 0x2d1   : > { %v1901_v9 = vpop.f32.mrf.mxu3  ;;  %3481 = vmatmul.msk.bf16.gmra.mxu2 %vm1623_vm7, %v6433_v11 }
 0x2d4   : > { %v2046_v49 = vpop.f32.mrf.mxu2  ;;  %v1950_v52 = vpop.f32.mrf.mxu0 }
 0x2d5   : > { %v2047_v13 = vadd.f32 %v2046_v49, %v1998_v7  ;;  %v1999_v16 = vpop.f32.mrf.mxu1  ;;  %v1951_v17 = vadd.f32 %v1950_v52, %v1901_v9 }
 0x2d6   : > { %2099 = vmatmul.bf16.gmra.mxu3 %v5064_v27 }
 0x2d7   : > { %2497 = vst [vmem:[%s4126_s8 + $0x188] sm:$0xff] %v2047_v13  ;;  %v2000_v22 = vadd.f32 %v1999_v16, %v1951_v17 }
 0x2d9   : > { %v1904_v19 = vpop.f32.mrf.mxu3 }
 0x2dc   : > { %v2048_v24 = vpop.f32.mrf.mxu2  ;;  %v1953_v25 = vpop.f32.mrf.mxu0 }
 0x2dd   : > { %v2049_v28 = vadd.f32 %v2048_v24, %v2000_v22  ;;  %v1954_v30 = vadd.f32 %v1953_v25, %v1904_v19  ;;  %v2002_v32 = vpop.f32.mrf.mxu1 }
 0x2df   : > { %2501 = vst [vmem:[%s4126_s8 + $0x1a8] sm:$0xff] %v2049_v28  ;;  %2148 = vmatmul.bf16.gmra.mxu0 %v5066_v63  ;;  %v2003_v34 = vadd.f32 %v2002_v32, %v1954_v30 }
 0x2e0   : > { %2197 = vmatmul.bf16.gmra.mxu1 %v5068_v59 }
 0x2e1   : > { %v1906_v53 = vpop.f32.mrf.mxu3  ;;  %3482 = vmatmul.msk.bf16.gmra.mxu2 %vm1623_vm7, %v5058_v14 }
 0x2e4   : > { %v2051_v40 = vpop.f32.mrf.mxu2  ;;  %v1955_v15 = vpop.f32.mrf.mxu0 }
 0x2e5   : > { %v2052_v42 = vadd.f32 %v2051_v40, %v2003_v34  ;;  %v2004_v55 = vpop.f32.mrf.mxu1  ;;  %v1956_v43 = vadd.f32 %v1955_v15, %v1906_v53 }
 0x2e6   : > { %2260 = vmatmul.bf16.vlgmr.msrb.gmra.mxu3 %v4806_v54 }
 0x2e7   : > { %2505 = vst [vmem:[%s4126_s8 + $0x1c8] sm:$0xff] %v2052_v42  ;;  %v2005_v4 = vadd.f32 %v2004_v55, %v1956_v43 }
 0x2e9   : > { %v2065_v44 = vpop.f32.mrf.mxu3 }
 0x2ec   : > { %v2053_v46 = vpop.f32.mrf.mxu2  ;;  %v2114_v39 = vpop.f32.mrf.mxu0 }
 0x2ed   : > { %v2054_v6 = vadd.f32 %v2053_v46, %v2005_v4  ;;  %v2115_v47 = vadd.f32 %v2114_v39, %v2065_v44  ;;  %v2163_v38 = vpop.f32.mrf.mxu1 }
 0x2ef   : > { %2509 = vst [vmem:[%s4126_s8 + $0x1e8] sm:$0xff] %v2054_v6  ;;  %2309 = vmatmul.bf16.vlgmr.msrb.gmra.mxu0 %v4809_v21  ;;  %v2164_v36 = vadd.f32 %v2163_v38, %v2115_v47 }
 0x2f0   : > { %2358 = vmatmul.bf16.vlgmr.msrb.gmra.mxu1 %v4812_v58 }
 0x2f1   : > { %v2067_v62 = vpop.f32.mrf.mxu3  ;;  %3537 = vmatmul.msk.bf16.vlgmr.msrb.gmra.mxu2 %vm1623_vm7, %v6338_v12 }
 0x2f4   : > { %v2212_v54 = vpop.f32.mrf.mxu2  ;;  %v2116_v5 = vpop.f32.mrf.mxu0 }
 0x2f5   : > { %v2213_v2 = vadd.f32 %v2212_v54, %v2164_v36  ;;  %v2165_v7 = vpop.f32.mrf.mxu1  ;;  %v2117_v9 = vadd.f32 %v2116_v5, %v2067_v62 }
 0x2f6   : > { %2265 = vmatmul.bf16.gmra.mxu3 %v4893_v60 }
 0x2f7   : > { %2450 = vst [vmem:[%s4126_s8 + $0x10] sm:$0xff] %v2213_v2  ;;  %v2166_v52 = vadd.f32 %v2165_v7, %v2117_v9 }
 0x2f9   : > { %v2070_v49 = vpop.f32.mrf.mxu3 }
 0x2fc   : > { %v2214_v13 = vpop.f32.mrf.mxu2  ;;  %v2119_v21 = vpop.f32.mrf.mxu0 }
 0x2fd   : > { %v2215_v58 = vadd.f32 %v2214_v13, %v2166_v52  ;;  %v2120_v16 = vadd.f32 %v2119_v21, %v2070_v49  ;;  %v2168_v17 = vpop.f32.mrf.mxu1 }
 0x2ff   : > { %2454 = vst [vmem:[%s4126_s8 + $0x30] sm:$0xff] %v2215_v58  ;;  %2314 = vmatmul.bf16.gmra.mxu0 %v4898_v31  ;;  %v2169_v12 = vadd.f32 %v2168_v17, %v2120_v16 }
 0x300   : > { %2363 = vmatmul.bf16.gmra.mxu1 %v4902_v0 }
 0x301   : > { %v2072_v19 = vpop.f32.mrf.mxu3  ;;  %3538 = vmatmul.msk.bf16.gmra.mxu2 %vm1623_vm7, %v4820_v57 }
 0x304   : > { %v2217_v60 = vpop.f32.mrf.mxu2  ;;  %v2121_v22 = vpop.f32.mrf.mxu0 }
 0x305   : > { %v2218_v24 = vadd.f32 %v2217_v60, %v2169_v12  ;;  %v2170_v25 = vpop.f32.mrf.mxu1  ;;  %v2122_v28 = vadd.f32 %v2121_v22, %v2072_v19 }
 0x306   : > { %2270 = vmatmul.bf16.gmra.mxu3 %v4929_v61 }
 0x307   : > { %2458 = vst [vmem:[%s4126_s8 + $0x50] sm:$0xff] %v2218_v24  ;;  %v2171_v32 = vadd.f32 %v2170_v25, %v2122_v28 }
 0x309   : > { %v2075_v30 = vpop.f32.mrf.mxu3 }
 0x30c   : > { %v2219_v34 = vpop.f32.mrf.mxu2  ;;  %v2124_v31 = vpop.f32.mrf.mxu0 }
 0x30d   : > { %v2220_v0 = vadd.f32 %v2219_v34, %v2171_v32  ;;  %v2125_v53 = vadd.f32 %v2124_v31, %v2075_v30  ;;  %v2173_v40 = vpop.f32.mrf.mxu1 }
 0x30f   : > { %2462 = vst [vmem:[%s4126_s8 + $0x70] sm:$0xff] %v2220_v0  ;;  %2319 = vmatmul.bf16.gmra.mxu0 %v6387_v20  ;;  %v2174_v57 = vadd.f32 %v2173_v40, %v2125_v53 }
 0x310   : > { %2368 = vmatmul.bf16.gmra.mxu1 %v6390_v50 }
 0x311   : > { %v2077_v15 = vpop.f32.mrf.mxu3  ;;  %3539 = vmatmul.msk.bf16.gmra.mxu2 %vm1623_vm7, %v6391_v48 }
 0x314   : > { %v2222_v61 = vpop.f32.mrf.mxu2  ;;  %v2126_v42 = vpop.f32.mrf.mxu0 }
 0x315   : > { %v2223_v55 = vadd.f32 %v2222_v61, %v2174_v57  ;;  %v2175_v43 = vpop.f32.mrf.mxu1  ;;  %v2127_v44 = vadd.f32 %v2126_v42, %v2077_v15 }
 0x316   : > { %2275 = vmatmul.bf16.gmra.mxu3 %v6396_v1 }
 0x317   : > { %2466 = vst [vmem:[%s4126_s8 + $0x90] sm:$0xff] %v2223_v55  ;;  %v2176_v46 = vadd.f32 %v2175_v43, %v2127_v44 }
 0x319   : > { %v2080_v4 = vpop.f32.mrf.mxu3 }
 0x31c   : > { %v2224_v39 = vpop.f32.mrf.mxu2  ;;  %v2129_v20 = vpop.f32.mrf.mxu0 }
 0x31d   : > { %v2225_v50 = vadd.f32 %v2224_v39, %v2176_v46  ;;  %v2130_v6 = vadd.f32 %v2129_v20, %v2080_v4  ;;  %v2178_v47 = vpop.f32.mrf.mxu1 }
 0x31f   : > { %2470 = vst [vmem:[%s4126_s8 + $0xb0] sm:$0xff] %v2225_v50  ;;  %2324 = vmatmul.bf16.gmra.mxu0 %v6399_v18  ;;  %v2179_v48 = vadd.f32 %v2178_v47, %v2130_v6 }
 0x320   : > { %2373 = vmatmul.bf16.gmra.mxu1 %v6402_v23 }
 0x321   : > { %v2082_v38 = vpop.f32.mrf.mxu3  ;;  %3540 = vmatmul.msk.bf16.gmra.mxu2 %vm1623_vm7, %v6403_v26 }
 0x324   : > { %v2227_v1 = vpop.f32.mrf.mxu2  ;;  %v2131_v36 = vpop.f32.mrf.mxu0 }
 0x325   : > { %v2228_v62 = vadd.f32 %v2227_v1, %v2179_v48  ;;  %v2180_v54 = vpop.f32.mrf.mxu1  ;;  %v2132_v5 = vadd.f32 %v2131_v36, %v2082_v38 }
 0x326   : > { %2280 = vmatmul.bf16.gmra.mxu3 %v6406_v35 }
 0x327   : > { %2474 = vst [vmem:[%s4126_s8 + $0xd0] sm:$0xff] %v2228_v62  ;;  %v2181_v7 = vadd.f32 %v2180_v54, %v2132_v5 }
 0x329   : > { %v2085_v2 = vpop.f32.mrf.mxu3 }
 0x32c   : > { %v2229_v9 = vpop.f32.mrf.mxu2  ;;  %v2134_v18 = vpop.f32.mrf.mxu0 }
 0x32d   : > { %v2230_v23 = vadd.f32 %v2229_v9, %v2181_v7  ;;  %v2135_v49 = vadd.f32 %v2134_v18, %v2085_v2  ;;  %v2183_v52 = vpop.f32.mrf.mxu1 }
 0x32f   : > { %2478 = vst [vmem:[%s4126_s8 + $0xf0] sm:$0xff] %v2230_v23  ;;  %2329 = vmatmul.bf16.gmra.mxu0 %v6409_v51  ;;  %v2184_v26 = vadd.f32 %v2183_v52, %v2135_v49 }
 0x330   : > { %2378 = vmatmul.bf16.gmra.mxu1 %v6412_v41 }
 0x331   : > { %v2087_v13 = vpop.f32.mrf.mxu3  ;;  %3541 = vmatmul.msk.bf16.gmra.mxu2 %vm1623_vm7, %v6413_v45 }
 0x334   : > { %v2232_v35 = vpop.f32.mrf.mxu2  ;;  %v2136_v21 = vpop.f32.mrf.mxu0 }
 0x335   : > { %v2233_v58 = vadd.f32 %v2232_v35, %v2184_v26  ;;  %v2185_v16 = vpop.f32.mrf.mxu1  ;;  %v2137_v17 = vadd.f32 %v2136_v21, %v2087_v13 }
 0x336   : > { %2285 = vmatmul.bf16.gmra.mxu3 %v6418_v8 }
 0x337   : > { %2482 = vst [vmem:[%s4126_s8 + $0x110] sm:$0xff] %v2233_v58  ;;  %v2186_v19 = vadd.f32 %v2185_v16, %v2137_v17 }
 0x339   : > { %v2090_v12 = vpop.f32.mrf.mxu3 }
 0x33c   : > { %v2234_v60 = vpop.f32.mrf.mxu2  ;;  %v2139_v51 = vpop.f32.mrf.mxu0 }
 0x33d   : > { %v2235_v41 = vadd.f32 %v2234_v60, %v2186_v19  ;;  %v2140_v22 = vadd.f32 %v2139_v51, %v2090_v12  ;;  %v2188_v24 = vpop.f32.mrf.mxu1 }
 0x33f   : > { %2486 = vst [vmem:[%s4126_s8 + $0x130] sm:$0xff] %v2235_v41  ;;  %2334 = vmatmul.bf16.gmra.mxu0 %v6421_v29  ;;  %v2189_v45 = vadd.f32 %v2188_v24, %v2140_v22 }
 0x340   : > { %2383 = vmatmul.bf16.gmra.mxu1 %v6424_v33 }
 0x341   : > { %v2092_v25 = vpop.f32.mrf.mxu3  ;;  %3542 = vmatmul.msk.bf16.gmra.mxu2 %vm1623_vm7, %v6425_v37 }
 0x344   : > { %v2237_v8 = vpop.f32.mrf.mxu2  ;;  %v2141_v28 = vpop.f32.mrf.mxu0 }
 0x345   : > { %v2238_v30 = vadd.f32 %v2237_v8, %v2189_v45  ;;  %v2190_v32 = vpop.f32.mrf.mxu1  ;;  %v2142_v34 = vadd.f32 %v2141_v28, %v2092_v25 }
 0x346   : > { %2290 = vmatmul.bf16.gmra.mxu3 %v6428_v56 }
 0x347   : > { %2490 = vst [vmem:[%s4126_s8 + $0x150] sm:$0xff] %v2238_v30  ;;  %v2191_v0 = vadd.f32 %v2190_v32, %v2142_v34 }
 0x349   : > { %v2095_v31 = vpop.f32.mrf.mxu3 }
 0x34c   : > { %v2239_v53 = vpop.f32.mrf.mxu2  ;;  %v2144_v29 = vpop.f32.mrf.mxu0 }
 0x34d   : > { %v2240_v33 = vadd.f32 %v2239_v53, %v2191_v0  ;;  %v2145_v40 = vadd.f32 %v2144_v29, %v2095_v31  ;;  %v2193_v57 = vpop.f32.mrf.mxu1 }
 0x34f   : > { %2494 = vst [vmem:[%s4126_s8 + $0x170] sm:$0xff] %v2240_v33  ;;  %2339 = vmatmul.bf16.gmra.mxu0 %v6431_v10  ;;  %v2194_v37 = vadd.f32 %v2193_v57, %v2145_v40 }
 0x350   : > { %2388 = vmatmul.bf16.gmra.mxu1 %v6432_v3 }
 0x351   : > { %v2097_v15 = vpop.f32.mrf.mxu3  ;;  %3543 = vmatmul.msk.bf16.gmra.mxu2 %vm1623_vm7, %v6433_v11 }
 0x354   : > { %v2242_v56 = vpop.f32.mrf.mxu2  ;;  %v2146_v61 = vpop.f32.mrf.mxu0 }
 0x355   : > { %v2243_v42 = vadd.f32 %v2242_v56, %v2194_v37  ;;  %v2195_v55 = vpop.f32.mrf.mxu1  ;;  %v2147_v43 = vadd.f32 %v2146_v61, %v2097_v15 }
 0x356   : > { %2295 = vmatmul.bf16.gmra.mxu3 %v5064_v27 }
 0x357   : > { %2498 = vst [vmem:[%s4126_s8 + $0x190] sm:$0xff] %v2243_v42  ;;  %v2196_v4 = vadd.f32 %v2195_v55, %v2147_v43 }
 0x359   : > { %v2100_v44 = vpop.f32.mrf.mxu3 }
 0x35c   : > { %v2244_v10 = vpop.f32.mrf.mxu2  ;;  %v2149_v46 = vpop.f32.mrf.mxu0 }
 0x35d   : > { %v2245_v3 = vadd.f32 %v2244_v10, %v2196_v4  ;;  %v2150_v39 = vadd.f32 %v2149_v46, %v2100_v44  ;;  %v2198_v20 = vpop.f32.mrf.mxu1 }
 0x35f   : > { %2502 = vst [vmem:[%s4126_s8 + $0x1b0] sm:$0xff] %v2245_v3  ;;  %2344 = vmatmul.bf16.gmra.mxu0 %v5066_v63  ;;  %v2199_v11 = vadd.f32 %v2198_v20, %v2150_v39 }
 0x360   : > { %2393 = vmatmul.bf16.gmra.mxu1 %v5068_v59 }
 0x361   : > { %v2102_v50 = vpop.f32.mrf.mxu3  ;;  %3544 = vmatmul.msk.bf16.gmra.mxu2 %vm1623_vm7, %v5058_v14 }
 0x364   : > { %v2247_v27 = vpop.f32.mrf.mxu2  ;;  %v2151_v6 = vpop.f32.mrf.mxu0 }
 0x365   : > { %v2248_v47 = vadd.f32 %v2247_v27, %v2199_v11  ;;  %v2200_v48 = vpop.f32.mrf.mxu1  ;;  %v2152_v38 = vadd.f32 %v2151_v6, %v2102_v50 }
 0x367   : > { %2506 = vst [vmem:[%s4126_s8 + $0x1d0] sm:$0xff] %v2248_v47  ;;  %v2201_v36 = vadd.f32 %v2200_v48, %v2152_v38 }
 0x369   : > { %v2261_v1 = vpop.f32.mrf.mxu3 }
 0x36c   : > { %v2249_v62 = vpop.f32.mrf.mxu2  ;;  %v2310_v54 = vpop.f32.mrf.mxu0 }
 0x36d   : > { %v2250_v63 = vadd.f32 %v2249_v62, %v2201_v36  ;;  %v2311_v5 = vadd.f32 %v2310_v54, %v2261_v1  ;;  %v2359_v59 = vpop.f32.mrf.mxu1 }
 0x36f   : > { %2510 = vst [vmem:[%s4126_s8 + $0x1f0] sm:$0xff] %v2250_v63  ;;  %v2360_v2 = vadd.f32 %v2359_v59, %v2311_v5 }
 0x371   : > { %v2263_v7 = vpop.f32.mrf.mxu3 }
 0x374   : > { %v2408_v9 = vpop.f32.mrf.mxu2  ;;  %v2312_v14 = vpop.f32.mrf.mxu0 }
 0x375   : > { %v2409_v18 = vadd.f32 %v2408_v9, %v2360_v2  ;;  %v2361_v23 = vpop.f32.mrf.mxu1  ;;  %v2313_v49 = vadd.f32 %v2312_v14, %v2263_v7 }
 0x377   : > { %2451 = vst [vmem:[%s4126_s8 + $0x18] sm:$0xff] %v2409_v18  ;;  %v2362_v26 = vadd.f32 %v2361_v23, %v2313_v49 }
 0x379   : > { %v2266_v52 = vpop.f32.mrf.mxu3 }
 0x37c   : > { %v2410_v13 = vpop.f32.mrf.mxu2  ;;  %v2315_v35 = vpop.f32.mrf.mxu0 }
 0x37d   : > { %v2411_v21 = vadd.f32 %v2410_v13, %v2362_v26  ;;  %v2316_v58 = vadd.f32 %v2315_v35, %v2266_v52  ;;  %v2364_v16 = vpop.f32.mrf.mxu1 }
 0x37f   : > { %2455 = vst [vmem:[%s4126_s8 + $0x38] sm:$0xff] %v2411_v21  ;;  %v2365_v17 = vadd.f32 %v2364_v16, %v2316_v58 }
 0x381   : > { %v2268_v12 = vpop.f32.mrf.mxu3 }
 0x384   : > { %v2413_v19 = vpop.f32.mrf.mxu2  ;;  %v2317_v60 = vpop.f32.mrf.mxu0 }
 0x385   : > { %v2414_v51 = vadd.f32 %v2413_v19, %v2365_v17  ;;  %v2366_v41 = vpop.f32.mrf.mxu1  ;;  %v2318_v22 = vadd.f32 %v2317_v60, %v2268_v12 }
 0x387   : > { %2459 = vst [vmem:[%s4126_s8 + $0x58] sm:$0xff] %v2414_v51  ;;  %v2367_v45 = vadd.f32 %v2366_v41, %v2318_v22 }
 0x389   : > { %v2271_v24 = vpop.f32.mrf.mxu3 }
 0x38c   : > { %v2415_v25 = vpop.f32.mrf.mxu2  ;;  %v2320_v8 = vpop.f32.mrf.mxu0 }
 0x38d   : > { %v2416_v28 = vadd.f32 %v2415_v25, %v2367_v45  ;;  %v2321_v30 = vadd.f32 %v2320_v8, %v2271_v24  ;;  %v2369_v32 = vpop.f32.mrf.mxu1 }
 0x38f   : > { %2463 = vst [vmem:[%s4126_s8 + $0x78] sm:$0xff] %v2416_v28  ;;  %v2370_v34 = vadd.f32 %v2369_v32, %v2321_v30 }
 0x391   : > { %v2273_v31 = vpop.f32.mrf.mxu3 }
 0x394   : > { %v2418_v0 = vpop.f32.mrf.mxu2  ;;  %v2322_v53 = vpop.f32.mrf.mxu0 }
 0x395   : > { %v2419_v29 = vadd.f32 %v2418_v0, %v2370_v34  ;;  %v2371_v33 = vpop.f32.mrf.mxu1  ;;  %v2323_v40 = vadd.f32 %v2322_v53, %v2273_v31 }
 0x397   : > { %2467 = vst [vmem:[%s4126_s8 + $0x98] sm:$0xff] %v2419_v29  ;;  %v2372_v37 = vadd.f32 %v2371_v33, %v2323_v40 }
 0x399   : > { %v2276_v57 = vpop.f32.mrf.mxu3 }
 0x39c   : > { %v2420_v15 = vpop.f32.mrf.mxu2  ;;  %v2325_v56 = vpop.f32.mrf.mxu0 }
 0x39d   : > { %v2421_v61 = vadd.f32 %v2420_v15, %v2372_v37  ;;  %v2326_v42 = vadd.f32 %v2325_v56, %v2276_v57  ;;  %v2374_v55 = vpop.f32.mrf.mxu1 }
 0x39f   : > { %2471 = vst [vmem:[%s4126_s8 + $0xb8] sm:$0xff] %v2421_v61  ;;  %v2375_v43 = vadd.f32 %v2374_v55, %v2326_v42 }
 0x3a1   : > { %v2278_v44 = vpop.f32.mrf.mxu3 }
 0x3a4   : > { %v2423_v4 = vpop.f32.mrf.mxu2  ;;  %v2327_v10 = vpop.f32.mrf.mxu0 }
 0x3a5   : > { %v2424_v46 = vadd.f32 %v2423_v4, %v2375_v43  ;;  %v2376_v3 = vpop.f32.mrf.mxu1  ;;  %v2328_v39 = vadd.f32 %v2327_v10, %v2278_v44 }
 0x3a7   : > { %2475 = vst [vmem:[%s4126_s8 + $0xd8] sm:$0xff] %v2424_v46  ;;  %v2377_v11 = vadd.f32 %v2376_v3, %v2328_v39 }
 0x3a9   : > { %v2281_v20 = vpop.f32.mrf.mxu3 }
 0x3ac   : > { %v2425_v50 = vpop.f32.mrf.mxu2  ;;  %v2330_v27 = vpop.f32.mrf.mxu0 }
 0x3ad   : > { %v2426_v6 = vadd.f32 %v2425_v50, %v2377_v11  ;;  %v2331_v47 = vadd.f32 %v2330_v27, %v2281_v20  ;;  %v2379_v48 = vpop.f32.mrf.mxu1 }
 0x3af   : > { %2479 = vst [vmem:[%s4126_s8 + $0xf8] sm:$0xff] %v2426_v6  ;;  %v2380_v38 = vadd.f32 %v2379_v48, %v2331_v47 }
 0x3b1   : > { %v2283_v1 = vpop.f32.mrf.mxu3 }
 0x3b4   : > { %v2428_v36 = vpop.f32.mrf.mxu2  ;;  %v2332_v62 = vpop.f32.mrf.mxu0 }
 0x3b5   : > { %v2429_v54 = vadd.f32 %v2428_v36, %v2380_v38  ;;  %v2381_v63 = vpop.f32.mrf.mxu1  ;;  %v2333_v5 = vadd.f32 %v2332_v62, %v2283_v1 }
 0x3b7   : > { %2483 = vst [vmem:[%s4126_s8 + $0x118] sm:$0xff] %v2429_v54  ;;  %v2382_v2 = vadd.f32 %v2381_v63, %v2333_v5 }
 0x3b9   : > { %v2286_v59 = vpop.f32.mrf.mxu3 }
 0x3bc   : > { %v2430_v7 = vpop.f32.mrf.mxu2  ;;  %v2335_v9 = vpop.f32.mrf.mxu0 }
 0x3bd   : > { %v2431_v14 = vadd.f32 %v2430_v7, %v2382_v2  ;;  %v2336_v18 = vadd.f32 %v2335_v9, %v2286_v59  ;;  %v2384_v23 = vpop.f32.mrf.mxu1 }
 0x3bf   : > { %2487 = vst [vmem:[%s4126_s8 + $0x138] sm:$0xff] %v2431_v14  ;;  %v2385_v49 = vadd.f32 %v2384_v23, %v2336_v18 }
 0x3c1   : > { %v2288_v52 = vpop.f32.mrf.mxu3 }
 0x3c4   : > { %v2433_v26 = vpop.f32.mrf.mxu2  ;;  %v2337_v13 = vpop.f32.mrf.mxu0 }
 0x3c5   : > { %v2434_v35 = vadd.f32 %v2433_v26, %v2385_v49  ;;  %v2386_v21 = vpop.f32.mrf.mxu1  ;;  %v2338_v58 = vadd.f32 %v2337_v13, %v2288_v52 }
 0x3c7   : > { %2491 = vst [vmem:[%s4126_s8 + $0x158] sm:$0xff] %v2434_v35  ;;  %v2387_v17 = vadd.f32 %v2386_v21, %v2338_v58 }
 0x3c9   : > { %v2291_v16 = vpop.f32.mrf.mxu3 }
 0x3cc   : > { %v2435_v12 = vpop.f32.mrf.mxu2  ;;  %v2340_v19 = vpop.f32.mrf.mxu0 }
 0x3cd   : > { %v2436_v60 = vadd.f32 %v2435_v12, %v2387_v17  ;;  %v2341_v51 = vadd.f32 %v2340_v19, %v2291_v16  ;;  %v2389_v41 = vpop.f32.mrf.mxu1 }
 0x3cf   : > { %2495 = vst [vmem:[%s4126_s8 + $0x178] sm:$0xff] %v2436_v60  ;;  %v2390_v22 = vadd.f32 %v2389_v41, %v2341_v51 }
 0x3d1   : > { %v2293_v24 = vpop.f32.mrf.mxu3 }
 0x3d4   : > { %v2438_v45 = vpop.f32.mrf.mxu2  ;;  %v2342_v25 = vpop.f32.mrf.mxu0 }
 0x3d5   : > { %v2439_v8 = vadd.f32 %v2438_v45, %v2390_v22  ;;  %v2391_v28 = vpop.f32.mrf.mxu1  ;;  %v2343_v30 = vadd.f32 %v2342_v25, %v2293_v24 }
 0x3d7   : > { %2499 = vst [vmem:[%s4126_s8 + $0x198] sm:$0xff] %v2439_v8  ;;  %v2392_v32 = vadd.f32 %v2391_v28, %v2343_v30 }
 0x3d9   : > { %v2296_v34 = vpop.f32.mrf.mxu3 }
 0x3dc   : > { %v2440_v31 = vpop.f32.mrf.mxu2  ;;  %v2345_v0 = vpop.f32.mrf.mxu0 }
 0x3dd   : > { %v2441_v53 = vadd.f32 %v2440_v31, %v2392_v32  ;;  %v2346_v29 = vadd.f32 %v2345_v0, %v2296_v34  ;;  %v2394_v33 = vpop.f32.mrf.mxu1 }
 0x3df   : > { %2503 = vst [vmem:[%s4126_s8 + $0x1b8] sm:$0xff] %v2441_v53  ;;  %v2395_v40 = vadd.f32 %v2394_v33, %v2346_v29 }
 0x3e1   : > { %v2298_v56 = vpop.f32.mrf.mxu3 }
 0x3e4   : > { %v2443_v57 = vpop.f32.mrf.mxu2  ;;  %v2347_v37 = vpop.f32.mrf.mxu0 }
 0x3e5   : > { %v2444_v15 = vadd.f32 %v2443_v57, %v2395_v40  ;;  %v2348_v61 = vadd.f32 %v2347_v37, %v2298_v56  ;;  %v2396_v42 = vpop.f32.mrf.mxu1 }
 0x3e7   : > { %2507 = vst [vmem:[%s4126_s8 + $0x1d8] sm:$0xff] %v2444_v15  ;;  %v2397_v55 = vadd.f32 %v2396_v42, %v2348_v61 }
 0x3eb   : > { %2518 = sbr.rel (!%p4107_p5) target bundleno = 1204 (0x4b4), region = 40 }
 0x3ec   : > { %v2445_v43 = vpop.f32.mrf.mxu2 }
 0x3ed   : > { %v2446_v44 = vadd.f32 %v2445_v43, %v2397_v55 }
 0x3ef   : > { %2511 = vst [vmem:[%s4126_s8 + $0x1f8] sm:$0xff] %v2446_v44 }
 0x3f0   : > { %s6467_s12 = smov (!%p2521_p11, %s2520_s12), 4 }
 0x3f1   : > { %s3547_s28 = sshll.u32 %s6467_s12, 7  ;;  %s5559_s29 = sshll.u32 %s6467_s12, 3 }
 0x3f2   : > { %p3551_p12 = scmp.eq.s32.totalorder %s3547_s28, 0 }
 0x3f3   : > { %p2533_p13 = scmp.lt.u32.totalorder (!%p3551_p12), %s5559_s29, 8 }
 0x3f4   : > { %2532 = sbr.rel (%p3551_p12) target bundleno = 1204 (0x4b4), region = 44 }
 0x3f9   : > { %2536 = sbr.rel (%p2533_p13) target bundleno = 1180 (0x49c), region = 48  ;;  %s5563_s14 = sand.u32 (!%p2533_p13), 7, %s5559_s29  }
 0x3fa   : > { %p2583_p0 = scmp.eq.s32.totalorder (!%p2533_p13), %s5563_s14, 0  ;;  %p3552_p1 = scmp.ne.s32.totalorder (!%p2533_p13), %s5563_s14, 0 }
 0x3fe   : > { %2586 = sbr.rel (%p3552_p1) target bundleno = 1091 (0x443), region = 63  ;;  %s2587_s15 = sshrl.u32 (!%p3552_p1), %s5559_s29, 3 }
 0x3ff   : > { %s5570_s23 = sshrl.u32 (!%p3552_p1), %s2587_s15, 1 }
 0x400   : > { %p3553_p2 = scmp.le.s32.totalorder (!%p3552_p1), %s5570_s23, 0 }
 0x403   : > { %2980 = sbr.rel (%p3553_p2) target bundleno = 1065 (0x429), region = 144  ;;  %s6434_s30 = smov (!%p3553_p2), %s5557_s26 }
 0x404   : > { %s6435_s4 = smov (!%p3553_p2), %s4126_s8  ;;  %s5579_s5 = smov (!%p3553_p2), 0  }
 0x405   : > { %s5581_s6 = smov (!%p3553_p2), 0  }
 0x408 LB: >> { %v2598_v4 = vld [vmem:[%s3975_s4] sm:$0xff]  ;;  %v2600_v10 = vld [vmem:[%s3975_s4 + $0x8] sm:$0xff]  ;;  %s2662_s7 = sadd.s32 1, %s3979_s5  ;;  %s2592_s6 = sadd.s32 1, %s3983_s6   ;;  %s3983_s6 = sphi %s5581_s6, %s2592_s6   ;;  %s3979_s5 = sphi %s5579_s5, %s6438_s5   ;;  %s3975_s4 = sphi %s6435_s4, %s6437_s4   ;;  %s3971_s30 = sphi %s6434_s30, %s6436_s30  }
 0x409   : >> { %v2602_v46 = vld [vmem:[%s3975_s4 + $0x20] sm:$0xff]  ;;  %2599 = vst [vmem:[%s3971_s30] sm:$0xff] %v2598_v4  ;;  %v2604_v3 = vld [vmem:[%s3975_s4 + $0x28] sm:$0xff]  ;;  %p2663_p3 = scmp.ge.s32.totalorder %s2662_s7, %s5570_s23  ;;  %p2591_p4 = scmp.ge.s32.totalorder %s2592_s6, %s5570_s23 }
 0x40a   : >> { %2601 = vst [vmem:[%s3971_s30 + $0x8] sm:$0xff] %v2600_v10  ;;  %v2606_v39 = vld [vmem:[%s3975_s4 + $0x40] sm:$0xff]  ;;  %v2608_v20 = vld [vmem:[%s3975_s4 + $0x48] sm:$0xff] }
 0x40b   : >> { %2603 = vst [vmem:[%s3971_s30 + $0x70] sm:$0xff] %v2602_v46  ;;  %s6469_s7 = smov (%p2663_p3, %s2662_s7), 0  ;;  %v2610_v11 = vld [vmem:[%s3975_s4 + $0x60] sm:$0xff]  ;;  %v2612_v50 = vld [vmem:[%s3975_s4 + $0x68] sm:$0xff] }
 0x40c   : >> { %2605 = vst [vmem:[%s3971_s30 + $0x78] sm:$0xff] %v2604_v3  ;;  %s3554_s9 = sshll.u32 %s6469_s7, 4  ;;  %v2614_v27 = vld [vmem:[%s3975_s4 + $0x80] sm:$0xff]  ;;  %v2616_v6 = vld [vmem:[%s3975_s4 + $0x88] sm:$0xff]  ;;  %s6438_s5 = smov %s6469_s7 }
 0x40d   : >> { %2607 = vst [vmem:[%s3971_s30 + $0xe0] sm:$0xff] %v2606_v39  ;;  %s5613_s10 = scalar_lea.vmem %s4126_s8, %s3554_s9 [#allocation3]   ;;  %s5616_s11 = scalar_lea.vmem %s5557_s26, %s3554_s9   ;;  %v2618_v47 = vld [vmem:[%s3975_s4 + $0xa0] sm:$0xff]  ;;  %v2620_v48 = vld [vmem:[%s3975_s4 + $0xa8] sm:$0xff] }
 0x40e   : >> { %2609 = vst [vmem:[%s3971_s30 + $0xe8] sm:$0xff] %v2608_v20  ;;  %v2622_v38 = vld [vmem:[%s3975_s4 + $0xc0] sm:$0xff]  ;;  %v2624_v1 = vld [vmem:[%s3975_s4 + $0xc8] sm:$0xff] }
 0x40f   : >> { %2611 = vst [vmem:[%s3971_s30 + $0x150] sm:$0xff] %v2610_v11  ;;  %v2626_v36 = vld [vmem:[%s3975_s4 + $0xe0] sm:$0xff]  ;;  %v2628_v62 = vld [vmem:[%s3975_s4 + $0xe8] sm:$0xff] }
 0x410   : >> { %2613 = vst [vmem:[%s3971_s30 + $0x158] sm:$0xff] %v2612_v50  ;;  %v2630_v54 = vld [vmem:[%s3975_s4 + $0x100] sm:$0xff]  ;;  %v2632_v63 = vld [vmem:[%s3975_s4 + $0x108] sm:$0xff] }
 0x411   : >> { %2615 = vst [vmem:[%s3971_s30 + $0x1c0] sm:$0xff] %v2614_v27  ;;  %v2634_v5 = vld [vmem:[%s3975_s4 + $0x120] sm:$0xff]  ;;  %v2636_v59 = vld [vmem:[%s3975_s4 + $0x128] sm:$0xff] }
 0x412   : >> { %2617 = vst [vmem:[%s3971_s30 + $0x1c8] sm:$0xff] %v2616_v6  ;;  %v2638_v2 = vld [vmem:[%s3975_s4 + $0x140] sm:$0xff]  ;;  %v2640_v7 = vld [vmem:[%s3975_s4 + $0x148] sm:$0xff] }
 0x413   : >> { %2619 = vst [vmem:[%s3971_s30 + $0x230] sm:$0xff] %v2618_v47  ;;  %v2642_v9 = vld [vmem:[%s3975_s4 + $0x160] sm:$0xff]  ;;  %v2644_v14 = vld [vmem:[%s3975_s4 + $0x168] sm:$0xff] }
 0x414   : >> { %2621 = vst [vmem:[%s3971_s30 + $0x238] sm:$0xff] %v2620_v48  ;;  %v2646_v18 = vld [vmem:[%s3975_s4 + $0x180] sm:$0xff]  ;;  %v2648_v23 = vld [vmem:[%s3975_s4 + $0x188] sm:$0xff] }
 0x415   : >> { %2623 = vst [vmem:[%s3971_s30 + $0x2a0] sm:$0xff] %v2622_v38  ;;  %v2650_v49 = vld [vmem:[%s3975_s4 + $0x1a0] sm:$0xff]  ;;  %v2652_v52 = vld [vmem:[%s3975_s4 + $0x1a8] sm:$0xff] }
 0x416   : >> { %2625 = vst [vmem:[%s3971_s30 + $0x2a8] sm:$0xff] %v2624_v1  ;;  %v2654_v26 = vld [vmem:[%s3975_s4 + $0x1c0] sm:$0xff]  ;;  %v2656_v13 = vld [vmem:[%s3975_s4 + $0x1c8] sm:$0xff] }
 0x417   : >> { %2627 = vst [vmem:[%s3971_s30 + $0x310] sm:$0xff] %v2626_v36  ;;  %v2658_v35 = vld [vmem:[%s3975_s4 + $0x1e0] sm:$0xff]  ;;  %v2660_v21 = vld [vmem:[%s3975_s4 + $0x1e8] sm:$0xff]  ;;  %s6437_s4 = smov %s5613_s10 }
 0x418   : >> { %2629 = vst [vmem:[%s3971_s30 + $0x318] sm:$0xff] %v2628_v62 }
 0x419   : >> { %2631 = vst [vmem:[%s3971_s30 + $0x380] sm:$0xff] %v2630_v54 }
 0x41a   : >> { %2633 = vst [vmem:[%s3971_s30 + $0x388] sm:$0xff] %v2632_v63 }
 0x41b   : >> { %2635 = vst [vmem:[%s3971_s30 + $0x3f0] sm:$0xff] %v2634_v5 }
 0x41c   : >> { %2637 = vst [vmem:[%s3971_s30 + $0x3f8] sm:$0xff] %v2636_v59 }
 0x41d   : >> { %2639 = vst [vmem:[%s3971_s30 + $0x460] sm:$0xff] %v2638_v2 }
 0x41e   : >> { %2641 = vst [vmem:[%s3971_s30 + $0x468] sm:$0xff] %v2640_v7 }
 0x41f   : >> { %2643 = vst [vmem:[%s3971_s30 + $0x4d0] sm:$0xff] %v2642_v9 }
 0x420   : >> { %2645 = vst [vmem:[%s3971_s30 + $0x4d8] sm:$0xff] %v2644_v14 }
 0x421   : >> { %2647 = vst [vmem:[%s3971_s30 + $0x540] sm:$0xff] %v2646_v18 }
 0x422   : >> { %2649 = vst [vmem:[%s3971_s30 + $0x548] sm:$0xff] %v2648_v23 }
 0x423   : >> { %2651 = vst [vmem:[%s3971_s30 + $0x5b0] sm:$0xff] %v2650_v49 }
 0x424   : >> { %2653 = vst [vmem:[%s3971_s30 + $0x5b8] sm:$0xff] %v2652_v52  ;;  %2594 = sbr.rel (!%p2591_p4) target bundleno = 1032 (0x408), region = 150 }
 0x425   : >> { %2655 = vst [vmem:[%s3971_s30 + $0x620] sm:$0xff] %v2654_v26 }
 0x426   : >> { %2657 = vst [vmem:[%s3971_s30 + $0x628] sm:$0xff] %v2656_v13 }
 0x427   : >> { %2659 = vst [vmem:[%s3971_s30 + $0x690] sm:$0xff] %v2658_v35 }
 0x428   : >> { %2661 = vst [vmem:[%s3971_s30 + $0x698] sm:$0xff] %v2660_v21  ;;  %s6436_s30 = smov %s5616_s11 }
 0x429 PF: > { %s5682_s12 = sand.u32 1, %s2587_s15   ;;  %s3625_s21 = sshll.u32 %s5570_s23, 4 }
 0x42a   : > { %s5686_s22 = scalar_lea.vmem %s4126_s8, %s3625_s21 [#allocation3]   ;;  %s5689_s24 = scalar_lea.vmem %s5557_s26, %s3625_s21  }
 0x42b   : > { %p3559_p5 = scmp.le.s32.totalorder %s5682_s12, 0 }
 0x42c   : > { %s6439_s25 = smov (!%p3559_p5), %s5689_s24  ;;  %s6440_s28 = smov (!%p3559_p5), %s5686_s22 }
 0x42d   : > { %2994 = sbr.rel (%p3559_p5) target bundleno = 1091 (0x443), region = 155  ;;  %s5698_s30 = smov (!%p3559_p5), 0  }
 0x42e   : > { %s5700_s4 = smov (!%p3559_p5), 0  }
 0x432 LB: >> { %v2685_v58 = vld [vmem:[%s3991_s28] sm:$0xff]  ;;  %s2717_s15 = sadd.s32 1, %s3995_s30  ;;  %s2679_s4 = sadd.s32 1, %s3999_s4   ;;  %s3999_s4 = sphi %s5700_s4, %s2679_s4   ;;  %s3995_s30 = sphi %s5698_s30, %s6443_s30   ;;  %s3991_s28 = sphi %s6440_s28, %s6442_s28   ;;  %s3987_s25 = sphi %s6439_s25, %s6441_s25  }
 0x433   : >> { %v2687_v16 = vld [vmem:[%s3991_s28 + $0x20] sm:$0xff]  ;;  %2686 = vst [vmem:[%s3987_s25] sm:$0xff] %v2685_v58  ;;  %p2718_p6 = scmp.ge.s32.totalorder %s2717_s15, %s5682_s12  ;;  %p2678_p7 = scmp.ge.s32.totalorder %s2679_s4, %s5682_s12 }
 0x434   : >> { %v2689_v17 = vld [vmem:[%s3991_s28 + $0x40] sm:$0xff]  ;;  %2688 = vst [vmem:[%s3987_s25 + $0x70] sm:$0xff] %v2687_v16 }
 0x435   : >> { %v2691_v12 = vld [vmem:[%s3991_s28 + $0x60] sm:$0xff]  ;;  %2690 = vst [vmem:[%s3987_s25 + $0xe0] sm:$0xff] %v2689_v17  ;;  %s6471_s15 = smov (%p2718_p6, %s2717_s15), 0 }
 0x436   : >> { %v2693_v19 = vld [vmem:[%s3991_s28 + $0x80] sm:$0xff]  ;;  %2692 = vst [vmem:[%s3987_s25 + $0x150] sm:$0xff] %v2691_v12  ;;  %s3560_s23 = sshll.u32 %s6471_s15, 3  ;;  %s6443_s30 = smov %s6471_s15 }
 0x437   : >> { %v2695_v60 = vld [vmem:[%s3991_s28 + $0xa0] sm:$0xff]  ;;  %2694 = vst [vmem:[%s3987_s25 + $0x1c0] sm:$0xff] %v2693_v19  ;;  %s2722_s5 = scalar_lea.vmem %s5686_s22, %s3560_s23 [#allocation3]   ;;  %s2723_s6 = scalar_lea.vmem %s5689_s24, %s3560_s23  }
 0x438   : >> { %v2697_v51 = vld [vmem:[%s3991_s28 + $0xc0] sm:$0xff]  ;;  %2696 = vst [vmem:[%s3987_s25 + $0x230] sm:$0xff] %v2695_v60 }
 0x439   : >> { %v2699_v41 = vld [vmem:[%s3991_s28 + $0xe0] sm:$0xff]  ;;  %2698 = vst [vmem:[%s3987_s25 + $0x2a0] sm:$0xff] %v2697_v51 }
 0x43a   : >> { %v2701_v22 = vld [vmem:[%s3991_s28 + $0x100] sm:$0xff]  ;;  %2700 = vst [vmem:[%s3987_s25 + $0x310] sm:$0xff] %v2699_v41 }
 0x43b   : >> { %v2703_v24 = vld [vmem:[%s3991_s28 + $0x120] sm:$0xff]  ;;  %2702 = vst [vmem:[%s3987_s25 + $0x380] sm:$0xff] %v2701_v22 }
 0x43c   : >> { %v2705_v45 = vld [vmem:[%s3991_s28 + $0x140] sm:$0xff]  ;;  %2704 = vst [vmem:[%s3987_s25 + $0x3f0] sm:$0xff] %v2703_v24 }
 0x43d   : >> { %v2707_v25 = vld [vmem:[%s3991_s28 + $0x160] sm:$0xff]  ;;  %2706 = vst [vmem:[%s3987_s25 + $0x460] sm:$0xff] %v2705_v45 }
 0x43e   : >> { %v2709_v8 = vld [vmem:[%s3991_s28 + $0x180] sm:$0xff]  ;;  %2708 = vst [vmem:[%s3987_s25 + $0x4d0] sm:$0xff] %v2707_v25  ;;  %2681 = sbr.rel (!%p2678_p7) target bundleno = 1074 (0x432), region = 161 }
 0x43f   : >> { %v2711_v28 = vld [vmem:[%s3991_s28 + $0x1a0] sm:$0xff]  ;;  %2710 = vst [vmem:[%s3987_s25 + $0x540] sm:$0xff] %v2709_v8 }
 0x440   : >> { %v2713_v30 = vld [vmem:[%s3991_s28 + $0x1c0] sm:$0xff]  ;;  %2712 = vst [vmem:[%s3987_s25 + $0x5b0] sm:$0xff] %v2711_v28 }
 0x441   : >> { %v2715_v32 = vld [vmem:[%s3991_s28 + $0x1e0] sm:$0xff]  ;;  %2714 = vst [vmem:[%s3987_s25 + $0x620] sm:$0xff] %v2713_v30  ;;  %s6442_s28 = smov %s2722_s5 }
 0x442   : >> { %2716 = vst [vmem:[%s3987_s25 + $0x690] sm:$0xff] %v2715_v32  ;;  %s6441_s25 = smov %s2723_s6 }
 0x443 PF: > { %2726 = sbr.rel (%p2583_p0) target bundleno = 1180 (0x49c), region = 81  ;;  %s2728_s7 = ssub.s32 (!%p2583_p0), %s5559_s29, %s5563_s14 }
 0x444   : > { %s2732_s9 = sshrl.u32 (!%p2583_p0), %s5559_s29, 3  ;;  %s5767_s10 = scalar_lea.vmem (!%p2583_p0), %s4126_s8, %s2728_s7 [#allocation3] }
 0x445   : > { %s5770_s11 = scalar_lea.vmem (!%p2583_p0), %s5557_s26, %s2728_s7  ;;  %s5774_s21 = sshrl.u32 (!%p2583_p0), %s2732_s9, 1 }
 0x446   : > { %p3562_p8 = scmp.le.s32.totalorder (!%p2583_p0), %s5774_s21, 0 }
 0x448   : > { %3008 = sbr.rel (%p3562_p8) target bundleno = 1134 (0x46e), region = 166  ;;  %s6444_s12 = smov (!%p3562_p8), %s5557_s26 }
 0x449   : > { %s6445_s22 = smov (!%p3562_p8), %s4126_s8  ;;  %s5783_s24 = smov (!%p3562_p8), 0  }
 0x44a   : > { %s5785_s25 = smov (!%p3562_p8), 0  }
 0x44d LB: >> { %v2743_v34 = vld [vmem:[%s4007_s22] sm:$0xff]  ;;  %v2745_v31 = vld [vmem:[%s4007_s22 + $0x8] sm:$0xff]  ;;  %s2807_s28 = sadd.s32 1, %s4011_s24  ;;  %s2737_s25 = sadd.s32 1, %s4015_s25   ;;  %s4015_s25 = sphi %s5785_s25, %s2737_s25   ;;  %s4011_s24 = sphi %s5783_s24, %s6448_s24   ;;  %s4007_s22 = sphi %s6445_s22, %s6447_s22   ;;  %s4003_s12 = sphi %s6444_s12, %s6446_s12  }
 0x44e   : >> { %v2747_v0 = vld [vmem:[%s4007_s22 + $0x20] sm:$0xff]  ;;  %2744 = vst [vmem:[%s4003_s12] sm:$0xff] %v2743_v34  ;;  %v2749_v53 = vld [vmem:[%s4007_s22 + $0x28] sm:$0xff]  ;;  %p2808_p9 = scmp.ge.s32.totalorder %s2807_s28, %s5774_s21  ;;  %p2736_p10 = scmp.ge.s32.totalorder %s2737_s25, %s5774_s21 }
 0x44f   : >> { %2746 = vst [vmem:[%s4003_s12 + $0x8] sm:$0xff] %v2745_v31  ;;  %v2751_v29 = vld [vmem:[%s4007_s22 + $0x40] sm:$0xff]  ;;  %v2753_v33 = vld [vmem:[%s4007_s22 + $0x48] sm:$0xff] }
 0x450   : >> { %2748 = vst [vmem:[%s4003_s12 + $0x70] sm:$0xff] %v2747_v0  ;;  %s6473_s28 = smov (%p2808_p9, %s2807_s28), 0  ;;  %v2755_v40 = vld [vmem:[%s4007_s22 + $0x60] sm:$0xff]  ;;  %v2757_v57 = vld [vmem:[%s4007_s22 + $0x68] sm:$0xff] }
 0x451   : >> { %2750 = vst [vmem:[%s4003_s12 + $0x78] sm:$0xff] %v2749_v53  ;;  %s3563_s30 = sshll.u32 %s6473_s28, 4  ;;  %v2759_v37 = vld [vmem:[%s4007_s22 + $0x80] sm:$0xff]  ;;  %v2761_v15 = vld [vmem:[%s4007_s22 + $0x88] sm:$0xff]  ;;  %s6448_s24 = smov %s6473_s28 }
 0x452   : >> { %2752 = vst [vmem:[%s4003_s12 + $0xe0] sm:$0xff] %v2751_v29  ;;  %s5817_s4 = scalar_lea.vmem %s4126_s8, %s3563_s30 [#allocation3]   ;;  %s5820_s15 = scalar_lea.vmem %s5557_s26, %s3563_s30   ;;  %v2763_v56 = vld [vmem:[%s4007_s22 + $0xa0] sm:$0xff]  ;;  %v2765_v61 = vld [vmem:[%s4007_s22 + $0xa8] sm:$0xff] }
 0x453   : >> { %2754 = vst [vmem:[%s4003_s12 + $0xe8] sm:$0xff] %v2753_v33  ;;  %v2767_v42 = vld [vmem:[%s4007_s22 + $0xc0] sm:$0xff]  ;;  %v2769_v55 = vld [vmem:[%s4007_s22 + $0xc8] sm:$0xff] }
 0x454   : >> { %2756 = vst [vmem:[%s4003_s12 + $0x150] sm:$0xff] %v2755_v40  ;;  %v2771_v43 = vld [vmem:[%s4007_s22 + $0xe0] sm:$0xff]  ;;  %v2773_v44 = vld [vmem:[%s4007_s22 + $0xe8] sm:$0xff] }
 0x455   : >> { %2758 = vst [vmem:[%s4003_s12 + $0x158] sm:$0xff] %v2757_v57  ;;  %v2775_v4 = vld [vmem:[%s4007_s22 + $0x100] sm:$0xff]  ;;  %v2777_v10 = vld [vmem:[%s4007_s22 + $0x108] sm:$0xff] }
 0x456   : >> { %2760 = vst [vmem:[%s4003_s12 + $0x1c0] sm:$0xff] %v2759_v37  ;;  %v2779_v46 = vld [vmem:[%s4007_s22 + $0x120] sm:$0xff]  ;;  %v2781_v3 = vld [vmem:[%s4007_s22 + $0x128] sm:$0xff] }
 0x457   : >> { %2762 = vst [vmem:[%s4003_s12 + $0x1c8] sm:$0xff] %v2761_v15  ;;  %v2783_v39 = vld [vmem:[%s4007_s22 + $0x140] sm:$0xff]  ;;  %v2785_v20 = vld [vmem:[%s4007_s22 + $0x148] sm:$0xff] }
 0x458   : >> { %2764 = vst [vmem:[%s4003_s12 + $0x230] sm:$0xff] %v2763_v56  ;;  %v2787_v11 = vld [vmem:[%s4007_s22 + $0x160] sm:$0xff]  ;;  %v2789_v50 = vld [vmem:[%s4007_s22 + $0x168] sm:$0xff] }
 0x459   : >> { %2766 = vst [vmem:[%s4003_s12 + $0x238] sm:$0xff] %v2765_v61  ;;  %v2791_v27 = vld [vmem:[%s4007_s22 + $0x180] sm:$0xff]  ;;  %v2793_v6 = vld [vmem:[%s4007_s22 + $0x188] sm:$0xff] }
 0x45a   : >> { %2768 = vst [vmem:[%s4003_s12 + $0x2a0] sm:$0xff] %v2767_v42  ;;  %v2795_v47 = vld [vmem:[%s4007_s22 + $0x1a0] sm:$0xff]  ;;  %v2797_v48 = vld [vmem:[%s4007_s22 + $0x1a8] sm:$0xff] }
 0x45b   : >> { %2770 = vst [vmem:[%s4003_s12 + $0x2a8] sm:$0xff] %v2769_v55  ;;  %v2799_v38 = vld [vmem:[%s4007_s22 + $0x1c0] sm:$0xff]  ;;  %v2801_v1 = vld [vmem:[%s4007_s22 + $0x1c8] sm:$0xff] }
 0x45c   : >> { %2772 = vst [vmem:[%s4003_s12 + $0x310] sm:$0xff] %v2771_v43  ;;  %v2803_v36 = vld [vmem:[%s4007_s22 + $0x1e0] sm:$0xff]  ;;  %v2805_v62 = vld [vmem:[%s4007_s22 + $0x1e8] sm:$0xff]  ;;  %s6447_s22 = smov %s5817_s4 }
 0x45d   : >> { %2774 = vst [vmem:[%s4003_s12 + $0x318] sm:$0xff] %v2773_v44 }
 0x45e   : >> { %2776 = vst [vmem:[%s4003_s12 + $0x380] sm:$0xff] %v2775_v4 }
 0x45f   : >> { %2778 = vst [vmem:[%s4003_s12 + $0x388] sm:$0xff] %v2777_v10 }
 0x460   : >> { %2780 = vst [vmem:[%s4003_s12 + $0x3f0] sm:$0xff] %v2779_v46 }
 0x461   : >> { %2782 = vst [vmem:[%s4003_s12 + $0x3f8] sm:$0xff] %v2781_v3 }
 0x462   : >> { %2784 = vst [vmem:[%s4003_s12 + $0x460] sm:$0xff] %v2783_v39 }
 0x463   : >> { %2786 = vst [vmem:[%s4003_s12 + $0x468] sm:$0xff] %v2785_v20 }
 0x464   : >> { %2788 = vst [vmem:[%s4003_s12 + $0x4d0] sm:$0xff] %v2787_v11 }
 0x465   : >> { %2790 = vst [vmem:[%s4003_s12 + $0x4d8] sm:$0xff] %v2789_v50 }
 0x466   : >> { %2792 = vst [vmem:[%s4003_s12 + $0x540] sm:$0xff] %v2791_v27 }
 0x467   : >> { %2794 = vst [vmem:[%s4003_s12 + $0x548] sm:$0xff] %v2793_v6 }
 0x468   : >> { %2796 = vst [vmem:[%s4003_s12 + $0x5b0] sm:$0xff] %v2795_v47 }
 0x469   : >> { %2798 = vst [vmem:[%s4003_s12 + $0x5b8] sm:$0xff] %v2797_v48  ;;  %2739 = sbr.rel (!%p2736_p10) target bundleno = 1101 (0x44d), region = 172 }
 0x46a   : >> { %2800 = vst [vmem:[%s4003_s12 + $0x620] sm:$0xff] %v2799_v38 }
 0x46b   : >> { %2802 = vst [vmem:[%s4003_s12 + $0x628] sm:$0xff] %v2801_v1 }
 0x46c   : >> { %2804 = vst [vmem:[%s4003_s12 + $0x690] sm:$0xff] %v2803_v36 }
 0x46d   : >> { %2806 = vst [vmem:[%s4003_s12 + $0x698] sm:$0xff] %v2805_v62  ;;  %s6446_s12 = smov %s5820_s15 }
 0x46e PF: > { %s5886_s23 = sand.u32 1, %s2732_s9   ;;  %s3627_s5 = sshll.u32 %s5774_s21, 4 }
 0x46f   : > { %s5890_s6 = scalar_lea.vmem %s4126_s8, %s3627_s5 [#allocation3]   ;;  %s5893_s7 = scalar_lea.vmem %s5557_s26, %s3627_s5  }
 0x470   : > { %p3568_p11 = scmp.le.s32.totalorder %s5886_s23, 0 }
 0x471   : > { %s6449_s25 = smov (!%p3568_p11), %s5893_s7  ;;  %s6450_s12 = smov (!%p3568_p11), %s5890_s6 }
 0x472   : > { %3022 = sbr.rel (%p3568_p11) target bundleno = 1160 (0x488), region = 177  ;;  %s5902_s22 = smov (!%p3568_p11), 0  }
 0x473   : > { %s5904_s24 = smov (!%p3568_p11), 0  }
 0x477 LB: >> { %v2830_v54 = vld [vmem:[%s4023_s12] sm:$0xff]  ;;  %s2862_s9 = sadd.s32 1, %s4027_s22  ;;  %s2824_s24 = sadd.s32 1, %s4031_s24   ;;  %s4031_s24 = sphi %s5904_s24, %s2824_s24   ;;  %s4027_s22 = sphi %s5902_s22, %s6453_s22   ;;  %s4023_s12 = sphi %s6450_s12, %s6452_s12   ;;  %s4019_s25 = sphi %s6449_s25, %s6451_s25  }
 0x478   : >> { %v2832_v63 = vld [vmem:[%s4023_s12 + $0x20] sm:$0xff]  ;;  %2831 = vst [vmem:[%s4019_s25] sm:$0xff] %v2830_v54  ;;  %p2863_p12 = scmp.ge.s32.totalorder %s2862_s9, %s5886_s23  ;;  %p2823_p13 = scmp.ge.s32.totalorder %s2824_s24, %s5886_s23 }
 0x479   : >> { %v2834_v5 = vld [vmem:[%s4023_s12 + $0x40] sm:$0xff]  ;;  %2833 = vst [vmem:[%s4019_s25 + $0x70] sm:$0xff] %v2832_v63 }
 0x47a   : >> { %v2836_v59 = vld [vmem:[%s4023_s12 + $0x60] sm:$0xff]  ;;  %2835 = vst [vmem:[%s4019_s25 + $0xe0] sm:$0xff] %v2834_v5  ;;  %s6475_s9 = smov (%p2863_p12, %s2862_s9), 0 }
 0x47b   : >> { %v2838_v2 = vld [vmem:[%s4023_s12 + $0x80] sm:$0xff]  ;;  %2837 = vst [vmem:[%s4019_s25 + $0x150] sm:$0xff] %v2836_v59  ;;  %s3569_s21 = sshll.u32 %s6475_s9, 3  ;;  %s6453_s22 = smov %s6475_s9 }
 0x47c   : >> { %v2840_v7 = vld [vmem:[%s4023_s12 + $0xa0] sm:$0xff]  ;;  %2839 = vst [vmem:[%s4019_s25 + $0x1c0] sm:$0xff] %v2838_v2  ;;  %s2867_s28 = scalar_lea.vmem %s5890_s6, %s3569_s21 [#allocation3]   ;;  %s2868_s30 = scalar_lea.vmem %s5893_s7, %s3569_s21  }
 0x47d   : >> { %v2842_v9 = vld [vmem:[%s4023_s12 + $0xc0] sm:$0xff]  ;;  %2841 = vst [vmem:[%s4019_s25 + $0x230] sm:$0xff] %v2840_v7 }
 0x47e   : >> { %v2844_v14 = vld [vmem:[%s4023_s12 + $0xe0] sm:$0xff]  ;;  %2843 = vst [vmem:[%s4019_s25 + $0x2a0] sm:$0xff] %v2842_v9 }
 0x47f   : >> { %v2846_v18 = vld [vmem:[%s4023_s12 + $0x100] sm:$0xff]  ;;  %2845 = vst [vmem:[%s4019_s25 + $0x310] sm:$0xff] %v2844_v14 }
 0x480   : >> { %v2848_v23 = vld [vmem:[%s4023_s12 + $0x120] sm:$0xff]  ;;  %2847 = vst [vmem:[%s4019_s25 + $0x380] sm:$0xff] %v2846_v18 }
 0x481   : >> { %v2850_v49 = vld [vmem:[%s4023_s12 + $0x140] sm:$0xff]  ;;  %2849 = vst [vmem:[%s4019_s25 + $0x3f0] sm:$0xff] %v2848_v23 }
 0x482   : >> { %v2852_v52 = vld [vmem:[%s4023_s12 + $0x160] sm:$0xff]  ;;  %2851 = vst [vmem:[%s4019_s25 + $0x460] sm:$0xff] %v2850_v49 }
 0x483   : >> { %v2854_v26 = vld [vmem:[%s4023_s12 + $0x180] sm:$0xff]  ;;  %2853 = vst [vmem:[%s4019_s25 + $0x4d0] sm:$0xff] %v2852_v52  ;;  %2826 = sbr.rel (!%p2823_p13) target bundleno = 1143 (0x477), region = 183 }
 0x484   : >> { %v2856_v13 = vld [vmem:[%s4023_s12 + $0x1a0] sm:$0xff]  ;;  %2855 = vst [vmem:[%s4019_s25 + $0x540] sm:$0xff] %v2854_v26 }
 0x485   : >> { %v2858_v35 = vld [vmem:[%s4023_s12 + $0x1c0] sm:$0xff]  ;;  %2857 = vst [vmem:[%s4019_s25 + $0x5b0] sm:$0xff] %v2856_v13 }
 0x486   : >> { %v2860_v21 = vld [vmem:[%s4023_s12 + $0x1e0] sm:$0xff]  ;;  %2859 = vst [vmem:[%s4019_s25 + $0x620] sm:$0xff] %v2858_v35  ;;  %s6452_s12 = smov %s2867_s28 }
 0x487   : >> { %2861 = vst [vmem:[%s4019_s25 + $0x690] sm:$0xff] %v2860_v21  ;;  %s6451_s25 = smov %s2868_s30 }
 0x488 PF: > { %s4039_s4 = smov 1  }
 0x489   : > { %s2869_s15 = sshll.u32 %s4039_s4, %s5563_s14 }
 0x48a   : > { %s5966_s5 = sadd.s32 4294967295, %s2869_s15 }
 0x48b   : > { %v2879_v58 = vld [vmem:[%s5767_s10] sm:%s5966_s5] }
 0x48c   : > { %v2881_v16 = vld [vmem:[%s5767_s10 + $0x20] sm:%s5966_s5]  ;;  %2880 = vst [vmem:[%s5770_s11] sm:%s5966_s5] %v2879_v58 }
 0x48d   : > { %v2883_v17 = vld [vmem:[%s5767_s10 + $0x40] sm:%s5966_s5]  ;;  %2882 = vst [vmem:[%s5770_s11 + $0x70] sm:%s5966_s5] %v2881_v16 }
 0x48e   : > { %v2885_v12 = vld [vmem:[%s5767_s10 + $0x60] sm:%s5966_s5]  ;;  %2884 = vst [vmem:[%s5770_s11 + $0xe0] sm:%s5966_s5] %v2883_v17 }
 0x48f   : > { %v2887_v19 = vld [vmem:[%s5767_s10 + $0x80] sm:%s5966_s5]  ;;  %2886 = vst [vmem:[%s5770_s11 + $0x150] sm:%s5966_s5] %v2885_v12 }
 0x490   : > { %v2889_v60 = vld [vmem:[%s5767_s10 + $0xa0] sm:%s5966_s5]  ;;  %2888 = vst [vmem:[%s5770_s11 + $0x1c0] sm:%s5966_s5] %v2887_v19 }
 0x491   : > { %v2891_v51 = vld [vmem:[%s5767_s10 + $0xc0] sm:%s5966_s5]  ;;  %2890 = vst [vmem:[%s5770_s11 + $0x230] sm:%s5966_s5] %v2889_v60 }
 0x492   : > { %v2893_v41 = vld [vmem:[%s5767_s10 + $0xe0] sm:%s5966_s5]  ;;  %2892 = vst [vmem:[%s5770_s11 + $0x2a0] sm:%s5966_s5] %v2891_v51 }
 0x493   : > { %v2895_v22 = vld [vmem:[%s5767_s10 + $0x100] sm:%s5966_s5]  ;;  %2894 = vst [vmem:[%s5770_s11 + $0x310] sm:%s5966_s5] %v2893_v41 }
 0x494   : > { %v2897_v24 = vld [vmem:[%s5767_s10 + $0x120] sm:%s5966_s5]  ;;  %2896 = vst [vmem:[%s5770_s11 + $0x380] sm:%s5966_s5] %v2895_v22 }
 0x495   : > { %v2899_v45 = vld [vmem:[%s5767_s10 + $0x140] sm:%s5966_s5]  ;;  %2898 = vst [vmem:[%s5770_s11 + $0x3f0] sm:%s5966_s5] %v2897_v24 }
 0x496   : > { %v2901_v25 = vld [vmem:[%s5767_s10 + $0x160] sm:%s5966_s5]  ;;  %2900 = vst [vmem:[%s5770_s11 + $0x460] sm:%s5966_s5] %v2899_v45 }
 0x497   : > { %v2903_v8 = vld [vmem:[%s5767_s10 + $0x180] sm:%s5966_s5]  ;;  %2902 = vst [vmem:[%s5770_s11 + $0x4d0] sm:%s5966_s5] %v2901_v25 }
 0x498   : > { %v2905_v28 = vld [vmem:[%s5767_s10 + $0x1a0] sm:%s5966_s5]  ;;  %2904 = vst [vmem:[%s5770_s11 + $0x540] sm:%s5966_s5] %v2903_v8 }
 0x499   : > { %v2907_v30 = vld [vmem:[%s5767_s10 + $0x1c0] sm:%s5966_s5]  ;;  %2906 = vst [vmem:[%s5770_s11 + $0x5b0] sm:%s5966_s5] %v2905_v28 }
 0x49a   : > { %v2909_v32 = vld [vmem:[%s5767_s10 + $0x1e0] sm:%s5966_s5]  ;;  %2908 = vst [vmem:[%s5770_s11 + $0x620] sm:%s5966_s5] %v2907_v30 }
 0x49b   : > { %2910 = vst [vmem:[%s5770_s11 + $0x690] sm:%s5966_s5] %v2909_v32 }
 0x49c PF: > { %p3572_p0 = scmp.ge.u32.totalorder %s5559_s29, 8 }
 0x49d   : > { %s4040_s14 = smov (!%p3572_p0), 1  }
 0x49e   : > { %2539 = sbr.rel (%p3572_p0) target bundleno = 1204 (0x4b4), region = 52  ;;  %s2540_s10 = sshll.u32 (!%p3572_p0), %s4040_s14, %s5559_s29 }
 0x49f   : > { %s6034_s11 = sadd.s32 (!%p3572_p0), 4294967295, %s2540_s10 }
 0x4a3   : > { %v2550_v34 = vld [vmem:[%s4126_s8] sm:%s6034_s11] }
 0x4a4   : > { %v2552_v31 = vld [vmem:[%s4126_s8 + $0x20] sm:%s6034_s11]  ;;  %2551 = vst [vmem:[%s5557_s26] sm:%s6034_s11] %v2550_v34 }
 0x4a5   : > { %v2554_v0 = vld [vmem:[%s4126_s8 + $0x40] sm:%s6034_s11]  ;;  %2553 = vst [vmem:[%s5557_s26 + $0x70] sm:%s6034_s11] %v2552_v31 }
 0x4a6   : > { %v2556_v53 = vld [vmem:[%s4126_s8 + $0x60] sm:%s6034_s11]  ;;  %2555 = vst [vmem:[%s5557_s26 + $0xe0] sm:%s6034_s11] %v2554_v0 }
 0x4a7   : > { %v2558_v29 = vld [vmem:[%s4126_s8 + $0x80] sm:%s6034_s11]  ;;  %2557 = vst [vmem:[%s5557_s26 + $0x150] sm:%s6034_s11] %v2556_v53 }
 0x4a8   : > { %v2560_v33 = vld [vmem:[%s4126_s8 + $0xa0] sm:%s6034_s11]  ;;  %2559 = vst [vmem:[%s5557_s26 + $0x1c0] sm:%s6034_s11] %v2558_v29 }
 0x4a9   : > { %v2562_v40 = vld [vmem:[%s4126_s8 + $0xc0] sm:%s6034_s11]  ;;  %2561 = vst [vmem:[%s5557_s26 + $0x230] sm:%s6034_s11] %v2560_v33 }
 0x4aa   : > { %v2564_v57 = vld [vmem:[%s4126_s8 + $0xe0] sm:%s6034_s11]  ;;  %2563 = vst [vmem:[%s5557_s26 + $0x2a0] sm:%s6034_s11] %v2562_v40 }
 0x4ab   : > { %v2566_v37 = vld [vmem:[%s4126_s8 + $0x100] sm:%s6034_s11]  ;;  %2565 = vst [vmem:[%s5557_s26 + $0x310] sm:%s6034_s11] %v2564_v57 }
 0x4ac   : > { %v2568_v15 = vld [vmem:[%s4126_s8 + $0x120] sm:%s6034_s11]  ;;  %2567 = vst [vmem:[%s5557_s26 + $0x380] sm:%s6034_s11] %v2566_v37 }
 0x4ad   : > { %v2570_v56 = vld [vmem:[%s4126_s8 + $0x140] sm:%s6034_s11]  ;;  %2569 = vst [vmem:[%s5557_s26 + $0x3f0] sm:%s6034_s11] %v2568_v15 }
 0x4ae   : > { %v2572_v61 = vld [vmem:[%s4126_s8 + $0x160] sm:%s6034_s11]  ;;  %2571 = vst [vmem:[%s5557_s26 + $0x460] sm:%s6034_s11] %v2570_v56 }
 0x4af   : > { %v2574_v42 = vld [vmem:[%s4126_s8 + $0x180] sm:%s6034_s11]  ;;  %2573 = vst [vmem:[%s5557_s26 + $0x4d0] sm:%s6034_s11] %v2572_v61 }
 0x4b0   : > { %v2576_v55 = vld [vmem:[%s4126_s8 + $0x1a0] sm:%s6034_s11]  ;;  %2575 = vst [vmem:[%s5557_s26 + $0x540] sm:%s6034_s11] %v2574_v42 }
 0x4b1   : > { %v2578_v43 = vld [vmem:[%s4126_s8 + $0x1c0] sm:%s6034_s11]  ;;  %2577 = vst [vmem:[%s5557_s26 + $0x5b0] sm:%s6034_s11] %v2576_v55 }
 0x4b2   : > { %v2580_v44 = vld [vmem:[%s4126_s8 + $0x1e0] sm:%s6034_s11]  ;;  %2579 = vst [vmem:[%s5557_s26 + $0x620] sm:%s6034_s11] %v2578_v43 }
 0x4b3   : > { %2581 = vst [vmem:[%s5557_s26 + $0x690] sm:%s6034_s11] %v2580_v44 }
 0x4b4 PF: > { %s13_s18 = sadd.s32 1, %s3967_s18   ;;  %s6454_s12 = smov %s3947_s13 }
 0x4b5   : > { %p10_p1 = scmp.ge.s32.totalorder %s13_s18, 10   ;;  %s6455_s13 = smov %s4118_s27 }
 0x4b6   : > { %s6456_s14 = smov %s3959_s16  ;;  %s6457_s15 = smov %s3963_s17 }
 0x4b7   : > { %s6458_s16 = smov %s6461_s19  ;;  %s6459_s17 = smov %s6465_s20 }
 0x4b8   :  { %12 = sbr.rel (!%p10_p1) target bundleno = 4 (0x4), region = 194 }

</bundles_post_ra>
